<compile_context>
chip_gen: v7x
topology: tpu7x:2x2x1
jax: 0.10.0
libtpu: 0.0.40
codegen_flags: <defaults>
</compile_context>

<pallas_src>
import functools

import jax
import jax.numpy as jnp
from jax.experimental import pallas as pl
from jax.experimental.pallas import tpu as pltpu

DIM = 512
C1 = 64
C2 = 128


def _pick_block(n):
    """Largest batch block that divides n while keeping >= 2 grid steps (megacore)."""
    for nb in (8, 4, 2):
        if n % nb == 0 and n // nb >= 2:
            return nb
    return 1


def _make_kernel(NB, P1w, Nppad, H2, W2, NC, OC):
    """Per-block kernel; all spatial sizes baked in statically."""
    slab2 = (H2 - 1) * P1w + W2          # conv2 shifted-slab length
    P2h, P2w = H2 // 2, W2 // 2          # after 2nd maxpool

    def kernel(x_ref, w1_ref, b1_ref, w2_ref, b2_ref,
               fc1w_ref, fc1b_ref, fc2w_ref, fc2b_ref,
               hw_ref, hb_ref, out_ref):
        flats = []
        for i in range(NB):
            x = x_ref[i]                                     # (4*Nppad, 9*Cin) bf16

            # ---- conv1: one fused matmul over all 9 taps, + bias + ReLU ----
            a1 = jnp.dot(x, w1_ref[...], preferred_element_type=jnp.float32)
            a1 = jnp.maximum(a1 + b1_ref[...], 0.0)          # (4*Nppad, C1)

            # ---- maxpool1: quadrant max (im2col rows pre-ordered host-side) ----
            p1 = jnp.maximum(
                jnp.maximum(a1[0:Nppad], a1[Nppad:2 * Nppad]),
                jnp.maximum(a1[2 * Nppad:3 * Nppad], a1[3 * Nppad:4 * Nppad]))
            # valid pooled pixels live in rows [0, P1h*P1w); padded rows never read.

            # ---- conv2: fuse 9 shifted-tap matmuls into one (slab2, 576) x (576, 128) ----
            taps = [p1[dy * P1w + dx: dy * P1w + dx + slab2, :]
                    for dy in range(3) for dx in range(3)]
            c2in = jnp.concatenate(taps, axis=1).astype(jnp.bfloat16)  # (slab2, 9*C1)
            a2 = jnp.dot(c2in, w2_ref[...], preferred_element_type=jnp.float32)
            a2 = jnp.maximum(a2 + b2_ref[...], 0.0)          # (slab2, C2)

            # ---- maxpool2 (only P2h*P2w pixels) + (h, w, c) flatten, lane-aligned ----
            pix = []
            for ro in range(P2h):
                r0 = a2[(2 * ro) * P1w:(2 * ro) * P1w + W2, :]
                r1 = a2[(2 * ro + 1) * P1w:(2 * ro + 1) * P1w + W2, :]
                rm = jnp.maximum(r0, r1)
                for co in range(P2w):
                    pix.append(jnp.maximum(rm[2 * co:2 * co + 1, :],
                                           rm[2 * co + 1:2 * co + 2, :]))
            flats.append(jnp.concatenate(pix, axis=1))       # (1, flat), 128-aligned pieces

        flat = jnp.concatenate(flats, axis=0).astype(jnp.bfloat16)    # (NB, flat)

        # ---- batched fully-connected head ----
        h1 = jnp.maximum(
            jnp.dot(flat, fc1w_ref[...], preferred_element_type=jnp.float32)
            + fc1b_ref[...], 0.0)
        h2 = jnp.maximum(
            jnp.dot(h1.astype(jnp.bfloat16), fc2w_ref[...],
                    preferred_element_type=jnp.float32)
            + fc2b_ref[...], 0.0)
        head = (jnp.dot(h2.astype(jnp.bfloat16), hw_ref[...],
                        preferred_element_type=jnp.float32)
                + hb_ref[...])                               # (NB, HEADP)

        # ---- L2-normalize the pro_head lanes only (cls lanes unchanged) ----
        lane = jax.lax.broadcasted_iota(jnp.int32, head.shape, 1)
        is_proj = jnp.logical_and(lane >= NC, lane < NC + OC)
        psq = jnp.sum(jnp.where(is_proj, head * head, 0.0), axis=1, keepdims=True)
        inv = jax.lax.rsqrt(jnp.maximum(psq, 1e-24))         # == 1 / max(||p||, 1e-12)
        out_ref[0] = head * jnp.where(is_proj, inv, 1.0)

    return kernel


@functools.partial(jax.jit, static_argnames=("mode",))
def discriminator_forward(x_nchw, params, mode="test"):
    """x_nchw: (N, Cin, P, P) float32 (PyTorch layout).  Returns logits / (logits, proj)."""
    N, Cin, H, W = x_nchw.shape
    NC = params["cls_b"].shape[0]
    OC = params["pro_b"].shape[0]
    HEADP = ((NC + OC + 127) // 128) * 128

    H1, W1 = H - 2, W - 2                # conv1 output (valid)
    P1h, P1w = H1 // 2, W1 // 2          # after maxpool 2x2
    H2, W2 = P1h - 2, P1w - 2            # conv2 output (valid)
    P2h, P2w = H2 // 2, W2 // 2          # after maxpool 2x2
    flat = C2 * P2h * P2w
    Np = P1h * P1w
    Nppad = ((Np + 7) // 8) * 8          # sublane-align each pooling quadrant
    K1 = 9 * Cin

    NB = _pick_block(N)
    G = N // NB

    # ---------------- host-side (XLA) data prep ----------------
    # conv1 im2col, rows reordered into the four 2x2-pool quadrants.
    xp = jnp.transpose(x_nchw, (0, 2, 3, 1))                 # (N, H, W, Cin)
    taps = [xp[:, dy:dy + H1, dx:dx + W1, :] for dy in range(3) for dx in range(3)]
    col = jnp.concatenate(taps, axis=-1)                     # (N, H1, W1, 9*Cin)
    quads = []
    for r0 in (0, 1):
        for c0 in (0, 1):
            q = col[:, r0:2 * P1h:2, c0:2 * P1w:2, :].reshape(N, Np, K1)
            if Nppad > Np:
                q = jnp.pad(q, ((0, 0), (0, Nppad - Np), (0, 0)))
            quads.append(q)
    x_in = jnp.concatenate(quads, axis=1).astype(jnp.bfloat16)   # (N, 4*Nppad, K1)

    # conv weights, tap-major layout; bf16 for the MXU, f32 biases.
    w1f = jnp.transpose(params["conv1_w"], (2, 3, 1, 0)).reshape(K1, C1).astype(jnp.bfloat16)
    b1 = params["conv1_b"].reshape(1, C1).astype(jnp.float32)
    w2f = jnp.transpose(params["conv2_w"], (2, 3, 1, 0)).reshape(9 * C1, C2).astype(jnp.bfloat16)
    b2 = params["conv2_b"].reshape(1, C2).astype(jnp.float32)
    # fc1: permute input columns from PyTorch (c,h,w) flatten order to (h,w,c).
    fc1w = jnp.transpose(params["fc1_w"].reshape(DIM, C2, P2h, P2w),
                         (2, 3, 1, 0)).reshape(flat, DIM).astype(jnp.bfloat16)
    fc1b = params["fc1_b"].reshape(1, DIM).astype(jnp.float32)
    fc2w = params["fc2_w"].T.astype(jnp.bfloat16)
    fc2b = params["fc2_b"].reshape(1, DIM).astype(jnp.float32)
    # fused [cls_head_src | pro_head] head, zero-padded to a lane-dense 128 multiple.
    headw = jnp.zeros((DIM, HEADP), jnp.float32)
    headw = headw.at[:, :NC].set(params["cls_w"].T)
    headw = headw.at[:, NC:NC + OC].set(params["pro_w"].T)
    headw = headw.astype(jnp.bfloat16)
    headb = jnp.zeros((1, HEADP), jnp.float32)
    headb = headb.at[0, :NC].set(params["cls_b"])
    headb = headb.at[0, NC:NC + OC].set(params["pro_b"])

    kernel = _make_kernel(NB, P1w, Nppad, H2, W2, NC, OC)

    full = lambda shape: pl.BlockSpec(shape, lambda b: tuple(0 for _ in shape))

    out = pl.pallas_call(
        kernel,
        out_shape=jax.ShapeDtypeStruct((G, NB, HEADP), jnp.float32),
        grid_spec=pltpu.PrefetchScalarGridSpec(
            num_scalar_prefetch=0,
            grid=(G,),
            in_specs=[
                pl.BlockSpec((NB, 4 * Nppad, K1), lambda b: (b, 0, 0)),
                full((K1, C1)), full((1, C1)),
                full((9 * C1, C2)), full((1, C2)),
                full((flat, DIM)), full((1, DIM)),
                full((DIM, DIM)), full((1, DIM)),
                full((DIM, HEADP)), full((1, HEADP)),
            ],
            out_specs=pl.BlockSpec((1, NB, HEADP), lambda b: (b, 0, 0)),
        ),
        compiler_params=pltpu.CompilerParams(
            dimension_semantics=("parallel",)),
    )(x_in, w1f, b1, w2f, b2, fc1w, fc1b, fc2w, fc2b, headw, headb)

    out = out.reshape(N, HEADP)
    cls = out[:, :NC]
    if mode == "test":
        return cls
    proj = out[:, NC:NC + OC]
    return cls, proj


def init_params(key, inchannel, outchannel, num_classes, patch_size):
    """Deterministic synthetic parameters with the same shapes as the PyTorch module."""
    s1 = (patch_size - 2) // 2
    s2 = (s1 - 2) // 2
    flat = C2 * s2 * s2
    ks = jax.random.split(key, 12)
    n = jax.random.normal
    return {
        "conv1_w": n(ks[0], (C1, inchannel, 3, 3), jnp.float32) * 0.05,
        "conv1_b": n(ks[1], (C1,), jnp.float32) * 0.05,
        "conv2_w": n(ks[2], (C2, C1, 3, 3), jnp.float32) * 0.05,
        "conv2_b": n(ks[3], (C2,), jnp.float32) * 0.05,
        "fc1_w": n(ks[4], (DIM, flat), jnp.float32) * 0.02,
        "fc1_b": n(ks[5], (DIM,), jnp.float32) * 0.02,
        "fc2_w": n(ks[6], (DIM, DIM), jnp.float32) * 0.02,
        "fc2_b": n(ks[7], (DIM,), jnp.float32) * 0.02,
        "cls_w": n(ks[8], (num_classes, DIM), jnp.float32) * 0.02,
        "cls_b": n(ks[9], (num_classes,), jnp.float32) * 0.02,
        "pro_w": n(ks[10], (outchannel, DIM), jnp.float32) * 0.02,
        "pro_b": n(ks[11], (outchannel,), jnp.float32) * 0.02,
    }


if __name__ == "__main__":
    B, Cin, P = 8, 4, 16          # batch, inchannel, patch_size
    NUM_CLASSES, OUTCHANNEL = 10, 8

    key = jax.random.PRNGKey(0)
    kx, kp = jax.random.split(key)
    x = jax.random.normal(kx, (B, Cin, P, P), jnp.float32)
    params = init_params(kp, Cin, OUTCHANNEL, NUM_CLASSES, P)

    logits = discriminator_forward(x, params, mode="test")          # (B, num_classes)
    clss, proj = discriminator_forward(x, params, mode="train")     # (B, nc), (B, outch)
    jax.block_until_ready((logits, clss, proj))
    print("KERNEL_OK")
</pallas_src>

<mosaic_0001>
module attributes {stable_mosaic.version = 11 : i64} {
  func.func @kernel(%arg0: i32, %arg1: memref<4x224x36xbf16, #tpu.memory_space<vmem>>, %arg2: memref<36x64xbf16, #tpu.memory_space<vmem>>, %arg3: memref<1x64xf32, #tpu.memory_space<vmem>>, %arg4: memref<576x128xbf16, #tpu.memory_space<vmem>>, %arg5: memref<1x128xf32, #tpu.memory_space<vmem>>, %arg6: memref<512x512xbf16, #tpu.memory_space<vmem>>, %arg7: memref<1x512xf32, #tpu.memory_space<vmem>>, %arg8: memref<512x512xbf16, #tpu.memory_space<vmem>>, %arg9: memref<1x512xf32, #tpu.memory_space<vmem>>, %arg10: memref<512x128xbf16, #tpu.memory_space<vmem>>, %arg11: memref<1x128xf32, #tpu.memory_space<vmem>>, %arg12: memref<1x4x128xf32, #tpu.memory_space<vmem>>) attributes {dimension_semantics = [#tpu.dimension_semantics<parallel>], iteration_bounds = array<i64: 2>, scalar_prefetch = 0 : i64, scratch_operands = 0 : i64, tpu.core_type = #tpu.core_type<tc>, window_params = [{transform_indices = @transform_0, window_bounds = array<i64: 4, 224, 36>}, {pipeline_mode = #tpu.pipeline_mode<synchronous>, transform_indices = @transform_1, window_bounds = array<i64: 36, 64>}, {pipeline_mode = #tpu.pipeline_mode<synchronous>, transform_indices = @transform_2, window_bounds = array<i64: 1, 64>}, {pipeline_mode = #tpu.pipeline_mode<synchronous>, transform_indices = @transform_3, window_bounds = array<i64: 576, 128>}, {pipeline_mode = #tpu.pipeline_mode<synchronous>, transform_indices = @transform_4, window_bounds = array<i64: 1, 128>}, {pipeline_mode = #tpu.pipeline_mode<synchronous>, transform_indices = @transform_5, window_bounds = array<i64: 512, 512>}, {pipeline_mode = #tpu.pipeline_mode<synchronous>, transform_indices = @transform_6, window_bounds = array<i64: 1, 512>}, {pipeline_mode = #tpu.pipeline_mode<synchronous>, transform_indices = @transform_7, window_bounds = array<i64: 512, 512>}, {pipeline_mode = #tpu.pipeline_mode<synchronous>, transform_indices = @transform_8, window_bounds = array<i64: 1, 512>}, {pipeline_mode = #tpu.pipeline_mode<synchronous>, transform_indices = @transform_9, window_bounds = array<i64: 512, 128>}, {pipeline_mode = #tpu.pipeline_mode<synchronous>, transform_indices = @transform_10, window_bounds = array<i64: 1, 128>}, {transform_indices = @transform_11, window_bounds = array<i64: 1, 4, 128>}]} {
    %c0 = arith.constant 0 : index
    %c0_0 = arith.constant 0 : index
    %c0_1 = arith.constant 0 : index
    %0 = vector.load %arg1[%c0, %c0_0, %c0_1] : memref<4x224x36xbf16, #tpu.memory_space<vmem>>, vector<1x224x36xbf16>
    %1 = vector.shape_cast %0 : vector<1x224x36xbf16> to vector<224x36xbf16>
    %c0_2 = arith.constant 0 : index
    %c0_3 = arith.constant 0 : index
    %2 = vector.load %arg2[%c0_2, %c0_3] : memref<36x64xbf16, #tpu.memory_space<vmem>>, vector<36x64xbf16>
    %cst = arith.constant dense<0.000000e+00> : vector<224x64xf32>
    %3 = tpu.matmul %1, %2, %cst {dimension_numbers = #tpu.dot_dimension_numbers<[1], [0], [0], [1], [0, 0, 1, 1], [], []>} : vector<224x36xbf16>, vector<36x64xbf16>, vector<224x64xf32> -> vector<224x64xf32>
    %c0_4 = arith.constant 0 : index
    %c0_5 = arith.constant 0 : index
    %4 = vector.load %arg3[%c0_4, %c0_5] : memref<1x64xf32, #tpu.memory_space<vmem>>, vector<1x64xf32>
    %5 = vector.broadcast %4 : vector<1x64xf32> to vector<224x64xf32>
    %6 = arith.addf %3, %5 : vector<224x64xf32>
    %cst_6 = arith.constant 0.000000e+00 : f32
    %7 = vector.broadcast %cst_6 : f32 to vector<224x64xf32>
    %8 = arith.maximumf %6, %7 : vector<224x64xf32>
    %9 = vector.extract_strided_slice %8 {offsets = [0, 0], sizes = [56, 64], strides = [1, 1]} : vector<224x64xf32> to vector<56x64xf32>
    %10 = vector.extract_strided_slice %8 {offsets = [56, 0], sizes = [56, 64], strides = [1, 1]} : vector<224x64xf32> to vector<56x64xf32>
    %11 = arith.maximumf %9, %10 : vector<56x64xf32>
    %12 = vector.extract_strided_slice %8 {offsets = [112, 0], sizes = [56, 64], strides = [1, 1]} : vector<224x64xf32> to vector<56x64xf32>
    %13 = vector.extract_strided_slice %8 {offsets = [168, 0], sizes = [56, 64], strides = [1, 1]} : vector<224x64xf32> to vector<56x64xf32>
    %14 = arith.maximumf %12, %13 : vector<56x64xf32>
    %15 = arith.maximumf %11, %14 : vector<56x64xf32>
    %16 = vector.extract_strided_slice %15 {offsets = [0, 0], sizes = [33, 64], strides = [1, 1]} : vector<56x64xf32> to vector<33x64xf32>
    %17 = vector.extract_strided_slice %15 {offsets = [1, 0], sizes = [33, 64], strides = [1, 1]} : vector<56x64xf32> to vector<33x64xf32>
    %18 = vector.extract_strided_slice %15 {offsets = [2, 0], sizes = [33, 64], strides = [1, 1]} : vector<56x64xf32> to vector<33x64xf32>
    %19 = vector.extract_strided_slice %15 {offsets = [7, 0], sizes = [33, 64], strides = [1, 1]} : vector<56x64xf32> to vector<33x64xf32>
    %20 = vector.extract_strided_slice %15 {offsets = [8, 0], sizes = [33, 64], strides = [1, 1]} : vector<56x64xf32> to vector<33x64xf32>
    %21 = vector.extract_strided_slice %15 {offsets = [9, 0], sizes = [33, 64], strides = [1, 1]} : vector<56x64xf32> to vector<33x64xf32>
    %22 = vector.extract_strided_slice %15 {offsets = [14, 0], sizes = [33, 64], strides = [1, 1]} : vector<56x64xf32> to vector<33x64xf32>
    %23 = vector.extract_strided_slice %15 {offsets = [15, 0], sizes = [33, 64], strides = [1, 1]} : vector<56x64xf32> to vector<33x64xf32>
    %24 = vector.extract_strided_slice %15 {offsets = [16, 0], sizes = [33, 64], strides = [1, 1]} : vector<56x64xf32> to vector<33x64xf32>
    %25 = tpu.concatenate %16, %17, %18, %19, %20, %21, %22, %23, %24 in 1 : vector<33x64xf32>, vector<33x64xf32>, vector<33x64xf32>, vector<33x64xf32>, vector<33x64xf32>, vector<33x64xf32>, vector<33x64xf32>, vector<33x64xf32>, vector<33x64xf32> -> vector<33x576xf32>
    %26 = arith.truncf %25 : vector<33x576xf32> to vector<33x576xbf16>
    %c0_7 = arith.constant 0 : index
    %c0_8 = arith.constant 0 : index
    %27 = vector.load %arg4[%c0_7, %c0_8] : memref<576x128xbf16, #tpu.memory_space<vmem>>, vector<576x128xbf16>
    %cst_9 = arith.constant dense<0.000000e+00> : vector<33x128xf32>
    %28 = tpu.matmul %26, %27, %cst_9 {dimension_numbers = #tpu.dot_dimension_numbers<[1], [0], [0], [1], [0, 0, 1, 1], [], []>} : vector<33x576xbf16>, vector<576x128xbf16>, vector<33x128xf32> -> vector<33x128xf32>
    %c0_10 = arith.constant 0 : index
    %c0_11 = arith.constant 0 : index
    %29 = vector.load %arg5[%c0_10, %c0_11] : memref<1x128xf32, #tpu.memory_space<vmem>>, vector<1x128xf32>
    %30 = vector.broadcast %29 : vector<1x128xf32> to vector<33x128xf32>
    %31 = arith.addf %28, %30 : vector<33x128xf32>
    %cst_12 = arith.constant 0.000000e+00 : f32
    %32 = vector.broadcast %cst_12 : f32 to vector<33x128xf32>
    %33 = arith.maximumf %31, %32 : vector<33x128xf32>
    %34 = vector.extract_strided_slice %33 {offsets = [0, 0], sizes = [5, 128], strides = [1, 1]} : vector<33x128xf32> to vector<5x128xf32>
    %35 = vector.extract_strided_slice %33 {offsets = [7, 0], sizes = [5, 128], strides = [1, 1]} : vector<33x128xf32> to vector<5x128xf32>
    %36 = arith.maximumf %34, %35 : vector<5x128xf32>
    %37 = vector.extract_strided_slice %36 {offsets = [0, 0], sizes = [1, 128], strides = [1, 1]} : vector<5x128xf32> to vector<1x128xf32>
    %38 = vector.extract_strided_slice %36 {offsets = [1, 0], sizes = [1, 128], strides = [1, 1]} : vector<5x128xf32> to vector<1x128xf32>
    %39 = arith.maximumf %37, %38 : vector<1x128xf32>
    %40 = vector.extract_strided_slice %36 {offsets = [2, 0], sizes = [1, 128], strides = [1, 1]} : vector<5x128xf32> to vector<1x128xf32>
    %41 = vector.extract_strided_slice %36 {offsets = [3, 0], sizes = [1, 128], strides = [1, 1]} : vector<5x128xf32> to vector<1x128xf32>
    %42 = arith.maximumf %40, %41 : vector<1x128xf32>
    %43 = vector.extract_strided_slice %33 {offsets = [14, 0], sizes = [5, 128], strides = [1, 1]} : vector<33x128xf32> to vector<5x128xf32>
    %44 = vector.extract_strided_slice %33 {offsets = [21, 0], sizes = [5, 128], strides = [1, 1]} : vector<33x128xf32> to vector<5x128xf32>
    %45 = arith.maximumf %43, %44 : vector<5x128xf32>
    %46 = vector.extract_strided_slice %45 {offsets = [0, 0], sizes = [1, 128], strides = [1, 1]} : vector<5x128xf32> to vector<1x128xf32>
    %47 = vector.extract_strided_slice %45 {offsets = [1, 0], sizes = [1, 128], strides = [1, 1]} : vector<5x128xf32> to vector<1x128xf32>
    %48 = arith.maximumf %46, %47 : vector<1x128xf32>
    %49 = vector.extract_strided_slice %45 {offsets = [2, 0], sizes = [1, 128], strides = [1, 1]} : vector<5x128xf32> to vector<1x128xf32>
    %50 = vector.extract_strided_slice %45 {offsets = [3, 0], sizes = [1, 128], strides = [1, 1]} : vector<5x128xf32> to vector<1x128xf32>
    %51 = arith.maximumf %49, %50 : vector<1x128xf32>
    %52 = tpu.concatenate %39, %42, %48, %51 in 1 : vector<1x128xf32>, vector<1x128xf32>, vector<1x128xf32>, vector<1x128xf32> -> vector<1x512xf32>
    %c1 = arith.constant 1 : index
    %c0_13 = arith.constant 0 : index
    %c0_14 = arith.constant 0 : index
    %53 = vector.load %arg1[%c1, %c0_13, %c0_14] : memref<4x224x36xbf16, #tpu.memory_space<vmem>>, vector<1x224x36xbf16>
    %54 = vector.shape_cast %53 : vector<1x224x36xbf16> to vector<224x36xbf16>
    %c0_15 = arith.constant 0 : index
    %c0_16 = arith.constant 0 : index
    %55 = vector.load %arg2[%c0_15, %c0_16] : memref<36x64xbf16, #tpu.memory_space<vmem>>, vector<36x64xbf16>
    %cst_17 = arith.constant dense<0.000000e+00> : vector<224x64xf32>
    %56 = tpu.matmul %54, %55, %cst_17 {dimension_numbers = #tpu.dot_dimension_numbers<[1], [0], [0], [1], [0, 0, 1, 1], [], []>} : vector<224x36xbf16>, vector<36x64xbf16>, vector<224x64xf32> -> vector<224x64xf32>
    %c0_18 = arith.constant 0 : index
    %c0_19 = arith.constant 0 : index
    %57 = vector.load %arg3[%c0_18, %c0_19] : memref<1x64xf32, #tpu.memory_space<vmem>>, vector<1x64xf32>
    %58 = vector.broadcast %57 : vector<1x64xf32> to vector<224x64xf32>
    %59 = arith.addf %56, %58 : vector<224x64xf32>
    %cst_20 = arith.constant 0.000000e+00 : f32
    %60 = vector.broadcast %cst_20 : f32 to vector<224x64xf32>
    %61 = arith.maximumf %59, %60 : vector<224x64xf32>
    %62 = vector.extract_strided_slice %61 {offsets = [0, 0], sizes = [56, 64], strides = [1, 1]} : vector<224x64xf32> to vector<56x64xf32>
    %63 = vector.extract_strided_slice %61 {offsets = [56, 0], sizes = [56, 64], strides = [1, 1]} : vector<224x64xf32> to vector<56x64xf32>
    %64 = arith.maximumf %62, %63 : vector<56x64xf32>
    %65 = vector.extract_strided_slice %61 {offsets = [112, 0], sizes = [56, 64], strides = [1, 1]} : vector<224x64xf32> to vector<56x64xf32>
    %66 = vector.extract_strided_slice %61 {offsets = [168, 0], sizes = [56, 64], strides = [1, 1]} : vector<224x64xf32> to vector<56x64xf32>
    %67 = arith.maximumf %65, %66 : vector<56x64xf32>
    %68 = arith.maximumf %64, %67 : vector<56x64xf32>
    %69 = vector.extract_strided_slice %68 {offsets = [0, 0], sizes = [33, 64], strides = [1, 1]} : vector<56x64xf32> to vector<33x64xf32>
    %70 = vector.extract_strided_slice %68 {offsets = [1, 0], sizes = [33, 64], strides = [1, 1]} : vector<56x64xf32> to vector<33x64xf32>
    %71 = vector.extract_strided_slice %68 {offsets = [2, 0], sizes = [33, 64], strides = [1, 1]} : vector<56x64xf32> to vector<33x64xf32>
    %72 = vector.extract_strided_slice %68 {offsets = [7, 0], sizes = [33, 64], strides = [1, 1]} : vector<56x64xf32> to vector<33x64xf32>
    %73 = vector.extract_strided_slice %68 {offsets = [8, 0], sizes = [33, 64], strides = [1, 1]} : vector<56x64xf32> to vector<33x64xf32>
    %74 = vector.extract_strided_slice %68 {offsets = [9, 0], sizes = [33, 64], strides = [1, 1]} : vector<56x64xf32> to vector<33x64xf32>
    %75 = vector.extract_strided_slice %68 {offsets = [14, 0], sizes = [33, 64], strides = [1, 1]} : vector<56x64xf32> to vector<33x64xf32>
    %76 = vector.extract_strided_slice %68 {offsets = [15, 0], sizes = [33, 64], strides = [1, 1]} : vector<56x64xf32> to vector<33x64xf32>
    %77 = vector.extract_strided_slice %68 {offsets = [16, 0], sizes = [33, 64], strides = [1, 1]} : vector<56x64xf32> to vector<33x64xf32>
    %78 = tpu.concatenate %69, %70, %71, %72, %73, %74, %75, %76, %77 in 1 : vector<33x64xf32>, vector<33x64xf32>, vector<33x64xf32>, vector<33x64xf32>, vector<33x64xf32>, vector<33x64xf32>, vector<33x64xf32>, vector<33x64xf32>, vector<33x64xf32> -> vector<33x576xf32>
    %79 = arith.truncf %78 : vector<33x576xf32> to vector<33x576xbf16>
    %c0_21 = arith.constant 0 : index
    %c0_22 = arith.constant 0 : index
    %80 = vector.load %arg4[%c0_21, %c0_22] : memref<576x128xbf16, #tpu.memory_space<vmem>>, vector<576x128xbf16>
    %cst_23 = arith.constant dense<0.000000e+00> : vector<33x128xf32>
    %81 = tpu.matmul %79, %80, %cst_23 {dimension_numbers = #tpu.dot_dimension_numbers<[1], [0], [0], [1], [0, 0, 1, 1], [], []>} : vector<33x576xbf16>, vector<576x128xbf16>, vector<33x128xf32> -> vector<33x128xf32>
    %c0_24 = arith.constant 0 : index
    %c0_25 = arith.constant 0 : index
    %82 = vector.load %arg5[%c0_24, %c0_25] : memref<1x128xf32, #tpu.memory_space<vmem>>, vector<1x128xf32>
    %83 = vector.broadcast %82 : vector<1x128xf32> to vector<33x128xf32>
    %84 = arith.addf %81, %83 : vector<33x128xf32>
    %cst_26 = arith.constant 0.000000e+00 : f32
    %85 = vector.broadcast %cst_26 : f32 to vector<33x128xf32>
    %86 = arith.maximumf %84, %85 : vector<33x128xf32>
    %87 = vector.extract_strided_slice %86 {offsets = [0, 0], sizes = [5, 128], strides = [1, 1]} : vector<33x128xf32> to vector<5x128xf32>
    %88 = vector.extract_strided_slice %86 {offsets = [7, 0], sizes = [5, 128], strides = [1, 1]} : vector<33x128xf32> to vector<5x128xf32>
    %89 = arith.maximumf %87, %88 : vector<5x128xf32>
    %90 = vector.extract_strided_slice %89 {offsets = [0, 0], sizes = [1, 128], strides = [1, 1]} : vector<5x128xf32> to vector<1x128xf32>
    %91 = vector.extract_strided_slice %89 {offsets = [1, 0], sizes = [1, 128], strides = [1, 1]} : vector<5x128xf32> to vector<1x128xf32>
    %92 = arith.maximumf %90, %91 : vector<1x128xf32>
    %93 = vector.extract_strided_slice %89 {offsets = [2, 0], sizes = [1, 128], strides = [1, 1]} : vector<5x128xf32> to vector<1x128xf32>
    %94 = vector.extract_strided_slice %89 {offsets = [3, 0], sizes = [1, 128], strides = [1, 1]} : vector<5x128xf32> to vector<1x128xf32>
    %95 = arith.maximumf %93, %94 : vector<1x128xf32>
    %96 = vector.extract_strided_slice %86 {offsets = [14, 0], sizes = [5, 128], strides = [1, 1]} : vector<33x128xf32> to vector<5x128xf32>
    %97 = vector.extract_strided_slice %86 {offsets = [21, 0], sizes = [5, 128], strides = [1, 1]} : vector<33x128xf32> to vector<5x128xf32>
    %98 = arith.maximumf %96, %97 : vector<5x128xf32>
    %99 = vector.extract_strided_slice %98 {offsets = [0, 0], sizes = [1, 128], strides = [1, 1]} : vector<5x128xf32> to vector<1x128xf32>
    %100 = vector.extract_strided_slice %98 {offsets = [1, 0], sizes = [1, 128], strides = [1, 1]} : vector<5x128xf32> to vector<1x128xf32>
    %101 = arith.maximumf %99, %100 : vector<1x128xf32>
    %102 = vector.extract_strided_slice %98 {offsets = [2, 0], sizes = [1, 128], strides = [1, 1]} : vector<5x128xf32> to vector<1x128xf32>
    %103 = vector.extract_strided_slice %98 {offsets = [3, 0], sizes = [1, 128], strides = [1, 1]} : vector<5x128xf32> to vector<1x128xf32>
    %104 = arith.maximumf %102, %103 : vector<1x128xf32>
    %105 = tpu.concatenate %92, %95, %101, %104 in 1 : vector<1x128xf32>, vector<1x128xf32>, vector<1x128xf32>, vector<1x128xf32> -> vector<1x512xf32>
    %c2 = arith.constant 2 : index
    %c0_27 = arith.constant 0 : index
    %c0_28 = arith.constant 0 : index
    %106 = vector.load %arg1[%c2, %c0_27, %c0_28] : memref<4x224x36xbf16, #tpu.memory_space<vmem>>, vector<1x224x36xbf16>
    %107 = vector.shape_cast %106 : vector<1x224x36xbf16> to vector<224x36xbf16>
    %c0_29 = arith.constant 0 : index
    %c0_30 = arith.constant 0 : index
    %108 = vector.load %arg2[%c0_29, %c0_30] : memref<36x64xbf16, #tpu.memory_space<vmem>>, vector<36x64xbf16>
    %cst_31 = arith.constant dense<0.000000e+00> : vector<224x64xf32>
    %109 = tpu.matmul %107, %108, %cst_31 {dimension_numbers = #tpu.dot_dimension_numbers<[1], [0], [0], [1], [0, 0, 1, 1], [], []>} : vector<224x36xbf16>, vector<36x64xbf16>, vector<224x64xf32> -> vector<224x64xf32>
    %c0_32 = arith.constant 0 : index
    %c0_33 = arith.constant 0 : index
    %110 = vector.load %arg3[%c0_32, %c0_33] : memref<1x64xf32, #tpu.memory_space<vmem>>, vector<1x64xf32>
    %111 = vector.broadcast %110 : vector<1x64xf32> to vector<224x64xf32>
    %112 = arith.addf %109, %111 : vector<224x64xf32>
    %cst_34 = arith.constant 0.000000e+00 : f32
    %113 = vector.broadcast %cst_34 : f32 to vector<224x64xf32>
    %114 = arith.maximumf %112, %113 : vector<224x64xf32>
    %115 = vector.extract_strided_slice %114 {offsets = [0, 0], sizes = [56, 64], strides = [1, 1]} : vector<224x64xf32> to vector<56x64xf32>
    %116 = vector.extract_strided_slice %114 {offsets = [56, 0], sizes = [56, 64], strides = [1, 1]} : vector<224x64xf32> to vector<56x64xf32>
    %117 = arith.maximumf %115, %116 : vector<56x64xf32>
    %118 = vector.extract_strided_slice %114 {offsets = [112, 0], sizes = [56, 64], strides = [1, 1]} : vector<224x64xf32> to vector<56x64xf32>
    %119 = vector.extract_strided_slice %114 {offsets = [168, 0], sizes = [56, 64], strides = [1, 1]} : vector<224x64xf32> to vector<56x64xf32>
    %120 = arith.maximumf %118, %119 : vector<56x64xf32>
    %121 = arith.maximumf %117, %120 : vector<56x64xf32>
    %122 = vector.extract_strided_slice %121 {offsets = [0, 0], sizes = [33, 64], strides = [1, 1]} : vector<56x64xf32> to vector<33x64xf32>
    %123 = vector.extract_strided_slice %121 {offsets = [1, 0], sizes = [33, 64], strides = [1, 1]} : vector<56x64xf32> to vector<33x64xf32>
    %124 = vector.extract_strided_slice %121 {offsets = [2, 0], sizes = [33, 64], strides = [1, 1]} : vector<56x64xf32> to vector<33x64xf32>
    %125 = vector.extract_strided_slice %121 {offsets = [7, 0], sizes = [33, 64], strides = [1, 1]} : vector<56x64xf32> to vector<33x64xf32>
    %126 = vector.extract_strided_slice %121 {offsets = [8, 0], sizes = [33, 64], strides = [1, 1]} : vector<56x64xf32> to vector<33x64xf32>
    %127 = vector.extract_strided_slice %121 {offsets = [9, 0], sizes = [33, 64], strides = [1, 1]} : vector<56x64xf32> to vector<33x64xf32>
    %128 = vector.extract_strided_slice %121 {offsets = [14, 0], sizes = [33, 64], strides = [1, 1]} : vector<56x64xf32> to vector<33x64xf32>
    %129 = vector.extract_strided_slice %121 {offsets = [15, 0], sizes = [33, 64], strides = [1, 1]} : vector<56x64xf32> to vector<33x64xf32>
    %130 = vector.extract_strided_slice %121 {offsets = [16, 0], sizes = [33, 64], strides = [1, 1]} : vector<56x64xf32> to vector<33x64xf32>
    %131 = tpu.concatenate %122, %123, %124, %125, %126, %127, %128, %129, %130 in 1 : vector<33x64xf32>, vector<33x64xf32>, vector<33x64xf32>, vector<33x64xf32>, vector<33x64xf32>, vector<33x64xf32>, vector<33x64xf32>, vector<33x64xf32>, vector<33x64xf32> -> vector<33x576xf32>
    %132 = arith.truncf %131 : vector<33x576xf32> to vector<33x576xbf16>
    %c0_35 = arith.constant 0 : index
    %c0_36 = arith.constant 0 : index
    %133 = vector.load %arg4[%c0_35, %c0_36] : memref<576x128xbf16, #tpu.memory_space<vmem>>, vector<576x128xbf16>
    %cst_37 = arith.constant dense<0.000000e+00> : vector<33x128xf32>
    %134 = tpu.matmul %132, %133, %cst_37 {dimension_numbers = #tpu.dot_dimension_numbers<[1], [0], [0], [1], [0, 0, 1, 1], [], []>} : vector<33x576xbf16>, vector<576x128xbf16>, vector<33x128xf32> -> vector<33x128xf32>
    %c0_38 = arith.constant 0 : index
    %c0_39 = arith.constant 0 : index
    %135 = vector.load %arg5[%c0_38, %c0_39] : memref<1x128xf32, #tpu.memory_space<vmem>>, vector<1x128xf32>
    %136 = vector.broadcast %135 : vector<1x128xf32> to vector<33x128xf32>
    %137 = arith.addf %134, %136 : vector<33x128xf32>
    %cst_40 = arith.constant 0.000000e+00 : f32
    %138 = vector.broadcast %cst_40 : f32 to vector<33x128xf32>
    %139 = arith.maximumf %137, %138 : vector<33x128xf32>
    %140 = vector.extract_strided_slice %139 {offsets = [0, 0], sizes = [5, 128], strides = [1, 1]} : vector<33x128xf32> to vector<5x128xf32>
    %141 = vector.extract_strided_slice %139 {offsets = [7, 0], sizes = [5, 128], strides = [1, 1]} : vector<33x128xf32> to vector<5x128xf32>
    %142 = arith.maximumf %140, %141 : vector<5x128xf32>
    %143 = vector.extract_strided_slice %142 {offsets = [0, 0], sizes = [1, 128], strides = [1, 1]} : vector<5x128xf32> to vector<1x128xf32>
    %144 = vector.extract_strided_slice %142 {offsets = [1, 0], sizes = [1, 128], strides = [1, 1]} : vector<5x128xf32> to vector<1x128xf32>
    %145 = arith.maximumf %143, %144 : vector<1x128xf32>
    %146 = vector.extract_strided_slice %142 {offsets = [2, 0], sizes = [1, 128], strides = [1, 1]} : vector<5x128xf32> to vector<1x128xf32>
    %147 = vector.extract_strided_slice %142 {offsets = [3, 0], sizes = [1, 128], strides = [1, 1]} : vector<5x128xf32> to vector<1x128xf32>
    %148 = arith.maximumf %146, %147 : vector<1x128xf32>
    %149 = vector.extract_strided_slice %139 {offsets = [14, 0], sizes = [5, 128], strides = [1, 1]} : vector<33x128xf32> to vector<5x128xf32>
    %150 = vector.extract_strided_slice %139 {offsets = [21, 0], sizes = [5, 128], strides = [1, 1]} : vector<33x128xf32> to vector<5x128xf32>
    %151 = arith.maximumf %149, %150 : vector<5x128xf32>
    %152 = vector.extract_strided_slice %151 {offsets = [0, 0], sizes = [1, 128], strides = [1, 1]} : vector<5x128xf32> to vector<1x128xf32>
    %153 = vector.extract_strided_slice %151 {offsets = [1, 0], sizes = [1, 128], strides = [1, 1]} : vector<5x128xf32> to vector<1x128xf32>
    %154 = arith.maximumf %152, %153 : vector<1x128xf32>
    %155 = vector.extract_strided_slice %151 {offsets = [2, 0], sizes = [1, 128], strides = [1, 1]} : vector<5x128xf32> to vector<1x128xf32>
    %156 = vector.extract_strided_slice %151 {offsets = [3, 0], sizes = [1, 128], strides = [1, 1]} : vector<5x128xf32> to vector<1x128xf32>
    %157 = arith.maximumf %155, %156 : vector<1x128xf32>
    %158 = tpu.concatenate %145, %148, %154, %157 in 1 : vector<1x128xf32>, vector<1x128xf32>, vector<1x128xf32>, vector<1x128xf32> -> vector<1x512xf32>
    %c3 = arith.constant 3 : index
    %c0_41 = arith.constant 0 : index
    %c0_42 = arith.constant 0 : index
    %159 = vector.load %arg1[%c3, %c0_41, %c0_42] : memref<4x224x36xbf16, #tpu.memory_space<vmem>>, vector<1x224x36xbf16>
    %160 = vector.shape_cast %159 : vector<1x224x36xbf16> to vector<224x36xbf16>
    %c0_43 = arith.constant 0 : index
    %c0_44 = arith.constant 0 : index
    %161 = vector.load %arg2[%c0_43, %c0_44] : memref<36x64xbf16, #tpu.memory_space<vmem>>, vector<36x64xbf16>
    %cst_45 = arith.constant dense<0.000000e+00> : vector<224x64xf32>
    %162 = tpu.matmul %160, %161, %cst_45 {dimension_numbers = #tpu.dot_dimension_numbers<[1], [0], [0], [1], [0, 0, 1, 1], [], []>} : vector<224x36xbf16>, vector<36x64xbf16>, vector<224x64xf32> -> vector<224x64xf32>
    %c0_46 = arith.constant 0 : index
    %c0_47 = arith.constant 0 : index
    %163 = vector.load %arg3[%c0_46, %c0_47] : memref<1x64xf32, #tpu.memory_space<vmem>>, vector<1x64xf32>
    %164 = vector.broadcast %163 : vector<1x64xf32> to vector<224x64xf32>
    %165 = arith.addf %162, %164 : vector<224x64xf32>
    %cst_48 = arith.constant 0.000000e+00 : f32
    %166 = vector.broadcast %cst_48 : f32 to vector<224x64xf32>
    %167 = arith.maximumf %165, %166 : vector<224x64xf32>
    %168 = vector.extract_strided_slice %167 {offsets = [0, 0], sizes = [56, 64], strides = [1, 1]} : vector<224x64xf32> to vector<56x64xf32>
    %169 = vector.extract_strided_slice %167 {offsets = [56, 0], sizes = [56, 64], strides = [1, 1]} : vector<224x64xf32> to vector<56x64xf32>
    %170 = arith.maximumf %168, %169 : vector<56x64xf32>
    %171 = vector.extract_strided_slice %167 {offsets = [112, 0], sizes = [56, 64], strides = [1, 1]} : vector<224x64xf32> to vector<56x64xf32>
    %172 = vector.extract_strided_slice %167 {offsets = [168, 0], sizes = [56, 64], strides = [1, 1]} : vector<224x64xf32> to vector<56x64xf32>
    %173 = arith.maximumf %171, %172 : vector<56x64xf32>
    %174 = arith.maximumf %170, %173 : vector<56x64xf32>
    %175 = vector.extract_strided_slice %174 {offsets = [0, 0], sizes = [33, 64], strides = [1, 1]} : vector<56x64xf32> to vector<33x64xf32>
    %176 = vector.extract_strided_slice %174 {offsets = [1, 0], sizes = [33, 64], strides = [1, 1]} : vector<56x64xf32> to vector<33x64xf32>
    %177 = vector.extract_strided_slice %174 {offsets = [2, 0], sizes = [33, 64], strides = [1, 1]} : vector<56x64xf32> to vector<33x64xf32>
    %178 = vector.extract_strided_slice %174 {offsets = [7, 0], sizes = [33, 64], strides = [1, 1]} : vector<56x64xf32> to vector<33x64xf32>
    %179 = vector.extract_strided_slice %174 {offsets = [8, 0], sizes = [33, 64], strides = [1, 1]} : vector<56x64xf32> to vector<33x64xf32>
    %180 = vector.extract_strided_slice %174 {offsets = [9, 0], sizes = [33, 64], strides = [1, 1]} : vector<56x64xf32> to vector<33x64xf32>
    %181 = vector.extract_strided_slice %174 {offsets = [14, 0], sizes = [33, 64], strides = [1, 1]} : vector<56x64xf32> to vector<33x64xf32>
    %182 = vector.extract_strided_slice %174 {offsets = [15, 0], sizes = [33, 64], strides = [1, 1]} : vector<56x64xf32> to vector<33x64xf32>
    %183 = vector.extract_strided_slice %174 {offsets = [16, 0], sizes = [33, 64], strides = [1, 1]} : vector<56x64xf32> to vector<33x64xf32>
    %184 = tpu.concatenate %175, %176, %177, %178, %179, %180, %181, %182, %183 in 1 : vector<33x64xf32>, vector<33x64xf32>, vector<33x64xf32>, vector<33x64xf32>, vector<33x64xf32>, vector<33x64xf32>, vector<33x64xf32>, vector<33x64xf32>, vector<33x64xf32> -> vector<33x576xf32>
    %185 = arith.truncf %184 : vector<33x576xf32> to vector<33x576xbf16>
    %c0_49 = arith.constant 0 : index
    %c0_50 = arith.constant 0 : index
    %186 = vector.load %arg4[%c0_49, %c0_50] : memref<576x128xbf16, #tpu.memory_space<vmem>>, vector<576x128xbf16>
    %cst_51 = arith.constant dense<0.000000e+00> : vector<33x128xf32>
    %187 = tpu.matmul %185, %186, %cst_51 {dimension_numbers = #tpu.dot_dimension_numbers<[1], [0], [0], [1], [0, 0, 1, 1], [], []>} : vector<33x576xbf16>, vector<576x128xbf16>, vector<33x128xf32> -> vector<33x128xf32>
    %c0_52 = arith.constant 0 : index
    %c0_53 = arith.constant 0 : index
    %188 = vector.load %arg5[%c0_52, %c0_53] : memref<1x128xf32, #tpu.memory_space<vmem>>, vector<1x128xf32>
    %189 = vector.broadcast %188 : vector<1x128xf32> to vector<33x128xf32>
    %190 = arith.addf %187, %189 : vector<33x128xf32>
    %cst_54 = arith.constant 0.000000e+00 : f32
    %191 = vector.broadcast %cst_54 : f32 to vector<33x128xf32>
    %192 = arith.maximumf %190, %191 : vector<33x128xf32>
    %193 = vector.extract_strided_slice %192 {offsets = [0, 0], sizes = [5, 128], strides = [1, 1]} : vector<33x128xf32> to vector<5x128xf32>
    %194 = vector.extract_strided_slice %192 {offsets = [7, 0], sizes = [5, 128], strides = [1, 1]} : vector<33x128xf32> to vector<5x128xf32>
    %195 = arith.maximumf %193, %194 : vector<5x128xf32>
    %196 = vector.extract_strided_slice %195 {offsets = [0, 0], sizes = [1, 128], strides = [1, 1]} : vector<5x128xf32> to vector<1x128xf32>
    %197 = vector.extract_strided_slice %195 {offsets = [1, 0], sizes = [1, 128], strides = [1, 1]} : vector<5x128xf32> to vector<1x128xf32>
    %198 = arith.maximumf %196, %197 : vector<1x128xf32>
    %199 = vector.extract_strided_slice %195 {offsets = [2, 0], sizes = [1, 128], strides = [1, 1]} : vector<5x128xf32> to vector<1x128xf32>
    %200 = vector.extract_strided_slice %195 {offsets = [3, 0], sizes = [1, 128], strides = [1, 1]} : vector<5x128xf32> to vector<1x128xf32>
    %201 = arith.maximumf %199, %200 : vector<1x128xf32>
    %202 = vector.extract_strided_slice %192 {offsets = [14, 0], sizes = [5, 128], strides = [1, 1]} : vector<33x128xf32> to vector<5x128xf32>
    %203 = vector.extract_strided_slice %192 {offsets = [21, 0], sizes = [5, 128], strides = [1, 1]} : vector<33x128xf32> to vector<5x128xf32>
    %204 = arith.maximumf %202, %203 : vector<5x128xf32>
    %205 = vector.extract_strided_slice %204 {offsets = [0, 0], sizes = [1, 128], strides = [1, 1]} : vector<5x128xf32> to vector<1x128xf32>
    %206 = vector.extract_strided_slice %204 {offsets = [1, 0], sizes = [1, 128], strides = [1, 1]} : vector<5x128xf32> to vector<1x128xf32>
    %207 = arith.maximumf %205, %206 : vector<1x128xf32>
    %208 = vector.extract_strided_slice %204 {offsets = [2, 0], sizes = [1, 128], strides = [1, 1]} : vector<5x128xf32> to vector<1x128xf32>
    %209 = vector.extract_strided_slice %204 {offsets = [3, 0], sizes = [1, 128], strides = [1, 1]} : vector<5x128xf32> to vector<1x128xf32>
    %210 = arith.maximumf %208, %209 : vector<1x128xf32>
    %211 = tpu.concatenate %198, %201, %207, %210 in 1 : vector<1x128xf32>, vector<1x128xf32>, vector<1x128xf32>, vector<1x128xf32> -> vector<1x512xf32>
    %212 = tpu.concatenate %52, %105, %158, %211 in 0 : vector<1x512xf32>, vector<1x512xf32>, vector<1x512xf32>, vector<1x512xf32> -> vector<4x512xf32>
    %213 = arith.truncf %212 : vector<4x512xf32> to vector<4x512xbf16>
    %c0_55 = arith.constant 0 : index
    %c0_56 = arith.constant 0 : index
    %214 = vector.load %arg6[%c0_55, %c0_56] : memref<512x512xbf16, #tpu.memory_space<vmem>>, vector<512x512xbf16>
    %cst_57 = arith.constant dense<0.000000e+00> : vector<4x512xf32>
    %215 = tpu.matmul %213, %214, %cst_57 {dimension_numbers = #tpu.dot_dimension_numbers<[1], [0], [0], [1], [0, 0, 1, 1], [], []>} : vector<4x512xbf16>, vector<512x512xbf16>, vector<4x512xf32> -> vector<4x512xf32>
    %c0_58 = arith.constant 0 : index
    %c0_59 = arith.constant 0 : index
    %216 = vector.load %arg7[%c0_58, %c0_59] : memref<1x512xf32, #tpu.memory_space<vmem>>, vector<1x512xf32>
    %217 = vector.broadcast %216 : vector<1x512xf32> to vector<4x512xf32>
    %218 = arith.addf %215, %217 : vector<4x512xf32>
    %cst_60 = arith.constant 0.000000e+00 : f32
    %219 = vector.broadcast %cst_60 : f32 to vector<4x512xf32>
    %220 = arith.maximumf %218, %219 : vector<4x512xf32>
    %221 = arith.truncf %220 : vector<4x512xf32> to vector<4x512xbf16>
    %c0_61 = arith.constant 0 : index
    %c0_62 = arith.constant 0 : index
    %222 = vector.load %arg8[%c0_61, %c0_62] : memref<512x512xbf16, #tpu.memory_space<vmem>>, vector<512x512xbf16>
    %cst_63 = arith.constant dense<0.000000e+00> : vector<4x512xf32>
    %223 = tpu.matmul %221, %222, %cst_63 {dimension_numbers = #tpu.dot_dimension_numbers<[1], [0], [0], [1], [0, 0, 1, 1], [], []>} : vector<4x512xbf16>, vector<512x512xbf16>, vector<4x512xf32> -> vector<4x512xf32>
    %c0_64 = arith.constant 0 : index
    %c0_65 = arith.constant 0 : index
    %224 = vector.load %arg9[%c0_64, %c0_65] : memref<1x512xf32, #tpu.memory_space<vmem>>, vector<1x512xf32>
    %225 = vector.broadcast %224 : vector<1x512xf32> to vector<4x512xf32>
    %226 = arith.addf %223, %225 : vector<4x512xf32>
    %cst_66 = arith.constant 0.000000e+00 : f32
    %227 = vector.broadcast %cst_66 : f32 to vector<4x512xf32>
    %228 = arith.maximumf %226, %227 : vector<4x512xf32>
    %229 = arith.truncf %228 : vector<4x512xf32> to vector<4x512xbf16>
    %c0_67 = arith.constant 0 : index
    %c0_68 = arith.constant 0 : index
    %230 = vector.load %arg10[%c0_67, %c0_68] : memref<512x128xbf16, #tpu.memory_space<vmem>>, vector<512x128xbf16>
    %cst_69 = arith.constant dense<0.000000e+00> : vector<4x128xf32>
    %231 = tpu.matmul %229, %230, %cst_69 {dimension_numbers = #tpu.dot_dimension_numbers<[1], [0], [0], [1], [0, 0, 1, 1], [], []>} : vector<4x512xbf16>, vector<512x128xbf16>, vector<4x128xf32> -> vector<4x128xf32>
    %c0_70 = arith.constant 0 : index
    %c0_71 = arith.constant 0 : index
    %232 = vector.load %arg11[%c0_70, %c0_71] : memref<1x128xf32, #tpu.memory_space<vmem>>, vector<1x128xf32>
    %233 = vector.broadcast %232 : vector<1x128xf32> to vector<4x128xf32>
    %234 = arith.addf %231, %233 : vector<4x128xf32>
    %235 = tpu.iota {dimensions = array<i32: 1>} : vector<4x128xi32>
    %c10_i32 = arith.constant 10 : i32
    %236 = vector.broadcast %c10_i32 : i32 to vector<4x128xi32>
    %237 = arith.cmpi sge, %235, %236 : vector<4x128xi32>
    %c18_i32 = arith.constant 18 : i32
    %238 = vector.broadcast %c18_i32 : i32 to vector<4x128xi32>
    %239 = arith.cmpi slt, %235, %238 : vector<4x128xi32>
    %240 = arith.andi %237, %239 : vector<4x128xi1>
    %241 = arith.mulf %234, %234 : vector<4x128xf32>
    %cst_72 = arith.constant 0.000000e+00 : f32
    %242 = vector.broadcast %cst_72 : f32 to vector<4x128xf32>
    %243 = arith.select %240, %241, %242 : vector<4x128xi1>, vector<4x128xf32>
    %cst_73 = arith.constant dense<0.000000e+00> : vector<4xf32>
    %244 = vector.multi_reduction <add>, %243, %cst_73 [1] : vector<4x128xf32> to vector<4xf32>
    %245 = vector.shape_cast %244 : vector<4xf32> to vector<4x1xf32>
    %cst_74 = arith.constant 1.000000e-24 : f32
    %246 = vector.broadcast %cst_74 : f32 to vector<4x1xf32>
    %247 = arith.maximumf %245, %246 : vector<4x1xf32>
    %248 = math.rsqrt %247 : vector<4x1xf32>
    %cst_75 = arith.constant 1.000000e+00 : f32
    %249 = vector.shape_cast %248 : vector<4x1xf32> to vector<4x1xf32>
    %250 = vector.broadcast %249 : vector<4x1xf32> to vector<4x128xf32>
    %251 = vector.broadcast %cst_75 : f32 to vector<4x128xf32>
    %252 = arith.select %240, %250, %251 : vector<4x128xi1>, vector<4x128xf32>
    %253 = arith.mulf %234, %252 : vector<4x128xf32>
    %c0_76 = arith.constant 0 : index
    %c0_77 = arith.constant 0 : index
    %c0_78 = arith.constant 0 : index
    %254 = vector.load %arg12[%c0_76, %c0_77, %c0_78] : memref<1x4x128xf32, #tpu.memory_space<vmem>>, vector<1x4x128xf32>
    %255 = vector.shape_cast %254 : vector<1x4x128xf32> to vector<4x128xf32>
    %256 = vector.shape_cast %253 : vector<4x128xf32> to vector<1x4x128xf32>
    tpu.vector_store %arg12[%c0_76, %c0_77, %c0_78], %256 {strides = array<i32>} : memref<1x4x128xf32, #tpu.memory_space<vmem>>, vector<1x4x128xf32>,
    return
  }
  func.func @transform_0(%arg0: i32) -> (i32, i32, i32) {
    %c0_i32 = arith.constant 0 : i32
    %c0_i32_0 = arith.constant 0 : i32
    %c0_i32_1 = arith.constant 0 : i32
    return %arg0, %c0_i32, %c0_i32_0 : i32, i32, i32
  }
  func.func @transform_1(%arg0: i32) -> (i32, i32) {
    %c0_i32 = arith.constant 0 : i32
    %c0_i32_0 = arith.constant 0 : i32
    %c0_i32_1 = arith.constant 0 : i32
    return %c0_i32, %c0_i32_0 : i32, i32
  }
  func.func @transform_2(%arg0: i32) -> (i32, i32) {
    %c0_i32 = arith.constant 0 : i32
    %c0_i32_0 = arith.constant 0 : i32
    %c0_i32_1 = arith.constant 0 : i32
    return %c0_i32, %c0_i32_0 : i32, i32
  }
  func.func @transform_3(%arg0: i32) -> (i32, i32) {
    %c0_i32 = arith.constant 0 : i32
    %c0_i32_0 = arith.constant 0 : i32
    %c0_i32_1 = arith.constant 0 : i32
    return %c0_i32, %c0_i32_0 : i32, i32
  }
  func.func @transform_4(%arg0: i32) -> (i32, i32) {
    %c0_i32 = arith.constant 0 : i32
    %c0_i32_0 = arith.constant 0 : i32
    %c0_i32_1 = arith.constant 0 : i32
    return %c0_i32, %c0_i32_0 : i32, i32
  }
  func.func @transform_5(%arg0: i32) -> (i32, i32) {
    %c0_i32 = arith.constant 0 : i32
    %c0_i32_0 = arith.constant 0 : i32
    %c0_i32_1 = arith.constant 0 : i32
    return %c0_i32, %c0_i32_0 : i32, i32
  }
  func.func @transform_6(%arg0: i32) -> (i32, i32) {
    %c0_i32 = arith.constant 0 : i32
    %c0_i32_0 = arith.constant 0 : i32
    %c0_i32_1 = arith.constant 0 : i32
    return %c0_i32, %c0_i32_0 : i32, i32
  }
  func.func @transform_7(%arg0: i32) -> (i32, i32) {
    %c0_i32 = arith.constant 0 : i32
    %c0_i32_0 = arith.constant 0 : i32
    %c0_i32_1 = arith.constant 0 : i32
    return %c0_i32, %c0_i32_0 : i32, i32
  }
  func.func @transform_8(%arg0: i32) -> (i32, i32) {
    %c0_i32 = arith.constant 0 : i32
    %c0_i32_0 = arith.constant 0 : i32
    %c0_i32_1 = arith.constant 0 : i32
    return %c0_i32, %c0_i32_0 : i32, i32
  }
  func.func @transform_9(%arg0: i32) -> (i32, i32) {
    %c0_i32 = arith.constant 0 : i32
    %c0_i32_0 = arith.constant 0 : i32
    %c0_i32_1 = arith.constant 0 : i32
    return %c0_i32, %c0_i32_0 : i32, i32
  }
  func.func @transform_10(%arg0: i32) -> (i32, i32) {
    %c0_i32 = arith.constant 0 : i32
    %c0_i32_0 = arith.constant 0 : i32
    %c0_i32_1 = arith.constant 0 : i32
    return %c0_i32, %c0_i32_0 : i32, i32
  }
  func.func @transform_11(%arg0: i32) -> (i32, i32, i32) {
    %c0_i32 = arith.constant 0 : i32
    %c0_i32_0 = arith.constant 0 : i32
    %c0_i32_1 = arith.constant 0 : i32
    return %arg0, %c0_i32, %c0_i32_0 : i32, i32, i32
  }
}

</mosaic_0001>

<bundles_post_ra>
// kernel: discriminator_forward.1
= control target key start
LH: loop header
LB: loop body
LE: loop exit
PB: predicated region body
PF: predicated region fallthrough
CT: control target
= control target key end

     0   :  { %s10304_s0 = inlined_call_operand.vmem [shape: bf16[8,224,36], index: 0, kind: input, shape index: {}]   ;;  %s10305_s1 = inlined_call_operand.vmem [shape: bf16[36,64], index: 1, kind: input, shape index: {}]   ;;  %s10306_s2 = inlined_call_operand.vmem [shape: f32[1,64], index: 2, kind: input, shape index: {}]   ;;  %s10307_s3 = inlined_call_operand.vmem [shape: bf16[576,128], index: 3, kind: input, shape index: {}]   ;;  %s10308_s4 = inlined_call_operand.vmem [shape: f32[1,128], index: 4, kind: input, shape index: {}]   ;;  %s10309_s5 = inlined_call_operand.vmem [shape: bf16[512,512], index: 5, kind: input, shape index: {}]   ;;  %s10310_s6 = inlined_call_operand.vmem [shape: f32[1,512], index: 6, kind: input, shape index: {}]   ;;  %s10311_s7 = inlined_call_operand.vmem [shape: bf16[512,512], index: 7, kind: input, shape index: {}]   ;;  %s10312_s8 = inlined_call_operand.vmem [shape: f32[1,512], index: 8, kind: input, shape index: {}]   ;;  %s10313_s9 = inlined_call_operand.vmem [shape: bf16[512,128], index: 9, kind: input, shape index: {}]   ;;  %s10314_s10 = inlined_call_operand.vmem [shape: f32[1,128], index: 10, kind: input, shape index: {}]   ;;  %s10315_s11 = inlined_call_operand.hbm [shape: f32[2,4,128], index: 11, kind: output, shape index: {}]  }
   0x1   :  { %10318 = sst [smem:[#allocation5_spill]] %s10304_s0 }
   0x2   :  { %16 = vsyncpa [#allocation3], 0 }
   0x3   :  { %18 = vsyncpa [#allocation3 + $0x1], 0  ;;  %s7902_s17 = smov 0   ;;  %s7904_s18 = smov 0  }
   0x4   :  { %s7906_s19 = smov 0   ;;  %s7908_s20 = smov 0  }
   0x5 LB: > { %s7923_s21 = sadd.s32 4294967295, %s7836_s20   ;;  %s5823_s22 = sadd.s32 4294967294, %s7836_s20   ;;  %s7836_s20 = sphi %s7908_s20, %s10328_s20   ;;  %s7832_s19 = sphi %s7906_s19, %s10327_s19   ;;  %s7828_s18 = sphi %s7904_s18, %s10326_s18   ;;  %s7824_s17 = sphi %s7902_s17, %s10325_s17  }
   0x6   : > { %s7927_s23 = sadd.s32 1, %s7836_s20   ;;  %s267_s24 = sadd.s32 1, %s7832_s19 }
   0x7   : > { %s264_s25 = ssub.s32 %s7836_s20, %s7927_s23  ;;  %p277_p0 = scmp.ne.s32.totalorder %s7832_s19, %s7828_s18 }
   0x8   : > { %p265_p1 = scmp.eq.s32.totalorder %s264_s25, 0  ;;  %p278_p2 = scmp.eq.s32.totalorder %s7923_s21, 1 }
   0x9   : > { %p283_p3 = scmp.ne.s32.totalorder %s7828_s18, %s7824_s17  ;;  %p284_p4 = scmp.eq.s32.totalorder %s5823_s22, 1 }
   0xa   : > { %s7938_s26 = scalar_select %p265_p1, %s7832_s19, %s267_s24  }
   0xb   : > { %p7940_p5 = por %p278_p2, %p277_p0  ;;  %p7944_p6 = por %p284_p4, %p283_p3 }
   0xc   : > { %p5826_p7 = scmp.ge.s32.totalorder %s7836_s20, 1  ;;  %p342_p8 = scmp.lt.s32.totalorder %s7836_s20, 3 }
   0xe   : > { %p343_p9 = pnand %p5826_p7, %p342_p8 }
   0xf   : > { %v7217_v0 = vld [vmem:[%s10305_s1] sm:$0xff] (!%p343_p9)   ;;  %vm559_vm0 = vcmask (!%p343_p9), 1041408   ;;  %v7218_v1 = vld [vmem:[%s10305_s1 + $0x8] sm:$0xff] (!%p343_p9)   ;;  %s5828_s14 = sshll.u32 (!%p343_p9), %s7923_s21, 2  ;;  %vm516_vm1 = vcmask (!%p343_p9), 293888   ;;  %s10321_s0 = sld [smem:[#allocation5_spill]] (!%p343_p9) }
  0x10   : > { %346 = sbr.rel (%p343_p9) target bundleno = 2989 (0xbad), region = 64  ;;  %6790 = vmatprep.subr.bf16.mxu0 (!%p343_p9), %v7217_v0  ;;  %v7219_v2 = vld [vmem:[%s10305_s1 + $0x10] ss:$0 sps:$4 sm:$0x33] (!%p343_p9)   ;;  %p384_p10 = scmp.lt.s32.totalorder (!%p343_p9), %s5828_s14, 7  ;;  %v8001_v18 = vld [vmem:[%s10307_s3 + $0x100] sm:$0xff] (!%p343_p9)  }
  0x11   : > { %6791 = vmatpush3.bf16.msra.mxu0 (!%p343_p9), %v7217_v0  ;;  %v7961_v3 = vsel (!%p343_p9), %vm559_vm0, %v7219_v2, 0  ;;  %v7838_v19 = vmov (!%p343_p9), 0.0   ;;  %v8009_v20 = vld [vmem:[%s10307_s3 + $0x108] sm:$0xff] (!%p343_p9)   ;;  %v8016_v21 = vld [vmem:[%s10307_s3 + $0x110] sm:$0xff] (!%p343_p9)   ;;  %v8023_v22 = vld [vmem:[%s10307_s3 + $0x118] sm:$0xff] (!%p343_p9)   ;;  %vm7839_vm2 = vmmov (!%p343_p9), 0  }
  0x12   : > { %6792 = vmatprep.subr.bf16.mxu0 (!%p343_p9), %v7218_v1  ;;  %v8031_v23 = vld [vmem:[%s10307_s3 + $0x40] sm:$0xff] (!%p343_p9)   ;;  %v8041_v25 = vld [vmem:[%s10307_s3 + $0x48] sm:$0xff] (!%p343_p9)   ;;  %v8054_v27 = vld [vmem:[%s10307_s3 + $0x50] sm:$0xff] (!%p343_p9)   ;;  %vm802_vm3 = vcmask (!%p343_p9), 1040384   ;;  %vm762_vm4 = vcmask (!%p343_p9), 1046528   ;;  %s10316_s25 = smov (!%p343_p9), 64  }
  0x13   : > { %v8036_v24 = vld [vmem:[%s10307_s3] sm:$0xff] (!%p343_p9)   ;;  %6395 = vmatprep.subr.bf16.mxu1 (!%p343_p9), %v8031_v23  ;;  %v8049_v26 = vld [vmem:[%s10307_s3 + $0x8] sm:$0xff] (!%p343_p9)   ;;  %v8060_v28 = vld [vmem:[%s10307_s3 + $0x10] sm:$0xff] (!%p343_p9)   ;;  %vm858_vm5 = vcmask (!%p343_p9), 523264   ;;  %vm787_vm6 = vcmask (!%p343_p9), 1045504   ;;  %s10322_s16 = smov (!%p343_p9), 64  }
  0x14   : > { %6396 = vmatpush3.bf16.msra.mxu1 (!%p343_p9), %v8036_v24  ;;  %v8067_v29 = vld [vmem:[%s10307_s3 + $0x58] sm:$0xff] (!%p343_p9)   ;;  %v8079_v31 = vld [vmem:[%s10307_s3 + $0x60] sm:$0xff] (!%p343_p9)   ;;  %v8091_v33 = vld [vmem:[%s10307_s3 + $0x68] sm:$0xff] (!%p343_p9)   ;;  %vm3458_vm7 = vcmask (!%p343_p9), 1042432   ;;  %vm5741_vm11 = vcmask (!%p343_p9), 1043456   ;;  %s6375_s24 = sshll.u32 (!%p343_p9), %s7923_s21, 6 }
  0x15   : > { %6793 = vmatpush3.bf16.msra.mxu0 (!%p343_p9), %v7218_v1  ;;  %6397 = vmatprep.subr.bf16.mxu1 (!%p343_p9), %v8041_v25  ;;  %v8073_v30 = vld [vmem:[%s10307_s3 + $0x18] sm:$0xff] (!%p343_p9)   ;;  %v8085_v32 = vld [vmem:[%s10307_s3 + $0x20] sm:$0xff] (!%p343_p9)   ;;  %v8097_v34 = vld [vmem:[%s10307_s3 + $0x28] sm:$0xff] (!%p343_p9)   ;;  %s10262_s13 = scalar_lea.hbm (!%p343_p9), %s10315_s11, %s6375_s24 }
  0x16   : > { %7030 = vmatprep.subr.msk.bf16.mxu0 (!%p343_p9), %vm559_vm0, %v7219_v2  ;;  %v8104_v39 = vld [vmem:[%s10306_s2] ss:$0 sm:$0xff] (!%p343_p9) }
  0x17   : > { %s10330_s14 = smov (!%p384_p10, %s5828_s14), 7 }
  0x18   : > { %s7034_s22 = smul.u32 112, %s10330_s14  ;;  %6398 = vmatpush3.bf16.msra.mxu1 %v8049_v26 }
  0x19   : > { %6795 = vmatpush3.bf16.msra.mxu0 %v7961_v3  ;;  %6399 = vmatprep.subr.bf16.mxu1 %v8054_v27 }
  0x1a   : > { %s7967_s29 = scalar_lea.vmem %s10321_s0, %s7034_s22  ;;  %6824 = vmatprep.subr.bf16.mxu0 %v7838_v19 }
  0x1b   : > { %v7220_v4 = vld [vmem:[%s7967_s29] sm:$0xff]   ;;  %v7221_v5 = vld [vmem:[%s7967_s29 + $0x8] sm:$0xff]   ;;  %v7222_v6 = vld [vmem:[%s7967_s29 + $0x10] sm:$0xff]  }
  0x1c   : > { %6796 = vmatprep.mubr.msk.bf16.mxu0 %vm516_vm1, %v7220_v4  ;;  %v7223_v7 = vld [vmem:[%s7967_s29 + $0x18] sm:$0xff]   ;;  %v7224_v8 = vld [vmem:[%s7967_s29 + $0x20] sm:$0xff]   ;;  %v7225_v9 = vld [vmem:[%s7967_s29 + $0x28] sm:$0xff]   ;;  %6400 = vmatpush3.bf16.msra.mxu1 %v8060_v28 }
  0x1d   : > { %6797 = vmatmul.mubr.msk.bf16.vlgmr.msra.gmra.mrb[0].mxu0 %vm516_vm1, %v7221_v5  ;;  %v7226_v10 = vld [vmem:[%s7967_s29 + $0x30] sm:$0xff]   ;;  %v7227_v11 = vld [vmem:[%s7967_s29 + $0x38] sm:$0xff]   ;;  %v7228_v12 = vld [vmem:[%s7967_s29 + $0x40] sm:$0xff]   ;;  %6401 = vmatprep.subr.bf16.mxu1 %v8067_v29 }
  0x1e   : > { %6800 = vmatprep.mubr.msk.bf16.mxu0 %vm516_vm1, %v7222_v6  ;;  %v7229_v13 = vld [vmem:[%s7967_s29 + $0x48] sm:$0xff]   ;;  %v7230_v14 = vld [vmem:[%s7967_s29 + $0x50] sm:$0xff]   ;;  %v7231_v15 = vld [vmem:[%s7967_s29 + $0x58] sm:$0xff]   ;;  %6825 = vmatpush3.bf16.msra.mxu0 %v8001_v18 }
  0x1f   : > { %v7232_v16 = vld [vmem:[%s7967_s29 + $0x60] sm:$0xff]   ;;  %v7233_v17 = vld [vmem:[%s7967_s29 + $0x68] sm:$0xff]   ;;  %6826 = vmatprep.subr.bf16.mxu0 %v7838_v19 }
  0x20   : > { %6402 = vmatpush3.bf16.msra.mxu1 %v8073_v30 }
  0x21   : > { %6403 = vmatprep.subr.bf16.mxu1 %v8079_v31 }
  0x22   : > { %6827 = vmatpush3.bf16.msra.mxu0 %v8009_v20 }
  0x23   : > { %6828 = vmatprep.subr.bf16.mxu0 %v7838_v19 }
  0x24   : > { %6404 = vmatpush3.bf16.msra.mxu1 %v8085_v32 }
  0x25   : > { %6801 = vmatmul.mubr.msk.bf16.gmra.mrb[4].mxu0 %vm516_vm1, %v7223_v7  ;;  %6405 = vmatprep.subr.bf16.mxu1 %v8091_v33 }
  0x26   : > { %6804 = vmatprep.mubr.msk.bf16.mxu0 %vm516_vm1, %v7224_v8  ;;  %6829 = vmatpush3.bf16.msra.mxu0 %v8016_v21 }
  0x27   : > { %6830 = vmatprep.subr.bf16.mxu0 %v7838_v19 }
  0x28   : > { %6406 = vmatpush3.bf16.msra.mxu1 %v8097_v34 }
  0x2a   : > { %6831 = vmatpush3.bf16.msra.mxu0 %v8023_v22 }
  0x2b   : > { %6487 = vmatprep.subr.bf16.mxu0 %v8031_v23 }
  0x2d   : > { %6805 = vmatmul.mubr.msk.bf16.gmra.mrb[8].mxu0 %vm516_vm1, %v7225_v9 }
  0x2e   : > { %6808 = vmatprep.mubr.msk.bf16.mxu0 %vm516_vm1, %v7226_v10 }
  0x35   : > { %6809 = vmatmul.mubr.msk.bf16.gmra.mrb[12].mxu0 %vm516_vm1, %v7227_v11 }
  0x36   : > { %6812 = vmatprep.mubr.msk.bf16.mxu0 %vm516_vm1, %v7228_v12 }
  0x3d   : > { %6813 = vmatmul.mubr.msk.bf16.gmra.mrb[16].mxu0 %vm516_vm1, %v7229_v13 }
  0x3e   : > { %6816 = vmatprep.mubr.msk.bf16.mxu0 %vm516_vm1, %v7230_v14 }
  0x45   : > { %6817 = vmatmul.mubr.msk.bf16.gmra.mrb[20].mxu0 %vm516_vm1, %v7231_v15 }
  0x46   : > { %6820 = vmatprep.mubr.msk.bf16.mxu0 %vm516_vm1, %v7232_v16 }
  0x4d   : > { %6821 = vmatmul.mubr.msk.bf16.gmra.mrb[24].mxu0 %vm516_vm1, %v7233_v17 }
  0x4e   : > { %6832 = vmatprep.mubr.msk.bf16.mxu0 %vm7839_vm2, %v7838_v19 }
  0xf0   : > { %v6798_v35 = vpop.f32.mrb[0].mxu0 }
  0xf1   : > { %v597_v36 = vpop.f32.mrb[1].mxu0  ;;  %v606_v55 = vadd.f32 %v6798_v35, %v8104_v39 }
  0xf2   : > { %v6799_v37 = vpop.f32.mrb[2].mxu0  ;;  %v598_v41 = vadd.f32 %v8104_v39, %v597_v36 }
  0xf3   : > { %v600_v38 = vpop.f32.mrb[3].mxu0  ;;  %v609_v48 = vadd.f32 %v6799_v37, %v8104_v39  ;;  %v710_v5 = vmax.f32 %v606_v55, 0.0 }
  0xf4   : > { %v708_v46 = vmax.f32 %v598_v41, 0.0  ;;  %v601_v50 = vadd.f32 %v8104_v39, %v600_v38 }
  0xf5   : > { %v711_v58 = vmax.f32 %v609_v48, 0.0 }
  0xf6   : > { %v709_v62 = vmax.f32 %v601_v50, 0.0 }
  0xf8   : > { %v6802_v40 = vpop.f32.mrb[4].mxu0 }
  0xf9   : > { %v613_v42 = vpop.f32.mrb[5].mxu0  ;;  %v622_v13 = vadd.f32 %v6802_v40, %v8104_v39 }
  0xfa   : > { %v6803_v43 = vpop.f32.mrb[6].mxu0  ;;  %v614_v52 = vadd.f32 %v8104_v39, %v613_v42 }
  0xfb   : > { %v625_v44 = vadd.f32 %v6803_v43, %v8104_v39  ;;  %v616_v45 = vpop.f32.mrb[7].mxu0  ;;  %v714_v37 = vmax.f32 %v622_v13, 0.0 }
  0xfc   : > { %v712_v1 = vmax.f32 %v614_v52, 0.0  ;;  %v617_v9 = vadd.f32 %v8104_v39, %v616_v45 }
  0xfd   : > { %v715_v47 = vmax.f32 %v625_v44, 0.0 }
  0xfe   : > { %v713_v17 = vmax.f32 %v617_v9, 0.0 }
  0xff   : > { %v8109_v49 = vmax.f32 %v708_v46, %v715_v47 }
 0x100   : > { %v6806_v51 = vpop.f32.mrb[8].mxu0 }
 0x101   : > { %v638_v53 = vadd.f32 %v6806_v51, %v8104_v39  ;;  %v629_v54 = vpop.f32.mrb[9].mxu0 }
 0x102   : > { %v630_v56 = vadd.f32 %v8104_v39, %v629_v54  ;;  %v6807_v57 = vpop.f32.mrb[10].mxu0 }
 0x103   : > { %v718_v59 = vmax.f32 %v638_v53, 0.0  ;;  %v641_v60 = vadd.f32 %v6807_v57, %v8104_v39  ;;  %v632_v61 = vpop.f32.mrb[11].mxu0 }
 0x104   : > { %v716_v63 = vmax.f32 %v630_v56, 0.0  ;;  %v633_v0 = vadd.f32 %v8104_v39, %v632_v61  ;;  %v8145_v61 = vld [vmem:[%s10307_s3 + $0x30] sm:$0xff]  }
 0x105   : > { %v8118_v2 = vmax.f32 %v711_v58, %v718_v59  ;;  %v719_v4 = vmax.f32 %v641_v60, 0.0  ;;  %v8138_v58 = vld [vmem:[%s10307_s3 + $0x70] sm:$0xff]  }
 0x106   : > { %v737_v6 = vmax.f32 %v709_v62, %v716_v63  ;;  %v717_v7 = vmax.f32 %v633_v0, 0.0  ;;  %6407 = vmatprep.subr.bf16.mxu1 %v8138_v58 }
 0x107   : > { %v8120_v8 = vmax.f32 %v712_v1, %v719_v4  ;;  %6408 = vmatpush3.bf16.msra.mxu1 %v8145_v61 }
 0x108   : > { %v738_v10 = vmax.f32 %v710_v5, %v717_v7  ;;  %v6810_v11 = vpop.f32.mrb[12].mxu0 }
 0x109   : > { %v645_v12 = vpop.f32.mrb[13].mxu0  ;;  %v654_v52 = vadd.f32 %v6810_v11, %v8104_v39 }
 0x10a   : > { %v646_v14 = vadd.f32 %v8104_v39, %v645_v12  ;;  %v6811_v15 = vpop.f32.mrb[14].mxu0  ;;  %v8156_v12 = vld [vmem:[%s10307_s3 + $0x78] sm:$0xff]  }
 0x10b   : > { %v648_v16 = vpop.f32.mrb[15].mxu0  ;;  %v657_v40 = vadd.f32 %v6811_v15, %v8104_v39  ;;  %v722_v4 = vmax.f32 %v654_v52, 0.0  ;;  %6409 = vmatprep.subr.bf16.mxu1 %v8156_v12 }
 0x10c   : > { %v720_v35 = vmax.f32 %v646_v14, 0.0  ;;  %v649_v36 = vadd.f32 %v8104_v39, %v648_v16  ;;  %v8161_v16 = vld [vmem:[%s10307_s3 + $0x38] sm:$0xff]  }
 0x10d   : > { %v723_v54 = vmax.f32 %v657_v40, 0.0  ;;  %6410 = vmatpush3.bf16.msra.mxu1 %v8161_v16 }
 0x10e   : > { %v8126_v38 = vmax.f32 %v713_v17, %v720_v35  ;;  %v721_v41 = vmax.f32 %v649_v36, 0.0 }
 0x110   : > { %v8128_v42 = vmax.f32 %v714_v37, %v721_v41  ;;  %v6814_v43 = vpop.f32.mrb[16].mxu0 }
 0x111   : > { %v661_v44 = vpop.f32.mrb[17].mxu0  ;;  %v670_v59 = vadd.f32 %v6814_v43, %v8104_v39 }
 0x112   : > { %v6815_v45 = vpop.f32.mrb[18].mxu0  ;;  %v662_v48 = vadd.f32 %v8104_v39, %v661_v44 }
 0x113   : > { %v664_v46 = vpop.f32.mrb[19].mxu0  ;;  %v673_v63 = vadd.f32 %v6815_v45, %v8104_v39  ;;  %v726_v13 = vmax.f32 %v670_v59, 0.0 }
 0x114   : > { %v724_v62 = vmax.f32 %v662_v48, 0.0  ;;  %v665_v5 = vadd.f32 %v8104_v39, %v664_v46 }
 0x115   : > { %v727_v17 = vmax.f32 %v673_v63, 0.0 }
 0x116   : > { %v725_v41 = vmax.f32 %v665_v5, 0.0 }
 0x118   : > { %v6818_v47 = vpop.f32.mrb[20].mxu0 }
 0x119   : > { %v686_v50 = vadd.f32 %v6818_v47, %v8104_v39  ;;  %v677_v51 = vpop.f32.mrb[21].mxu0 }
 0x11a   : > { %v6819_v53 = vpop.f32.mrb[22].mxu0 }
 0x11b   : > { %v730_v55 = vmax.f32 %v686_v50, 0.0  ;;  %v689_v56 = vadd.f32 %v6819_v53, %v8104_v39  ;;  %v680_v57 = vpop.f32.mrb[23].mxu0 }
 0x11c   : > { %v681_v60 = vadd.f32 %v8104_v39, %v680_v57 }
 0x11d   : > { %v744_v0 = vmax.f32 %v723_v54, %v730_v55  ;;  %v731_v1 = vmax.f32 %v689_v56, 0.0  ;;  %v8183_v54 = vld [vmem:[%s10307_s3 + $0xc0] sm:$0xff]  }
 0x11e   : > { %v729_v7 = vmax.f32 %v681_v60, 0.0  ;;  %6429 = vmatprep.subr.bf16.mxu1 %v8183_v54 }
 0x11f   : > { %v8151_v9 = vmax.f32 %v737_v6, %v744_v0  ;;  %v745_v11 = vmax.f32 %v724_v62, %v731_v1  ;;  %v678_v6 = vadd.f32 %v8104_v39, %v677_v51 }
 0x120   : > { %v743_v14 = vmax.f32 %v722_v4, %v729_v7  ;;  %v6822_v15 = vpop.f32.mrb[24].mxu0 }
 0x121   : > { %v8164_v35 = vmax.f32 %v738_v10, %v745_v11  ;;  %v702_v36 = vadd.f32 %v6822_v15, %v8104_v39  ;;  %v693_v37 = vpop.f32.mrb[25].mxu0  ;;  %v804_v46 = vrot.slane %v8151_v9, 7  ;;  %v728_v55 = vmax.f32 %v678_v6, 0.0 }
 0x122   : > { %v8169_v43 = vmax.f32 %v8109_v49, %v743_v14  ;;  %v694_v44 = vadd.f32 %v8104_v39, %v693_v37  ;;  %v6823_v45 = vpop.f32.mrb[26].mxu0  ;;  %v764_v0 = vrot.slane %v8151_v9, 1 }
 0x123   : > { %v734_v40 = vmax.f32 %v702_v36, 0.0  ;;  %v705_v10 = vadd.f32 %v6823_v45, %v8104_v39  ;;  %v696_v47 = vpop.f32.mrb[27].mxu0  ;;  %v806_v48 = vrot.slane %v8164_v35, 7  ;;  %v766_v50 = vrot.slane %v8164_v35, 1 }
 0x124   : > { %v732_v51 = vmax.f32 %v694_v44, 0.0  ;;  %v697_v52 = vadd.f32 %v8104_v39, %v696_v47  ;;  %v803_v49 = vrot.slane %v8169_v43, 7  ;;  %v763_v53 = vrot.slane %v8169_v43, 1 }
 0x125   : > { %v748_v56 = vmax.f32 %v727_v17, %v734_v40  ;;  %v735_v57 = vmax.f32 %v705_v10, 0.0  ;;  %v807_v59 = vsel %vm802_vm3, %v804_v46, %v806_v48  ;;  %v767_v15 = vsel %vm762_vm4, %v764_v0, %v766_v50 }
 0x126   : > { %v746_v60 = vmax.f32 %v725_v41, %v732_v51  ;;  %v733_v62 = vmax.f32 %v697_v52, 0.0  ;;  %v805_v63 = vsel %vm802_vm3, %v803_v49, %v804_v46  ;;  %v765_v14 = vsel %vm762_vm4, %v763_v53, %v764_v0 }
 0x127   : > { %v8190_v1 = vmax.f32 %v8126_v38, %v748_v56  ;;  %v749_v4 = vmax.f32 %v728_v55, %v735_v57  ;;  %v7077_v5 = vpack.i.bf16 %v807_v59, %v805_v63  ;;  %v7082_v36 = vpack.i.bf16 %v767_v15, %v765_v14  ;;  %v8279_v15 = vld [vmem:[%s10307_s3 + $0xc8] sm:$0xff]  }
 0x128   : > { %v8193_v7 = vmax.f32 %v8118_v2, %v746_v60  ;;  %v747_v11 = vmax.f32 %v726_v13, %v733_v62 }
 0x129   : > { %v756_v17 = vmax.f32 %v8128_v42, %v749_v4  ;;  %7078 = vrot.lane.b32.xlu0 %v7077_v5, %s10316_s25  ;;  %v828_v46 = vrot.slane %v8190_v1, 1  ;;  %v850_v40 = vrot.slane %v8190_v1, 7  ;;  %v8271_v4 = vld [vmem:[%s10307_s3 + $0x80] sm:$0xff]  }
 0x12a   : > { %v8200_v6 = vmax.f32 %v8120_v8, %v747_v11  ;;  %v880_v38 = vpack.c.bf16 %v8193_v7, %v8164_v35  ;;  %v808_v2 = vrot.slane %v8193_v7, 7  ;;  %v768_v44 = vrot.slane %v8193_v7, 1 }
 0x12b   : > { %v7107_v51 = vpack.i.bf16 %v828_v46, %v850_v40  ;;  %v793_v60 = vrot.slane %v8193_v7, 2 }
 0x12c   : > { %6833 = vmatmul.mubr.msk.bf16.vlgmr.msra.gmra.mrb[28].mxu0 %vm858_vm5, %v880_v38  ;;  %v810_v13 = vrot.slane %v8200_v6, 7  ;;  %v770_v37 = vrot.slane %v8200_v6, 1  ;;  %v809_v8 = vsel %vm802_vm3, %v806_v48, %v808_v2  ;;  %v885_v47 = vpack.c.bf16 %v8190_v1, %v8200_v6 }
 0x12d   : > { %7083 = vrot.lane.b32.xlu0 %v7082_v36, %s10316_s25  ;;  %6836 = vmatprep.mubr.msk.bf16.mxu0 %vm7839_vm2, %v7838_v19  ;;  %v769_v48 = vsel %vm762_vm4, %v766_v50, %v768_v44  ;;  %v795_v62 = vrot.slane %v8200_v6, 2 }
 0x12e   : > { %v811_v42 = vsel %vm802_vm3, %v808_v2, %v810_v13  ;;  %v7097_v41 = vpack.i.bf16 %v770_v37, %v810_v13  ;;  %6488 = vmatpush3.bf16.msra.mxu0 %v8036_v24  ;;  %v771_v10 = vsel %vm762_vm4, %v768_v44, %v770_v37  ;;  %v851_v52 = vsel %vm802_vm3, %v810_v13, %v850_v40  ;;  %v8299_v44 = vld [vmem:[%s10307_s3 + $0xd0] sm:$0xff]  }
 0x12f   : > { %v7087_v45 = vpack.i.bf16 %v811_v42, %v809_v8  ;;  %6489 = vmatprep.subr.bf16.mxu0 %v8041_v25  ;;  %v7092_v24 = vpack.i.bf16 %v771_v10, %v769_v48  ;;  %v829_v25 = vsel %vm762_vm4, %v770_v37, %v828_v46  ;;  %v796_v36 = vsel %vm787_vm6, %v793_v60, %v795_v62  ;;  %v8293_v8 = vld [vmem:[%s10307_s3 + $0x88] sm:$0xff]   ;;  %v8312_v48 = vld [vmem:[%s10307_s3 + $0x90] sm:$0xff]  }
 0x131   : > { %7088 = vrot.lane.b32.xlu1 %v7087_v45, %s10316_s25  ;;  %7098 = vrot.lane.b32.xlu0 %v7097_v41, %s10316_s25 }
 0x132   : > { %6490 = vmatpush3.bf16.msra.mxu0 %v8049_v26  ;;  %v7102_v26 = vpack.i.bf16 %v829_v25, %v851_v52 }
 0x133   : > { %6491 = vmatprep.subr.bf16.mxu0 %v8054_v27  ;;  %v890_v27 = vpack.c.bf16 %v756_v17, %v756_v17 }
 0x134   : > { %6837 = vmatmul.mubr.msk.bf16.gmra.mrb[32].mxu0 %vm858_vm5, %v885_v47 }
 0x135   : > { %7093 = vrot.lane.b32.xlu1 %v7092_v24, %s10316_s25  ;;  %7108 = vrot.lane.b32.xlu0 %v7107_v51, %s10316_s25  ;;  %v8319_v51 = vld [vmem:[%s10307_s3 + $0xd8] sm:$0xff]  }
 0x136   : > { %6840 = vmatprep.mubr.msk.bf16.mxu0 %vm7839_vm2, %v7838_v19  ;;  %6492 = vmatpush3.bf16.msra.mxu0 %v8060_v28  ;;  %v788_v28 = vrot.slane %v8169_v43, 2 }
 0x137   : > { %6493 = vmatprep.subr.bf16.mxu0 %v8067_v29  ;;  %v791_v29 = vrot.slane %v8164_v35, 2 }
 0x139   : > { %7103 = vrot.lane.b32.xlu1 %v7102_v26, %s10316_s25  ;;  %v794_v2 = vsel %vm787_vm6, %v791_v29, %v793_v60  ;;  %v839_v26 = vrot.slane %v8193_v7, 6  ;;  %v841_v60 = vrot.slane %v8200_v6, 6 }
 0x13a   : > { %6494 = vmatpush3.bf16.msra.mxu0 %v8073_v30 }
 0x13b   : > { %6495 = vmatprep.subr.bf16.mxu0 %v8079_v31  ;;  %v789_v31 = vrot.slane %v8151_v9, 2 }
 0x13c   : > { %6841 = vmatmul.mubr.msk.bf16.gmra.mrb[36].mxu0 %vm858_vm5, %v890_v27  ;;  %v8326_v27 = vld [vmem:[%s10307_s3 + $0x98] sm:$0xff]  }
 0x13d   : > { %v792_v50 = vsel %vm787_vm6, %v789_v31, %v791_v29  ;;  %v8333_v29 = vld [vmem:[%s10307_s3 + $0xe0] sm:$0xff]  }
 0x13e   : > { %6496 = vmatpush3.bf16.msra.mxu0 %v8085_v32 }
 0x13f   : > { %6497 = vmatprep.subr.bf16.mxu0 %v8091_v33 }
 0x142   : > { %6498 = vmatpush3.bf16.msra.mxu0 %v8097_v34  ;;  %v790_v34 = vsel %vm787_vm6, %v788_v28, %v789_v31  ;;  %v837_v28 = vrot.slane %v8164_v35, 6  ;;  %v836_v31 = vrot.slane %v8151_v9, 6 }
 0x143   : > { %6499 = vmatprep.subr.bf16.mxu0 %v8138_v58 }
 0x146   : > { %6500 = vmatpush3.bf16.msra.mxu0 %v8145_v61 }
 0x147   : > { %6501 = vmatprep.subr.bf16.mxu0 %v8156_v12 }
 0x14a   : > { %6502 = vmatpush3.bf16.msra.mxu0 %v8161_v16 }
 0x14b   : > { %6521 = vmatprep.subr.bf16.mxu0 %v8183_v54 }
 0x19b   : > { %v8249_v30 = vpop.permute.xlu0 %7078 }
 0x19c   : > { %v7081_v32 = vunpack.i.h.bf16 %v8249_v30  ;;  %v7080_v33 = vunpack.i.l.bf16 %v8249_v30  ;;  %v8366_v30 = vld [vmem:[%s10307_s3 + $0xf0] sm:$0xff]  }
 0x19e   : > { %v864_v49 = vsel %vm858_vm5, %v790_v34, %v7080_v33  ;;  %v865_v53 = vsel %vm858_vm5, %v792_v50, %v7081_v32  ;;  %v840_v33 = vsel %vm559_vm0, %v837_v28, %v839_v26  ;;  %v838_v50 = vsel %vm559_vm0, %v836_v31, %v837_v28  ;;  %v7274_v28 = vld [vmem:[%s7967_s29 + $0x90] sm:$0xff]  }
 0x19f   : > { %v7084_v55 = vpop.permute.xlu0 %7083  ;;  %v877_v56 = vpack.c.bf16 %v865_v53, %v864_v49  ;;  %v8354_v53 = vld [vmem:[%s10307_s3 + $0xe8] sm:$0xff]   ;;  %v7278_v31 = vld [vmem:[%s7967_s29 + $0xb0] sm:$0xff]  }
 0x1a0   : > { %v7086_v57 = vunpack.i.h.bf16 %v7084_v55  ;;  %v7085_v59 = vunpack.i.l.bf16 %v7084_v55 }
 0x1a1   : > { %1227 = vmatprep.mubr.bf16.mxu1 %v877_v56  ;;  %v8360_v56 = vld [vmem:[%s10307_s3 + $0xa8] sm:$0xff]  }
 0x1a2   : > { %v859_v63 = vsel %vm858_vm5, %v8169_v43, %v7085_v59  ;;  %v8266_v0 = vsel %vm858_vm5, %v8151_v9, %v7086_v57  ;;  %v871_v9 = vsel %vm858_vm5, %v838_v50, %v7081_v32  ;;  %v8372_v57 = vld [vmem:[%s10307_s3 + $0xb0] sm:$0xff]   ;;  %v8378_v59 = vld [vmem:[%s10307_s3 + $0xf8] sm:$0xff]   ;;  %v7281_v50 = vld [vmem:[%s7967_s29 + $0xc8] sm:$0xff]  }
 0x1a3   : > { %v8273_v5 = vpop.permute.xlu1 %7088  ;;  %v7099_v11 = vpop.permute.xlu0 %7098  ;;  %v876_v14 = vpack.c.bf16 %v8266_v0, %v859_v63  ;;  %v8385_v63 = vld [vmem:[%s10307_s3 + $0xb8] sm:$0xff]  }
 0x1a4   : > { %v7091_v43 = vunpack.i.h.bf16 %v8273_v5  ;;  %v7090_v17 = vunpack.i.l.bf16 %v8273_v5  ;;  %v7100_v38 = vunpack.i.l.bf16 %v7099_v11  ;;  %v7101_v25 = vunpack.i.h.bf16 %v7099_v11 }
 0x1a5   : > { %1228 = vmatmul.mubr.bf16.vlgmr.msra.gmra.mrb[0].mxu1 %v876_v14  ;;  %v843_v11 = vrot.slane %v8190_v1, 6 }
 0x1a6   : > { %6430 = vmatpush3.bf16.msra.mxu1 %v8271_v4  ;;  %v866_v13 = vsel %vm858_vm5, %v794_v2, %v7090_v17  ;;  %v867_v37 = vsel %vm858_vm5, %v796_v36, %v7091_v43  ;;  %v868_v40 = vsel %vm858_vm5, %v795_v62, %v7100_v38  ;;  %v872_v34 = vsel %vm858_vm5, %v840_v33, %v7090_v17  ;;  %v7280_v33 = vld [vmem:[%s7967_s29 + $0xc0] sm:$0xff]  }
 0x1a7   : > { %v7094_v42 = vpop.permute.xlu1 %7093  ;;  %6431 = vmatprep.subr.bf16.mxu1 %v8279_v15  ;;  %v882_v41 = vpack.c.bf16 %v867_v37, %v866_v13  ;;  %v887_v52 = vpack.c.bf16 %v868_v40, %v868_v40  ;;  %v879_v55 = vpack.c.bf16 %v872_v34, %v871_v9  ;;  %v844_v14 = vsel %vm559_vm0, %v841_v60, %v843_v11  ;;  %v7109_v38 = vpop.permute.xlu0 %7108  ;;  %v8397_v13 = vld [vmem:[%s10305_s1] sm:$0xff]   ;;  %v8418_v40 = vld [vmem:[%s10305_s1 + $0x10] ss:$0 sps:$4 sm:$0x33]  }
 0x1a8   : > { %v7096_v45 = vunpack.i.h.bf16 %v7094_v42  ;;  %v7095_v46 = vunpack.i.l.bf16 %v7094_v42  ;;  %v842_v2 = vsel %vm559_vm0, %v839_v26, %v841_v60  ;;  %v7272_v26 = vld [vmem:[%s7967_s29 + $0x80] sm:$0xff]   ;;  %v7282_v9 = vld [vmem:[%s7967_s29 + $0xd0] sm:$0xff]  }
 0x1a9   : > { %1235 = vmatprep.mubr.bf16.mxu1 %v882_v41  ;;  %v873_v37 = vsel %vm858_vm5, %v842_v2, %v7091_v43 }
 0x1aa   : > { %6432 = vmatpush3.bf16.msra.mxu1 %v8293_v8  ;;  %v861_v10 = vsel %vm858_vm5, %v8164_v35, %v7095_v46  ;;  %v8307_v47 = vsel %vm858_vm5, %v8193_v7, %v7096_v45  ;;  %v863_v7 = vsel %vm858_vm5, %v8200_v6, %v7101_v25  ;;  %v8344_v35 = vld [vmem:[%s10307_s3 + $0xa0] sm:$0xff]   ;;  %v7110_v45 = vunpack.i.l.bf16 %v7109_v38 }
 0x1ab   : > { %6433 = vmatprep.subr.bf16.mxu1 %v8299_v44  ;;  %v881_v24 = vpack.c.bf16 %v8307_v47, %v861_v10  ;;  %v886_v49 = vpack.c.bf16 %v863_v7, %v863_v7  ;;  %v7104_v32 = vpop.permute.xlu1 %7103  ;;  %v878_v36 = vpack.c.bf16 %v861_v10, %v8266_v0  ;;  %v8407_v0 = vld [vmem:[%s10305_s1 + $0x8] sm:$0xff]   ;;  %v7111_v10 = vunpack.i.h.bf16 %v7109_v38  ;;  %v7276_v7 = vld [vmem:[%s7967_s29 + $0xa0] sm:$0xff]  }
 0x1ac   : > { %v7105_v62 = vunpack.i.l.bf16 %v7104_v32  ;;  %v7106_v42 = vunpack.i.h.bf16 %v7104_v32  ;;  %v875_v43 = vsel %vm858_vm5, %v843_v11, %v7110_v45 }
 0x1ad   : > { %1236 = vmatmul.mubr.bf16.gmra.mrb[4].mxu1 %v881_v24  ;;  %v889_v24 = vpack.c.bf16 %v875_v43, %v875_v43 }
 0x1ae   : > { %6434 = vmatpush3.bf16.msra.mxu1 %v8312_v48  ;;  %1243 = vmatprep.mubr.bf16.mxu1 %v887_v52  ;;  %v874_v17 = vsel %vm858_vm5, %v844_v14, %v7105_v62  ;;  %v869_v5 = vsel %vm858_vm5, %v8200_v6, %v7106_v42  ;;  %v870_v6 = vsel %vm858_vm5, %v8190_v1, %v7111_v10  ;;  %v7271_v52 = vld [vmem:[%s7967_s29 + $0x78] sm:$0xff]   ;;  %v7273_v1 = vld [vmem:[%s7967_s29 + $0x88] sm:$0xff]  }
 0x1af   : > { %6435 = vmatprep.subr.bf16.mxu1 %v8319_v51  ;;  %v884_v41 = vpack.c.bf16 %v874_v17, %v873_v37  ;;  %v883_v46 = vpack.c.bf16 %v869_v5, %v8307_v47  ;;  %v7270_v47 = vld [vmem:[%s7967_s29 + $0x70] sm:$0xff]   ;;  %v888_v25 = vpack.c.bf16 %v870_v6, %v870_v6  ;;  %v7283_v62 = vld [vmem:[%s7967_s29 + $0xd8] sm:$0xff]  }
 0x1b2   : > { %6436 = vmatpush3.bf16.msra.mxu1 %v8326_v27 }
 0x1b3   : > { %6437 = vmatprep.subr.bf16.mxu1 %v8333_v29 }
 0x1b5   : > { %1244 = vmatmul.mubr.bf16.gmra.mrb[8].mxu1 %v886_v49 }
 0x1b6   : > { %6438 = vmatpush3.bf16.msra.mxu1 %v8344_v35  ;;  %1282 = vmatprep.mubr.bf16.mxu1 %v879_v55 }
 0x1b7   : > { %6439 = vmatprep.subr.bf16.mxu1 %v8354_v53 }
 0x1ba   : > { %6440 = vmatpush3.bf16.msra.mxu1 %v8360_v56 }
 0x1bb   : > { %6441 = vmatprep.subr.bf16.mxu1 %v8366_v30 }
 0x1be   : > { %6442 = vmatpush3.bf16.msra.mxu1 %v8372_v57 }
 0x1bf   : > { %6443 = vmatprep.subr.bf16.mxu1 %v8378_v59 }
 0x1c2   : > { %6444 = vmatpush3.bf16.msra.mxu1 %v8385_v63 }
 0x1c3   : > { %6844 = vmatprep.subr.bf16.mxu1 %v8397_v13 }
 0x1c5   : > { %1283 = vmatmul.mubr.bf16.vlgmr.msra.gmra.mrb[12].mxu1 %v878_v36 }
 0x1c6   : > { %1290 = vmatprep.mubr.bf16.mxu1 %v884_v41  ;;  %6845 = vmatpush3.bf16.msra.mxu1 %v8397_v13 }
 0x1c7   : > { %6846 = vmatprep.subr.bf16.mxu1 %v8407_v0 }
 0x1ca   : > { %6847 = vmatpush3.bf16.msra.mxu1 %v8407_v0 }
 0x1cb   : > { %7031 = vmatprep.subr.msk.bf16.mxu1 %vm559_vm0, %v8418_v40 }
 0x1cd   : > { %1291 = vmatmul.mubr.bf16.gmra.mrb[16].mxu1 %v883_v46 }
 0x1ce   : > { %1298 = vmatprep.mubr.bf16.mxu1 %v889_v24  ;;  %6849 = vmatpush3.bf16.msra.mxu1 %v7961_v3 }
 0x1cf   : > { %6878 = vmatprep.subr.bf16.mxu1 %v7838_v19 }
 0x1d5   : > { %1299 = vmatmul.mubr.bf16.gmra.mrb[20].mxu1 %v888_v25 }
 0x1d6   : > { %6850 = vmatprep.mubr.msk.bf16.mxu1 %vm516_vm1, %v7270_v47 }
 0x1dd   : > { %6851 = vmatmul.mubr.msk.bf16.vlgmr.msra.gmra.mrb[24].mxu1 %vm516_vm1, %v7271_v52 }
 0x1de   : > { %6854 = vmatprep.mubr.msk.bf16.mxu1 %vm516_vm1, %v7272_v26  ;;  %6879 = vmatpush3.bf16.msra.mxu1 %v8001_v18  ;;  %v7275_v18 = vld [vmem:[%s7967_s29 + $0x98] sm:$0xff]  }
 0x1df   : > { %6880 = vmatprep.subr.bf16.mxu1 %v7838_v19 }
 0x1e2   : > { %6881 = vmatpush3.bf16.msra.mxu1 %v8009_v20  ;;  %v7277_v20 = vld [vmem:[%s7967_s29 + $0xa8] sm:$0xff]  }
 0x1e3   : > { %6882 = vmatprep.subr.bf16.mxu1 %v7838_v19 }
 0x1e5   : > { %6855 = vmatmul.mubr.msk.bf16.gmra.mrb[28].mxu1 %vm516_vm1, %v7273_v1 }
 0x1e6   : > { %6858 = vmatprep.mubr.msk.bf16.mxu1 %vm516_vm1, %v7274_v28  ;;  %6883 = vmatpush3.bf16.msra.mxu1 %v8016_v21  ;;  %v7279_v21 = vld [vmem:[%s7967_s29 + $0xb8] sm:$0xff]   ;;  %v8467_v28 = vld [vmem:[%s10308_s4] ss:$0 sm:$0xff] }
 0x1e7   : > { %6884 = vmatprep.subr.bf16.mxu1 %v7838_v19 }
 0x1ea   : > { %6885 = vmatpush3.bf16.msra.mxu1 %v8023_v22 }
 0x1eb   : > { %6579 = vmatprep.subr.bf16.mxu1 %v8031_v23 }
 0x1ed   : > { %6859 = vmatmul.mubr.msk.bf16.gmra.mrb[32].mxu1 %vm516_vm1, %v7275_v18 }
 0x1ee   : > { %6862 = vmatprep.mubr.msk.bf16.mxu1 %vm516_vm1, %v7276_v7 }
 0x1f5   : > { %6863 = vmatmul.mubr.msk.bf16.gmra.mrb[36].mxu1 %vm516_vm1, %v7277_v20 }
 0x1f6   : > { %6866 = vmatprep.mubr.msk.bf16.mxu1 %vm516_vm1, %v7278_v31 }
 0x1fd   : > { %6867 = vmatmul.mubr.msk.bf16.gmra.mrb[40].mxu1 %vm516_vm1, %v7279_v21 }
 0x1fe   : > { %6870 = vmatprep.mubr.msk.bf16.mxu1 %vm516_vm1, %v7280_v33 }
 0x1ff   : > { %v1339_v22 = vpop.f32.mrb[28].mxu0 }
 0x200   : > { %v6834_v23 = vpop.f32.mrb[29].mxu0 }
 0x201   : > { %v1342_v34 = vpop.f32.mrb[30].mxu0 }
 0x202   : > { %v6835_v49 = vpop.f32.mrb[31].mxu0 }
 0x205   : > { %6871 = vmatmul.mubr.msk.bf16.gmra.mrb[44].mxu1 %vm516_vm1, %v7281_v50 }
 0x206   : > { %6874 = vmatprep.mubr.msk.bf16.mxu1 %vm516_vm1, %v7282_v9 }
 0x207   : > { %v1347_v55 = vpop.f32.mrb[32].mxu0 }
 0x208   : > { %v6838_v32 = vpop.f32.mrb[33].mxu0 }
 0x209   : > { %v1350_v60 = vpop.f32.mrb[34].mxu0 }
 0x20a   : > { %v6839_v11 = vpop.f32.mrb[35].mxu0 }
 0x20d   : > { %6875 = vmatmul.mubr.msk.bf16.gmra.mrb[48].mxu1 %vm516_vm1, %v7283_v62 }
 0x20e   : > { %6886 = vmatprep.mubr.msk.bf16.mxu1 %vm7839_vm2, %v7838_v19 }
 0x20f   : > { %v1355_v14 = vpop.f32.mrb[36].mxu0 }
 0x210   : > { %v6842_v17 = vpop.f32.mrb[37].mxu0 }
 0x211   : > { %v1357_v38 = vpop.f32.mrb[38].mxu0 }
 0x212   : > { %v6843_v2 = vpop.f32.mrb[39].mxu0 }
 0x278   : > { %v6411_v36 = vpop.f32.mrb[0].mxu1 }
 0x279   : > { %v6412_v37 = vpop.f32.mrb[1].mxu1 }
 0x27a   : > { %v6413_v42 = vadd.f32 %v6412_v37, %v6411_v36  ;;  %v6414_v41 = vpop.f32.mrb[2].mxu1 }
 0x27b   : > { %v6415_v45 = vpop.f32.mrb[3].mxu1 }
 0x27c   : > { %v6416_v5 = vadd.f32 %v6415_v45, %v6414_v41  ;;  %v1230_v20 = vadd.f32 %v6413_v42, %v8467_v28 }
 0x27e   : > { %v1233_v23 = vadd.f32 %v6416_v5, %v8467_v28 }
 0x280   : > { %v6417_v43 = vpop.f32.mrb[4].mxu1 }
 0x281   : > { %v6418_v46 = vpop.f32.mrb[5].mxu1 }
 0x282   : > { %v6419_v10 = vadd.f32 %v6418_v46, %v6417_v43  ;;  %v6420_v24 = vpop.f32.mrb[6].mxu1 }
 0x283   : > { %v6421_v6 = vpop.f32.mrb[7].mxu1 }
 0x284   : > { %v6422_v47 = vadd.f32 %v6421_v6, %v6420_v24  ;;  %v1238_v38 = vadd.f32 %v6419_v10, %v8467_v28 }
 0x286   : > { %v1241_v42 = vadd.f32 %v6422_v47, %v8467_v28 }
 0x288   : > { %v6423_v25 = vpop.f32.mrb[8].mxu1 }
 0x289   : > { %v6424_v52 = vpop.f32.mrb[9].mxu1 }
 0x28a   : > { %v6426_v26 = vpop.f32.mrb[10].mxu1 }
 0x28b   : > { %v6427_v1 = vpop.f32.mrb[11].mxu1 }
 0x298   : > { %v6445_v18 = vpop.f32.mrb[12].mxu1 }
 0x299   : > { %v6446_v7 = vpop.f32.mrb[13].mxu1 }
 0x29a   : > { %v6447_v31 = vadd.f32 %v6446_v7, %v6445_v18  ;;  %v6448_v21 = vpop.f32.mrb[14].mxu1 }
 0x29b   : > { %v6449_v33 = vpop.f32.mrb[15].mxu1 }
 0x29c   : > { %v1285_v50 = vadd.f32 %v6447_v31, %v1230_v20  ;;  %v6450_v49 = vadd.f32 %v6449_v33, %v6448_v21 }
 0x29e   : > { %v1340_v9 = vadd.f32 %v1339_v22, %v1285_v50  ;;  %v1288_v32 = vadd.f32 %v6450_v49, %v1233_v23 }
 0x2a0   : > { %v1360_v62 = vmax.f32 %v1340_v9, 0.0  ;;  %v1343_v11 = vadd.f32 %v1342_v34, %v1288_v32  ;;  %v6451_v14 = vpop.f32.mrb[16].mxu1 }
 0x2a1   : > { %v6452_v17 = vpop.f32.mrb[17].mxu1 }
 0x2a2   : > { %v1361_v2 = vmax.f32 %v1343_v11, 0.0  ;;  %v6453_v36 = vadd.f32 %v6452_v17, %v6451_v14  ;;  %v6454_v37 = vpop.f32.mrb[18].mxu1  ;;  %v1366_v45 = vrot.slane %v1360_v62, 7 }
 0x2a3   : > { %v6455_v41 = vpop.f32.mrb[19].mxu1 }
 0x2a4   : > { %v1367_v43 = vrot.slane %v1361_v2, 7  ;;  %v1293_v46 = vadd.f32 %v6453_v36, %v1238_v38  ;;  %v6456_v5 = vadd.f32 %v6455_v41, %v6454_v37 }
 0x2a6   : > { %v1368_v24 = vsel %vm802_vm3, %v1366_v45, %v1367_v43  ;;  %v1348_v22 = vadd.f32 %v1347_v55, %v1293_v46  ;;  %v1296_v6 = vadd.f32 %v6456_v5, %v1241_v42 }
 0x2a7   : > { %v8474_v25 = vmax.f32 %v1360_v62, %v1368_v24 }
 0x2a8   : > { %v1362_v34 = vmax.f32 %v1348_v22, 0.0  ;;  %v1351_v52 = vadd.f32 %v1350_v60, %v1296_v6  ;;  %v6457_v26 = vpop.f32.mrb[20].mxu1 }
 0x2a9   : > { %v6458_v10 = vpop.f32.mrb[21].mxu1 }
 0x2aa   : > { %v1377_v1 = vrot.slane %v1362_v34, 7  ;;  %v1363_v18 = vmax.f32 %v1351_v52, 0.0  ;;  %v6460_v7 = vpop.f32.mrb[22].mxu1 }
 0x2ab   : > { %v6461_v20 = vpop.f32.mrb[23].mxu1 }
 0x2ac   : > { %v8476_v47 = vmax.f32 %v1361_v2, %v1377_v1  ;;  %v1378_v31 = vrot.slane %v1363_v18, 7 }
 0x2ae   : > { %v1379_v21 = vsel %vm802_vm3, %v1377_v1, %v1378_v31 }
 0x2af   : > { %v8479_v33 = vmax.f32 %v1362_v34, %v1379_v21 }
 0x2b0   : > { %v6852_v23 = vpop.f32.mrb[24].mxu1 }
 0x2b1   : > { %v1573_v55 = vpop.f32.mrb[25].mxu1  ;;  %v1582_v46 = vadd.f32 %v6852_v23, %v8104_v39 }
 0x2b2   : > { %v6853_v50 = vpop.f32.mrb[26].mxu1  ;;  %v1574_v60 = vadd.f32 %v8104_v39, %v1573_v55 }
 0x2b3   : > { %v1576_v49 = vpop.f32.mrb[27].mxu1  ;;  %v1585_v2 = vadd.f32 %v6853_v50, %v8104_v39  ;;  %v1686_v31 = vmax.f32 %v1582_v46, 0.0 }
 0x2b4   : > { %v1684_v17 = vmax.f32 %v1574_v60, 0.0  ;;  %v1577_v37 = vadd.f32 %v8104_v39, %v1576_v49 }
 0x2b5   : > { %v1687_v22 = vmax.f32 %v1585_v2, 0.0 }
 0x2b6   : > { %v1685_v26 = vmax.f32 %v1577_v37, 0.0 }
 0x2b8   : > { %v6856_v9 = vpop.f32.mrb[28].mxu1 }
 0x2b9   : > { %v1589_v32 = vpop.f32.mrb[29].mxu1 }
 0x2ba   : > { %v6857_v62 = vpop.f32.mrb[30].mxu1  ;;  %v1590_v41 = vadd.f32 %v8104_v39, %v1589_v32 }
 0x2bb   : > { %v1601_v11 = vadd.f32 %v6857_v62, %v8104_v39  ;;  %v1592_v14 = vpop.f32.mrb[31].mxu1  ;;  %v1598_v62 = vadd.f32 %v6856_v9, %v8104_v39 }
 0x2bc   : > { %v1688_v18 = vmax.f32 %v1590_v41, 0.0  ;;  %v1593_v50 = vadd.f32 %v8104_v39, %v1592_v14 }
 0x2bd   : > { %v1691_v38 = vmax.f32 %v1601_v11, 0.0  ;;  %v1690_v41 = vmax.f32 %v1598_v62, 0.0 }
 0x2be   : > { %v1689_v2 = vmax.f32 %v1593_v50, 0.0 }
 0x2bf   : > { %v8484_v36 = vmax.f32 %v1684_v17, %v1691_v38 }
 0x2c0   : > { %v6860_v42 = vpop.f32.mrb[32].mxu1 }
 0x2c1   : > { %v1614_v45 = vadd.f32 %v6860_v42, %v8104_v39  ;;  %v1605_v43 = vpop.f32.mrb[33].mxu1 }
 0x2c2   : > { %v1606_v5 = vadd.f32 %v8104_v39, %v1605_v43  ;;  %v6861_v24 = vpop.f32.mrb[34].mxu1 }
 0x2c3   : > { %v1694_v6 = vmax.f32 %v1614_v45, 0.0  ;;  %v1617_v34 = vadd.f32 %v6861_v24, %v8104_v39  ;;  %v1608_v52 = vpop.f32.mrb[35].mxu1 }
 0x2c4   : > { %v1692_v10 = vmax.f32 %v1606_v5, 0.0  ;;  %v1609_v1 = vadd.f32 %v8104_v39, %v1608_v52 }
 0x2c5   : > { %v8493_v7 = vmax.f32 %v1687_v22, %v1694_v6  ;;  %v1695_v20 = vmax.f32 %v1617_v34, 0.0 }
 0x2c6   : > { %v1713_v21 = vmax.f32 %v1685_v26, %v1692_v10  ;;  %v1693_v55 = vmax.f32 %v1609_v1, 0.0 }
 0x2c7   : > { %v8495_v23 = vmax.f32 %v1688_v18, %v1695_v20 }
 0x2c8   : > { %v1714_v49 = vmax.f32 %v1686_v31, %v1693_v55  ;;  %v6864_v60 = vpop.f32.mrb[36].mxu1 }
 0x2c9   : > { %v1621_v32 = vpop.f32.mrb[37].mxu1  ;;  %v1630_v10 = vadd.f32 %v6864_v60, %v8104_v39 }
 0x2ca   : > { %v1622_v11 = vadd.f32 %v8104_v39, %v1621_v32  ;;  %v6865_v17 = vpop.f32.mrb[38].mxu1 }
 0x2cb   : > { %v1624_v38 = vpop.f32.mrb[39].mxu1  ;;  %v1633_v6 = vadd.f32 %v6865_v17, %v8104_v39  ;;  %v1698_v60 = vmax.f32 %v1630_v10, 0.0 }
 0x2cc   : > { %v1696_v37 = vmax.f32 %v1622_v11, 0.0  ;;  %v1625_v42 = vadd.f32 %v8104_v39, %v1624_v38 }
 0x2cd   : > { %v1699_v18 = vmax.f32 %v1633_v6, 0.0 }
 0x2ce   : > { %v1717_v45 = vmax.f32 %v1689_v2, %v1696_v37  ;;  %v1697_v43 = vmax.f32 %v1625_v42, 0.0 }
 0x2d0   : > { %v8501_v46 = vmax.f32 %v1690_v41, %v1697_v43  ;;  %v6868_v5 = vpop.f32.mrb[40].mxu1 }
 0x2d1   : > { %v1637_v14 = vpop.f32.mrb[41].mxu1  ;;  %v1646_v50 = vadd.f32 %v6868_v5, %v8104_v39 }
 0x2d2   : > { %v6869_v24 = vpop.f32.mrb[42].mxu1  ;;  %v1638_v9 = vadd.f32 %v8104_v39, %v1637_v14 }
 0x2d3   : > { %v1640_v22 = vpop.f32.mrb[43].mxu1  ;;  %v1649_v62 = vadd.f32 %v6869_v24, %v8104_v39  ;;  %v1702_v14 = vmax.f32 %v1646_v50, 0.0 }
 0x2d4   : > { %v1700_v32 = vmax.f32 %v1638_v9, 0.0  ;;  %v1641_v17 = vadd.f32 %v8104_v39, %v1640_v22 }
 0x2d5   : > { %v1703_v6 = vmax.f32 %v1649_v62, 0.0 }
 0x2d6   : > { %v1701_v9 = vmax.f32 %v1641_v17, 0.0 }
 0x2d8   : > { %v6872_v34 = vpop.f32.mrb[44].mxu1 }
 0x2d9   : > { %v1662_v52 = vadd.f32 %v6872_v34, %v8104_v39  ;;  %v1653_v26 = vpop.f32.mrb[45].mxu1 }
 0x2da   : > { %v6873_v1 = vpop.f32.mrb[46].mxu1  ;;  %v1654_v2 = vadd.f32 %v8104_v39, %v1653_v26 }
 0x2db   : > { %v1706_v20 = vmax.f32 %v1662_v52, 0.0  ;;  %v1665_v31 = vadd.f32 %v6873_v1, %v8104_v39  ;;  %v1656_v55 = vpop.f32.mrb[47].mxu1 }
 0x2dc   : > { %v1657_v11 = vadd.f32 %v8104_v39, %v1656_v55  ;;  %v1704_v52 = vmax.f32 %v1654_v2, 0.0 }
 0x2dd   : > { %v1720_v38 = vmax.f32 %v1699_v18, %v1706_v20  ;;  %v1707_v37 = vmax.f32 %v1665_v31, 0.0 }
 0x2de   : > { %v1705_v42 = vmax.f32 %v1657_v11, 0.0 }
 0x2df   : > { %v8513_v41 = vmax.f32 %v1713_v21, %v1720_v38  ;;  %v1721_v43 = vmax.f32 %v1700_v32, %v1707_v37 }
 0x2e0   : > { %v1719_v34 = vmax.f32 %v1698_v60, %v1705_v42  ;;  %v6876_v5 = vpop.f32.mrb[48].mxu1 }
 0x2e1   : > { %v8515_v24 = vmax.f32 %v1714_v49, %v1721_v43  ;;  %v1678_v1 = vadd.f32 %v6876_v5, %v8104_v39  ;;  %v1669_v22 = vpop.f32.mrb[49].mxu1  ;;  %v1777_v21 = vrot.slane %v8513_v41, 7  ;;  %v1739_v20 = vrot.slane %v8513_v41, 1 }
 0x2e2   : > { %v8519_v18 = vmax.f32 %v8484_v36, %v1719_v34  ;;  %v1670_v26 = vadd.f32 %v8104_v39, %v1669_v22  ;;  %v6877_v10 = vpop.f32.mrb[50].mxu1 }
 0x2e3   : > { %v1710_v31 = vmax.f32 %v1678_v1, 0.0  ;;  %v1681_v55 = vadd.f32 %v6877_v10, %v8104_v39  ;;  %v1672_v50 = vpop.f32.mrb[51].mxu1  ;;  %v1779_v49 = vrot.slane %v8515_v24, 7  ;;  %v1741_v32 = vrot.slane %v8515_v24, 1 }
 0x2e4   : > { %v1708_v62 = vmax.f32 %v1670_v26, 0.0  ;;  %v1673_v11 = vadd.f32 %v8104_v39, %v1672_v50  ;;  %v1776_v36 = vrot.slane %v8519_v18, 7  ;;  %v1738_v17 = vrot.slane %v8519_v18, 1 }
 0x2e5   : > { %v1724_v38 = vmax.f32 %v1703_v6, %v1710_v31  ;;  %v1711_v2 = vmax.f32 %v1681_v55, 0.0  ;;  %v1780_v37 = vsel %vm802_vm3, %v1777_v21, %v1779_v49  ;;  %v1742_v60 = vsel %vm762_vm4, %v1739_v20, %v1741_v32 }
 0x2e6   : > { %v1722_v42 = vmax.f32 %v1701_v9, %v1708_v62  ;;  %v1709_v43 = vmax.f32 %v1673_v11, 0.0  ;;  %v1778_v34 = vsel %vm802_vm3, %v1776_v36, %v1777_v21  ;;  %v1740_v5 = vsel %vm762_vm4, %v1738_v17, %v1739_v20  ;;  %v8559_v20 = vld [vmem:[%s10307_s3] sm:$0xff]   ;;  %v8569_v36 = vld [vmem:[%s10307_s3 + $0x48] sm:$0xff]  }
 0x2e7   : > { %v8534_v1 = vmax.f32 %v1717_v45, %v1724_v38  ;;  %v1725_v22 = vmax.f32 %v1704_v52, %v1711_v2  ;;  %v7112_v39 = vpack.i.bf16 %v1780_v37, %v1778_v34  ;;  %v7117_v26 = vpack.i.bf16 %v1742_v60, %v1740_v5  ;;  %v8598_v34 = vld [vmem:[%s10307_s3 + $0x10] sm:$0xff]  }
 0x2e8   : > { %v8537_v10 = vmax.f32 %v8493_v7, %v1722_v42  ;;  %v1723_v6 = vmax.f32 %v1702_v14, %v1709_v43  ;;  %v8587_v43 = vld [vmem:[%s10307_s3 + $0x50] sm:$0xff]  }
 0x2e9   : > { %v1732_v31 = vmax.f32 %v8501_v46, %v1725_v22  ;;  %7113 = vrot.lane.b32.xlu1 %v7112_v39, %s10316_s25  ;;  %7118 = vrot.lane.b32.xlu0 %v7117_v26, %s10316_s25  ;;  %v1801_v14 = vrot.slane %v8534_v1, 1  ;;  %v8604_v22 = vld [vmem:[%s10307_s3 + $0x58] sm:$0xff]  }
 0x2ea   : > { %v8543_v9 = vmax.f32 %v8495_v23, %v1723_v6  ;;  %v1852_v45 = vpack.c.bf16 %v8537_v10, %v8515_v24  ;;  %v1781_v52 = vrot.slane %v8537_v10, 7  ;;  %v1743_v21 = vrot.slane %v8537_v10, 1  ;;  %v8611_v26 = vld [vmem:[%s10307_s3 + $0x18] sm:$0xff]   ;;  %v8617_v6 = vld [vmem:[%s10307_s3 + $0x60] sm:$0xff]  }
 0x2eb   : > { %v1823_v23 = vrot.slane %v8534_v1, 7  ;;  %v1862_v39 = vpack.c.bf16 %v1732_v31, %v1732_v31  ;;  %v8624_v31 = vld [vmem:[%s10307_s3 + $0x20] sm:$0xff]  }
 0x2ec   : > { %6887 = vmatmul.mubr.msk.bf16.vlgmr.msra.gmra.mrb[52].mxu1 %vm858_vm5, %v1852_v45  ;;  %v1783_v7 = vrot.slane %v8543_v9, 7  ;;  %v1745_v46 = vrot.slane %v8543_v9, 1  ;;  %v1782_v55 = vsel %vm802_vm3, %v1779_v49, %v1781_v52  ;;  %v1744_v62 = vsel %vm762_vm4, %v1741_v32, %v1743_v21  ;;  %v8581_v32 = vld [vmem:[%s10307_s3 + $0x8] sm:$0xff]  }
 0x2ed   : > { %6890 = vmatprep.mubr.msk.bf16.mxu1 %vm7839_vm2, %v7838_v19  ;;  %6580 = vmatpush3.bf16.msra.mxu1 %v8559_v20  ;;  %v1857_v49 = vpack.c.bf16 %v8534_v1, %v8543_v9  ;;  %v7142_v5 = vpack.i.bf16 %v1801_v14, %v1823_v23  ;;  %v8630_v45 = vld [vmem:[%s10307_s3 + $0x68] sm:$0xff]  }
 0x2ee   : > { %v1784_v50 = vsel %vm802_vm3, %v1781_v52, %v1783_v7  ;;  %v1746_v11 = vsel %vm762_vm4, %v1743_v21, %v1745_v46  ;;  %6581 = vmatprep.subr.bf16.mxu1 %v8569_v36  ;;  %v1802_v2 = vsel %vm762_vm4, %v1745_v46, %v1801_v14  ;;  %v1824_v37 = vsel %vm802_vm3, %v1783_v7, %v1823_v23  ;;  %v8636_v52 = vld [vmem:[%s10307_s3 + $0x28] sm:$0xff]  }
 0x2ef   : > { %v7122_v17 = vpack.i.bf16 %v1784_v50, %v1782_v55  ;;  %v7127_v38 = vpack.i.bf16 %v1746_v11, %v1744_v62  ;;  %v7132_v60 = vpack.i.bf16 %v1745_v46, %v1783_v7  ;;  %v7137_v42 = vpack.i.bf16 %v1802_v2, %v1824_v37 }
 0x2f0   : > { %v1762_v21 = vrot.slane %v8519_v18, 2  ;;  %v1765_v7 = vrot.slane %v8515_v24, 2  ;;  %v1763_v23 = vrot.slane %v8513_v41, 2  ;;  %v1767_v37 = vrot.slane %v8537_v10, 2 }
 0x2f1   : > { %7123 = vrot.lane.b32.xlu1 %v7122_v17, %s10316_s25  ;;  %7128 = vrot.lane.b32.xlu0 %v7127_v38, %s10316_s25 }
 0x2f2   : > { %6582 = vmatpush3.bf16.msra.mxu1 %v8581_v32 }
 0x2f3   : > { %6583 = vmatprep.subr.bf16.mxu1 %v8587_v43 }
 0x2f4   : > { %6891 = vmatmul.mubr.msk.bf16.gmra.mrb[56].mxu1 %vm858_vm5, %v1857_v49  ;;  %v1769_v49 = vrot.slane %v8543_v9, 2 }
 0x2f5   : > { %7133 = vrot.lane.b32.xlu1 %v7132_v60, %s10316_s25  ;;  %7138 = vrot.lane.b32.xlu0 %v7137_v42, %s10316_s25 }
 0x2f6   : > { %6894 = vmatprep.mubr.msk.bf16.mxu1 %vm7839_vm2, %v7838_v19  ;;  %6584 = vmatpush3.bf16.msra.mxu1 %v8598_v34 }
 0x2f7   : > { %6585 = vmatprep.subr.bf16.mxu1 %v8604_v22 }
 0x2f9   : > { %7143 = vrot.lane.b32.xlu1 %v7142_v5, %s10316_s25 }
 0x2fa   : > { %6586 = vmatpush3.bf16.msra.mxu1 %v8611_v26 }
 0x2fb   : > { %6587 = vmatprep.subr.bf16.mxu1 %v8617_v6 }
 0x2fc   : > { %6895 = vmatmul.mubr.msk.bf16.gmra.mrb[60].mxu1 %vm858_vm5, %v1862_v39 }
 0x2fe   : > { %6588 = vmatpush3.bf16.msra.mxu1 %v8624_v31 }
 0x2ff   : > { %6589 = vmatprep.subr.bf16.mxu1 %v8630_v45 }
 0x302   : > { %6590 = vmatpush3.bf16.msra.mxu1 %v8636_v52 }
 0x303   : > { %6591 = vmatprep.subr.bf16.mxu1 %v8138_v58 }
 0x306   : > { %6592 = vmatpush3.bf16.msra.mxu1 %v8145_v61  ;;  %v1764_v61 = vsel %vm787_vm6, %v1762_v21, %v1763_v23 }
 0x307   : > { %6593 = vmatprep.subr.bf16.mxu1 %v8156_v12  ;;  %v1766_v12 = vsel %vm787_vm6, %v1763_v23, %v1765_v7 }
 0x30a   : > { %6594 = vmatpush3.bf16.msra.mxu1 %v8161_v16 }
 0x30b   : > { %6613 = vmatprep.subr.bf16.mxu1 %v8183_v54 }
 0x35b   : > { %v7114_v46 = vpop.permute.xlu1 %7113  ;;  %v7119_v14 = vpop.permute.xlu0 %7118 }
 0x35c   : > { %v7116_v55 = vunpack.i.h.bf16 %v7114_v46  ;;  %v7115_v50 = vunpack.i.l.bf16 %v7114_v46  ;;  %v7121_v62 = vunpack.i.h.bf16 %v7119_v14  ;;  %v7120_v58 = vunpack.i.l.bf16 %v7119_v14 }
 0x35d   : > { %v1768_v46 = vsel %vm787_vm6, %v1765_v7, %v1767_v37  ;;  %v1770_v14 = vsel %vm787_vm6, %v1767_v37, %v1769_v49 }
 0x35e   : > { %v8651_v16 = vsel %vm858_vm5, %v8513_v41, %v7121_v62  ;;  %v1831_v54 = vsel %vm858_vm5, %v8519_v18, %v7120_v58  ;;  %v1836_v11 = vsel %vm858_vm5, %v1764_v61, %v7115_v50  ;;  %v1837_v17 = vsel %vm858_vm5, %v1766_v12, %v7116_v55 }
 0x35f   : > { %v1848_v38 = vpack.c.bf16 %v8651_v16, %v1831_v54  ;;  %v1849_v2 = vpack.c.bf16 %v1837_v17, %v1836_v11  ;;  %v1812_v54 = vrot.slane %v8537_v10, 6 }
 0x361   : > { %1904 = vmatprep.mubr.bf16.mxu0 %v1849_v2 }
 0x362   : > { %1905 = vmatmul.mubr.bf16.vlgmr.msra.gmra.mrb[40].mxu0 %v1848_v38  ;;  %v1810_v38 = vrot.slane %v8515_v24, 6 }
 0x363   : > { %6522 = vmatpush3.bf16.msra.mxu0 %v8271_v4  ;;  %v7124_v60 = vpop.permute.xlu1 %7123  ;;  %v7129_v42 = vpop.permute.xlu0 %7128 }
 0x364   : > { %v7126_v5 = vunpack.i.h.bf16 %v7124_v60  ;;  %v7125_v39 = vunpack.i.l.bf16 %v7124_v60  ;;  %v7131_v18 = vunpack.i.h.bf16 %v7129_v42  ;;  %v7130_v21 = vunpack.i.l.bf16 %v7129_v42  ;;  %6523 = vmatprep.subr.bf16.mxu0 %v8279_v15 }
 0x365   : > { %v1813_v2 = vsel %vm559_vm0, %v1810_v38, %v1812_v54 }
 0x366   : > { %v1838_v23 = vsel %vm858_vm5, %v1768_v46, %v7125_v39  ;;  %v1839_v50 = vsel %vm858_vm5, %v1770_v14, %v7126_v5  ;;  %v1833_v62 = vsel %vm858_vm5, %v8515_v24, %v7130_v21  ;;  %v1834_v4 = vsel %vm858_vm5, %v8537_v10, %v7131_v18  ;;  %v8722_v46 = vld [vmem:[%s10307_s3 + $0x100] sm:$0xff]  }
 0x367   : > { %6524 = vmatpush3.bf16.msra.mxu0 %v8293_v8  ;;  %v7134_v58 = vpop.permute.xlu1 %7133  ;;  %v1854_v61 = vpack.c.bf16 %v1839_v50, %v1838_v23  ;;  %v1853_v12 = vpack.c.bf16 %v1834_v4, %v1833_v62  ;;  %v1844_v10 = vsel %vm858_vm5, %v1813_v2, %v7125_v39  ;;  %v7288_v14 = vld [vmem:[%s7967_s29 + $0x100] sm:$0xff]   ;;  %v8731_v23 = vld [vmem:[%s10307_s3 + $0x108] sm:$0xff]   ;;  %v8740_v50 = vld [vmem:[%s10307_s3 + $0x110] sm:$0xff]  }
 0x368   : > { %v7135_v15 = vunpack.i.l.bf16 %v7134_v58  ;;  %6525 = vmatprep.subr.bf16.mxu0 %v8299_v44  ;;  %v7136_v7 = vunpack.i.h.bf16 %v7134_v58  ;;  %v1809_v44 = vrot.slane %v8513_v41, 6  ;;  %v7139_v41 = vpop.permute.xlu0 %7138  ;;  %v8749_v58 = vld [vmem:[%s10307_s3 + $0x118] sm:$0xff]  }
 0x369   : > { %1912 = vmatprep.mubr.bf16.mxu0 %v1854_v61  ;;  %v7748_v61 = vld [vmem:[%s10307_s3 + $0x40] sm:$0xff]  }
 0x36a   : > { %1913 = vmatmul.mubr.bf16.gmra.mrb[44].mxu0 %v1853_v12  ;;  %v1840_v11 = vsel %vm858_vm5, %v1769_v49, %v7135_v15  ;;  %v1835_v8 = vsel %vm858_vm5, %v8543_v9, %v7136_v7  ;;  %v1811_v37 = vsel %vm559_vm0, %v1809_v44, %v1810_v38  ;;  %v7140_v49 = vunpack.i.l.bf16 %v7139_v41  ;;  %v7291_v12 = vld [vmem:[%s7967_s29 + $0x118] sm:$0xff]   ;;  %v7292_v15 = vld [vmem:[%s7967_s29 + $0x120] sm:$0xff]   ;;  %v7293_v7 = vld [vmem:[%s7967_s29 + $0x128] sm:$0xff]  }
 0x36b   : > { %6526 = vmatpush3.bf16.msra.mxu0 %v8312_v48  ;;  %v1859_v17 = vpack.c.bf16 %v1840_v11, %v1840_v11  ;;  %v1858_v48 = vpack.c.bf16 %v1835_v8, %v1835_v8  ;;  %v1843_v24 = vsel %vm858_vm5, %v1811_v37, %v7116_v55  ;;  %v7144_v60 = vpop.permute.xlu1 %7143  ;;  %v7295_v11 = vld [vmem:[%s7967_s29 + $0x138] sm:$0xff]   ;;  %v7296_v38 = vld [vmem:[%s7967_s29 + $0x140] sm:$0xff]  }
 0x36c   : > { %6527 = vmatprep.subr.bf16.mxu0 %v8319_v51  ;;  %v1851_v51 = vpack.c.bf16 %v1844_v10, %v1843_v24  ;;  %v7145_v39 = vunpack.i.l.bf16 %v7144_v60  ;;  %v7297_v10 = vld [vmem:[%s7967_s29 + $0x148] sm:$0xff]  }
 0x36d   : > { %1920 = vmatprep.mubr.bf16.mxu0 %v1859_v17 }
 0x36f   : > { %6528 = vmatpush3.bf16.msra.mxu0 %v8326_v27  ;;  %v1814_v27 = vrot.slane %v8543_v9, 6 }
 0x370   : > { %6529 = vmatprep.subr.bf16.mxu0 %v8333_v29  ;;  %v1816_v29 = vrot.slane %v8534_v1, 6 }
 0x372   : > { %1921 = vmatmul.mubr.bf16.gmra.mrb[48].mxu0 %v1858_v48  ;;  %v1817_v55 = vsel %vm559_vm0, %v1814_v27, %v1816_v29 }
 0x373   : > { %6530 = vmatpush3.bf16.msra.mxu0 %v8344_v35  ;;  %1959 = vmatprep.mubr.bf16.mxu0 %v1851_v51  ;;  %v1846_v35 = vsel %vm858_vm5, %v1817_v55, %v7140_v49 }
 0x374   : > { %6531 = vmatprep.subr.bf16.mxu0 %v8354_v53  ;;  %v1815_v53 = vsel %vm559_vm0, %v1812_v54, %v1814_v27  ;;  %v7294_v54 = vld [vmem:[%s7967_s29 + $0x130] sm:$0xff]  }
 0x377   : > { %6532 = vmatpush3.bf16.msra.mxu0 %v8360_v56  ;;  %v1850_v56 = vpack.c.bf16 %v1833_v62, %v8651_v16  ;;  %v7289_v62 = vld [vmem:[%s7967_s29 + $0x108] sm:$0xff]  }
 0x378   : > { %6533 = vmatprep.subr.bf16.mxu0 %v8366_v30  ;;  %v1845_v30 = vsel %vm858_vm5, %v1815_v53, %v7126_v5  ;;  %v7146_v5 = vunpack.i.h.bf16 %v7144_v60 }
 0x379   : > { %v1856_v42 = vpack.c.bf16 %v1846_v35, %v1845_v30 }
 0x37b   : > { %6534 = vmatpush3.bf16.msra.mxu0 %v8372_v57  ;;  %v7141_v57 = vunpack.i.h.bf16 %v7139_v41 }
 0x37c   : > { %6535 = vmatprep.subr.bf16.mxu0 %v8378_v59 }
 0x37d   : > { %v1841_v59 = vsel %vm858_vm5, %v8543_v9, %v7141_v57  ;;  %v7284_v9 = vld [vmem:[%s7967_s29 + $0xe0] sm:$0xff]  }
 0x37e   : > { %v1855_v16 = vpack.c.bf16 %v1841_v59, %v1834_v4  ;;  %v7290_v4 = vld [vmem:[%s7967_s29 + $0x110] sm:$0xff]  }
 0x37f   : > { %6536 = vmatpush3.bf16.msra.mxu0 %v8385_v63  ;;  %v1847_v63 = vsel %vm858_vm5, %v1816_v29, %v7145_v39 }
 0x380   : > { %6898 = vmatprep.subr.bf16.mxu0 %v8397_v13  ;;  %v1861_v18 = vpack.c.bf16 %v1847_v63, %v1847_v63 }
 0x382   : > { %1960 = vmatmul.mubr.bf16.vlgmr.msra.gmra.mrb[52].mxu0 %v1850_v56 }
 0x383   : > { %1967 = vmatprep.mubr.bf16.mxu0 %v1856_v42  ;;  %6899 = vmatpush3.bf16.msra.mxu0 %v8397_v13  ;;  %v1842_v13 = vsel %vm858_vm5, %v8534_v1, %v7146_v5  ;;  %v7287_v1 = vld [vmem:[%s7967_s29 + $0xf8] sm:$0xff]  }
 0x384   : > { %6900 = vmatprep.subr.bf16.mxu0 %v8407_v0  ;;  %v1860_v21 = vpack.c.bf16 %v1842_v13, %v1842_v13 }
 0x387   : > { %6901 = vmatpush3.bf16.msra.mxu0 %v8407_v0  ;;  %v7285_v0 = vld [vmem:[%s7967_s29 + $0xe8] sm:$0xff]  }
 0x388   : > { %7032 = vmatprep.subr.msk.bf16.mxu0 %vm559_vm0, %v8418_v40  ;;  %v7286_v40 = vld [vmem:[%s7967_s29 + $0xf0] sm:$0xff]  }
 0x38a   : > { %1968 = vmatmul.mubr.bf16.gmra.mrb[56].mxu0 %v1855_v16 }
 0x38b   : > { %1975 = vmatprep.mubr.bf16.mxu0 %v1861_v18  ;;  %6903 = vmatpush3.bf16.msra.mxu0 %v7961_v3 }
 0x38c   : > { %6932 = vmatprep.subr.bf16.mxu0 %v7838_v19 }
 0x392   : > { %1976 = vmatmul.mubr.bf16.gmra.mrb[60].mxu0 %v1860_v21 }
 0x393   : > { %6904 = vmatprep.mubr.msk.bf16.mxu0 %vm516_vm1, %v7284_v9 }
 0x39a   : > { %6905 = vmatmul.mubr.msk.bf16.vlgmr.msra.gmra.mrb[64].mxu0 %vm516_vm1, %v7285_v0 }
 0x39b   : > { %6908 = vmatprep.mubr.msk.bf16.mxu0 %vm516_vm1, %v7286_v40  ;;  %6933 = vmatpush3.bf16.msra.mxu0 %v8722_v46 }
 0x39c   : > { %6934 = vmatprep.subr.bf16.mxu0 %v7838_v19 }
 0x39f   : > { %6935 = vmatpush3.bf16.msra.mxu0 %v8731_v23 }
 0x3a0   : > { %6936 = vmatprep.subr.bf16.mxu0 %v7838_v19 }
 0x3a2   : > { %6909 = vmatmul.mubr.msk.bf16.gmra.mrb[68].mxu0 %vm516_vm1, %v7287_v1 }
 0x3a3   : > { %6912 = vmatprep.mubr.msk.bf16.mxu0 %vm516_vm1, %v7288_v14  ;;  %6937 = vmatpush3.bf16.msra.mxu0 %v8740_v50 }
 0x3a4   : > { %6938 = vmatprep.subr.bf16.mxu0 %v7838_v19 }
 0x3a7   : > { %6939 = vmatpush3.bf16.msra.mxu0 %v8749_v58 }
 0x3a8   : > { %6671 = vmatprep.subr.bf16.mxu0 %v7748_v61 }
 0x3aa   : > { %6913 = vmatmul.mubr.msk.bf16.gmra.mrb[72].mxu0 %vm516_vm1, %v7289_v62 }
 0x3ab   : > { %6916 = vmatprep.mubr.msk.bf16.mxu0 %vm516_vm1, %v7290_v4 }
 0x3b2   : > { %6917 = vmatmul.mubr.msk.bf16.gmra.mrb[76].mxu0 %vm516_vm1, %v7291_v12 }
 0x3b3   : > { %6920 = vmatprep.mubr.msk.bf16.mxu0 %vm516_vm1, %v7292_v15 }
 0x3ba   : > { %6921 = vmatmul.mubr.msk.bf16.gmra.mrb[80].mxu0 %vm516_vm1, %v7293_v7 }
 0x3bb   : > { %6924 = vmatprep.mubr.msk.bf16.mxu0 %vm516_vm1, %v7294_v54 }
 0x3bf   : > { %v2016_v17 = vpop.f32.mrb[52].mxu1 }
 0x3c0   : > { %v6888_v8 = vpop.f32.mrb[53].mxu1 }
 0x3c1   : > { %v2019_v44 = vpop.f32.mrb[54].mxu1 }
 0x3c2   : > { %6925 = vmatmul.mubr.msk.bf16.gmra.mrb[84].mxu0 %vm516_vm1, %v7295_v11  ;;  %v6889_v2 = vpop.f32.mrb[55].mxu1 }
 0x3c3   : > { %6928 = vmatprep.mubr.msk.bf16.mxu0 %vm516_vm1, %v7296_v38 }
 0x3c7   : > { %v2024_v37 = vpop.f32.mrb[56].mxu1 }
 0x3c8   : > { %v6892_v48 = vpop.f32.mrb[57].mxu1 }
 0x3c9   : > { %v2027_v24 = vpop.f32.mrb[58].mxu1 }
 0x3ca   : > { %6929 = vmatmul.mubr.msk.bf16.gmra.mrb[88].mxu0 %vm516_vm1, %v7297_v10  ;;  %v6893_v51 = vpop.f32.mrb[59].mxu1 }
 0x3cb   : > { %6940 = vmatprep.mubr.msk.bf16.mxu0 %vm7839_vm2, %v7838_v19 }
 0x3cf   : > { %v2032_v41 = vpop.f32.mrb[60].mxu1 }
 0x3d0   : > { %v6896_v27 = vpop.f32.mrb[61].mxu1 }
 0x3d1   : > { %v2034_v49 = vpop.f32.mrb[62].mxu1 }
 0x3d2   : > { %v6897_v29 = vpop.f32.mrb[63].mxu1 }
 0x435   : > { %v6503_v55 = vpop.f32.mrb[40].mxu0 }
 0x436   : > { %v6504_v35 = vpop.f32.mrb[41].mxu0 }
 0x437   : > { %v6505_v60 = vadd.f32 %v6504_v35, %v6503_v55  ;;  %v6506_v53 = vpop.f32.mrb[42].mxu0 }
 0x438   : > { %v6507_v56 = vpop.f32.mrb[43].mxu0 }
 0x439   : > { %v6508_v30 = vadd.f32 %v6507_v56, %v6506_v53  ;;  %v1907_v40 = vadd.f32 %v6505_v60, %v8467_v28  ;;  %v1372_v60 = vrot.slane %v8474_v25, 1 }
 0x43b   : > { %v1910_v4 = vadd.f32 %v6508_v30, %v8467_v28 }
 0x43d   : > { %v6509_v57 = vpop.f32.mrb[44].mxu0 }
 0x43e   : > { %v6510_v42 = vpop.f32.mrb[45].mxu0 }
 0x43f   : > { %v6511_v39 = vadd.f32 %v6510_v42, %v6509_v57  ;;  %v6512_v59 = vpop.f32.mrb[46].mxu0 }
 0x440   : > { %v6513_v63 = vpop.f32.mrb[47].mxu0 }
 0x441   : > { %v6514_v16 = vadd.f32 %v6513_v63, %v6512_v59  ;;  %v1915_v2 = vadd.f32 %v6511_v39, %v8467_v28  ;;  %v1374_v39 = vmax.f32 %v8474_v25, %v1372_v60 }
 0x443   : > { %v1918_v41 = vadd.f32 %v6514_v16, %v8467_v28  ;;  %v1385_v28 = vrot.slane %v8476_v47, 1 }
 0x445   : > { %v6515_v5 = vpop.f32.mrb[48].mxu0 }
 0x446   : > { %v6516_v18 = vpop.f32.mrb[49].mxu0 }
 0x447   : > { %v6518_v13 = vpop.f32.mrb[50].mxu0 }
 0x448   : > { %v6519_v9 = vpop.f32.mrb[51].mxu0 }
 0x455   : > { %v6537_v21 = vpop.f32.mrb[52].mxu0 }
 0x456   : > { %v6538_v0 = vpop.f32.mrb[53].mxu0 }
 0x457   : > { %v6539_v1 = vadd.f32 %v6538_v0, %v6537_v21  ;;  %v6540_v14 = vpop.f32.mrb[54].mxu0 }
 0x458   : > { %v6541_v62 = vpop.f32.mrb[55].mxu0 }
 0x459   : > { %v1962_v61 = vadd.f32 %v6539_v1, %v1907_v40  ;;  %v6542_v12 = vadd.f32 %v6541_v62, %v6540_v14  ;;  %v1387_v14 = vmax.f32 %v8476_v47, %v1385_v28 }
 0x45b   : > { %v2017_v15 = vadd.f32 %v2016_v17, %v1962_v61  ;;  %v1965_v7 = vadd.f32 %v6542_v12, %v1910_v4 }
 0x45d   : > { %v2037_v54 = vmax.f32 %v2017_v15, 0.0  ;;  %v2020_v11 = vadd.f32 %v2019_v44, %v1965_v7  ;;  %v6543_v38 = vpop.f32.mrb[56].mxu0  ;;  %v1389_v7 = vrot.slane %v8479_v33, 1 }
 0x45e   : > { %v6544_v8 = vpop.f32.mrb[57].mxu0 }
 0x45f   : > { %v2038_v10 = vmax.f32 %v2020_v11, 0.0  ;;  %v6545_v48 = vadd.f32 %v6544_v8, %v6543_v38  ;;  %v6546_v51 = vpop.f32.mrb[58].mxu0  ;;  %v2043_v49 = vrot.slane %v2037_v54, 7  ;;  %v1396_v38 = vrot.slane %v1387_v14, 6 }
 0x460   : > { %v6547_v27 = vpop.f32.mrb[59].mxu0 }
 0x461   : > { %v2044_v29 = vrot.slane %v2038_v10, 7  ;;  %v1970_v55 = vadd.f32 %v6545_v48, %v1915_v2  ;;  %v6548_v35 = vadd.f32 %v6547_v27, %v6546_v51  ;;  %v1391_v51 = vmax.f32 %v8479_v33, %v1389_v7 }
 0x463   : > { %v2045_v17 = vsel %vm802_vm3, %v2043_v49, %v2044_v29  ;;  %v2025_v53 = vadd.f32 %v2024_v37, %v1970_v55  ;;  %v1973_v44 = vadd.f32 %v6548_v35, %v1918_v41  ;;  %v1393_v37 = vrot.slane %v1374_v39, 2  ;;  %v8800_v29 = vld [vmem:[%s10306_s2] ss:$0 sm:$0xff] }
 0x464   : > { %v2047_v56 = vmax.f32 %v2037_v54, %v2045_v17 }
 0x465   : > { %v2039_v30 = vmax.f32 %v2025_v53, 0.0  ;;  %v2028_v57 = vadd.f32 %v2027_v24, %v1973_v44  ;;  %v6549_v42 = vpop.f32.mrb[60].mxu0 }
 0x466   : > { %v2049_v59 = vrot.slane %v2047_v56, 1  ;;  %v6550_v63 = vpop.f32.mrb[61].mxu0 }
 0x467   : > { %v2054_v16 = vrot.slane %v2039_v30, 7  ;;  %v2040_v5 = vmax.f32 %v2028_v57, 0.0  ;;  %v6552_v18 = vpop.f32.mrb[62].mxu0 }
 0x468   : > { %v2051_v13 = vmax.f32 %v2047_v56, %v2049_v59  ;;  %v6553_v9 = vpop.f32.mrb[63].mxu0 }
 0x469   : > { %v2059_v21 = vmax.f32 %v2038_v10, %v2054_v16  ;;  %v2055_v0 = vrot.slane %v2040_v5, 7 }
 0x46a   : > { %v3424_v40 = vrot.slane %v2051_v13, 7  ;;  %v6079_v1 = vrot.slane %v2051_v13, 9 }
 0x46b   : > { %v2062_v24 = vrot.slane %v2059_v21, 1  ;;  %v2056_v62 = vsel %vm802_vm3, %v2054_v16, %v2055_v0 }
 0x46c   : > { %v2060_v25 = vmax.f32 %v2039_v30, %v2056_v62  ;;  %v8784_v4 = vsel %vm802_vm3, %v1393_v37, %v6079_v1  ;;  %v8787_v61 = vsel %vm802_vm3, %v1374_v39, %v3424_v40 }
 0x46d   : > { %v2064_v12 = vmax.f32 %v2059_v21, %v2062_v24  ;;  %v6906_v15 = vpop.f32.mrb[64].mxu0 }
 0x46e   : > { %v2066_v54 = vrot.slane %v2060_v25, 1  ;;  %v2248_v11 = vpop.f32.mrb[65].mxu0  ;;  %v2257_v28 = vadd.f32 %v8800_v29, %v6906_v15 }
 0x46f   : > { %v6080_v8 = vrot.slane %v2064_v12, 13  ;;  %v6907_v2 = vpop.f32.mrb[66].mxu0  ;;  %v2249_v55 = vadd.f32 %v8800_v29, %v2248_v11 }
 0x470   : > { %v2068_v47 = vmax.f32 %v2060_v25, %v2066_v54  ;;  %v2251_v10 = vpop.f32.mrb[67].mxu0  ;;  %v2260_v33 = vadd.f32 %v8800_v29, %v6907_v2  ;;  %v2361_v62 = vmax.f32 %v2257_v28, 0.0 }
 0x471   : > { %v8791_v48 = vsel %vm802_vm3, %v1396_v38, %v6080_v8  ;;  %v2359_v44 = vmax.f32 %v2249_v55, 0.0  ;;  %v2252_v57 = vadd.f32 %v8800_v29, %v2251_v10 }
 0x472   : > { %v3427_v41 = vrot.slane %v2068_v47, 7  ;;  %v2362_v18 = vmax.f32 %v2260_v33, 0.0 }
 0x473   : > { %v2360_v0 = vmax.f32 %v2252_v57, 0.0 }
 0x474   : > { %v8795_v27 = vsel %vm802_vm3, %v1391_v51, %v3427_v41 }
 0x475   : > { %v6910_v49 = vpop.f32.mrb[68].mxu0 }
 0x476   : > { %v2264_v35 = vpop.f32.mrb[69].mxu0  ;;  %v2273_v8 = vadd.f32 %v8800_v29, %v6910_v49 }
 0x477   : > { %v6911_v60 = vpop.f32.mrb[70].mxu0  ;;  %v2265_v39 = vadd.f32 %v8800_v29, %v2264_v35 }
 0x478   : > { %v2276_v17 = vadd.f32 %v8800_v29, %v6911_v60  ;;  %v2267_v53 = vpop.f32.mrb[71].mxu0  ;;  %v2365_v35 = vmax.f32 %v2273_v8, 0.0 }
 0x479   : > { %v2363_v1 = vmax.f32 %v2265_v39, 0.0  ;;  %v2268_v7 = vadd.f32 %v8800_v29, %v2267_v53 }
 0x47a   : > { %v2366_v56 = vmax.f32 %v2276_v17, 0.0 }
 0x47b   : > { %v2364_v51 = vmax.f32 %v2268_v7, 0.0 }
 0x47c   : > { %v8805_v30 = vmax.f32 %v2359_v44, %v2366_v56 }
 0x47d   : > { %v6914_v42 = vpop.f32.mrb[72].mxu0 }
 0x47e   : > { %v2289_v59 = vadd.f32 %v8800_v29, %v6914_v42  ;;  %v2280_v63 = vpop.f32.mrb[73].mxu0 }
 0x47f   : > { %v2281_v16 = vadd.f32 %v8800_v29, %v2280_v63  ;;  %v6915_v5 = vpop.f32.mrb[74].mxu0 }
 0x480   : > { %v2369_v13 = vmax.f32 %v2289_v59, 0.0  ;;  %v2292_v9 = vadd.f32 %v8800_v29, %v6915_v5  ;;  %v2283_v21 = vpop.f32.mrb[75].mxu0 }
 0x481   : > { %v2367_v40 = vmax.f32 %v2281_v16, 0.0  ;;  %v2284_v37 = vadd.f32 %v8800_v29, %v2283_v21 }
 0x482   : > { %v8814_v14 = vmax.f32 %v2362_v18, %v2369_v13  ;;  %v2370_v24 = vmax.f32 %v2292_v9, 0.0 }
 0x483   : > { %v2388_v25 = vmax.f32 %v2360_v0, %v2367_v40  ;;  %v2368_v12 = vmax.f32 %v2284_v37, 0.0 }
 0x484   : > { %v8816_v15 = vmax.f32 %v2363_v1, %v2370_v24 }
 0x485   : > { %v2389_v54 = vmax.f32 %v2361_v62, %v2368_v12  ;;  %v6918_v11 = vpop.f32.mrb[76].mxu0 }
 0x486   : > { %v2296_v38 = vpop.f32.mrb[77].mxu0  ;;  %v2305_v28 = vadd.f32 %v8800_v29, %v6918_v11 }
 0x487   : > { %v2297_v2 = vadd.f32 %v8800_v29, %v2296_v38  ;;  %v6919_v47 = vpop.f32.mrb[78].mxu0 }
 0x488   : > { %v2299_v10 = vpop.f32.mrb[79].mxu0  ;;  %v2308_v42 = vadd.f32 %v8800_v29, %v6919_v47  ;;  %v2373_v7 = vmax.f32 %v2305_v28, 0.0 }
 0x489   : > { %v2371_v41 = vmax.f32 %v2297_v2, 0.0  ;;  %v2300_v55 = vadd.f32 %v8800_v29, %v2299_v10 }
 0x48a   : > { %v2374_v5 = vmax.f32 %v2308_v42, 0.0 }
 0x48b   : > { %v2392_v60 = vmax.f32 %v2364_v51, %v2371_v41  ;;  %v2372_v17 = vmax.f32 %v2300_v55, 0.0 }
 0x48d   : > { %v8822_v44 = vmax.f32 %v2365_v35, %v2372_v17  ;;  %v6922_v56 = vpop.f32.mrb[80].mxu0 }
 0x48e   : > { %v2312_v53 = vpop.f32.mrb[81].mxu0  ;;  %v2321_v21 = vadd.f32 %v8800_v29, %v6922_v56 }
 0x48f   : > { %v6923_v33 = vpop.f32.mrb[82].mxu0  ;;  %v2313_v49 = vadd.f32 %v8800_v29, %v2312_v53 }
 0x490   : > { %v2315_v57 = vpop.f32.mrb[83].mxu0  ;;  %v2324_v40 = vadd.f32 %v8800_v29, %v6923_v33  ;;  %v2377_v2 = vmax.f32 %v2321_v21, 0.0 }
 0x491   : > { %v2375_v0 = vmax.f32 %v2313_v49, 0.0  ;;  %v2316_v1 = vadd.f32 %v8800_v29, %v2315_v57 }
 0x492   : > { %v2378_v47 = vmax.f32 %v2324_v40, 0.0 }
 0x493   : > { %v2376_v41 = vmax.f32 %v2316_v1, 0.0 }
 0x495   : > { %v6926_v39 = vpop.f32.mrb[84].mxu0 }
 0x496   : > { %v2337_v59 = vadd.f32 %v8800_v29, %v6926_v39  ;;  %v2328_v63 = vpop.f32.mrb[85].mxu0 }
 0x497   : > { %v6927_v16 = vpop.f32.mrb[86].mxu0  ;;  %v2329_v62 = vadd.f32 %v8800_v29, %v2328_v63 }
 0x498   : > { %v2381_v18 = vmax.f32 %v2337_v59, 0.0  ;;  %v2340_v13 = vadd.f32 %v8800_v29, %v6927_v16  ;;  %v2331_v9 = vpop.f32.mrb[87].mxu0 }
 0x499   : > { %v2332_v37 = vadd.f32 %v8800_v29, %v2331_v9  ;;  %v2379_v55 = vmax.f32 %v2329_v62, 0.0 }
 0x49a   : > { %v2395_v24 = vmax.f32 %v2374_v5, %v2381_v18  ;;  %v2382_v12 = vmax.f32 %v2340_v13, 0.0 }
 0x49b   : > { %v2380_v11 = vmax.f32 %v2332_v37, 0.0 }
 0x49c   : > { %v8834_v38 = vmax.f32 %v2388_v25, %v2395_v24  ;;  %v2396_v8 = vmax.f32 %v2375_v0, %v2382_v12 }
 0x49d   : > { %v2394_v10 = vmax.f32 %v2373_v7, %v2380_v11  ;;  %v6930_v51 = vpop.f32.mrb[88].mxu0 }
 0x49e   : > { %v8836_v35 = vmax.f32 %v2389_v54, %v2396_v8  ;;  %v2353_v17 = vadd.f32 %v8800_v29, %v6930_v51  ;;  %v2344_v56 = vpop.f32.mrb[89].mxu0  ;;  %v2452_v25 = vrot.slane %v8834_v38, 7  ;;  %v2414_v42 = vrot.slane %v8834_v38, 1 }
 0x49f   : > { %v8840_v53 = vmax.f32 %v8805_v30, %v2394_v10  ;;  %v2345_v33 = vadd.f32 %v8800_v29, %v2344_v56  ;;  %v6931_v57 = vpop.f32.mrb[90].mxu0 }
 0x4a0   : > { %v2385_v49 = vmax.f32 %v2353_v17, 0.0  ;;  %v2356_v39 = vadd.f32 %v8800_v29, %v6931_v57  ;;  %v2347_v59 = vpop.f32.mrb[91].mxu0  ;;  %v2454_v54 = vrot.slane %v8836_v35, 7  ;;  %v2416_v63 = vrot.slane %v8836_v35, 1 }
 0x4a1   : > { %v2383_v28 = vmax.f32 %v2345_v33, 0.0  ;;  %v2348_v16 = vadd.f32 %v8800_v29, %v2347_v59  ;;  %v2451_v30 = vrot.slane %v8840_v53, 7  ;;  %v2413_v5 = vrot.slane %v8840_v53, 1 }
 0x4a2   : > { %v2399_v18 = vmax.f32 %v2378_v47, %v2385_v49  ;;  %v2386_v13 = vmax.f32 %v2356_v39, 0.0  ;;  %v2455_v9 = vsel %vm802_vm3, %v2452_v25, %v2454_v54  ;;  %v2417_v21 = vsel %vm762_vm4, %v2414_v42, %v2416_v63 }
 0x4a3   : > { %v2397_v0 = vmax.f32 %v2376_v41, %v2383_v28  ;;  %v2384_v40 = vmax.f32 %v2348_v16, 0.0  ;;  %v2453_v37 = vsel %vm802_vm3, %v2451_v30, %v2452_v25  ;;  %v2415_v1 = vsel %vm762_vm4, %v2413_v5, %v2414_v42 }
 0x4a4   : > { %v8855_v24 = vmax.f32 %v2392_v60, %v2399_v18  ;;  %v2400_v62 = vmax.f32 %v2379_v55, %v2386_v13  ;;  %v7147_v12 = vpack.i.bf16 %v2455_v9, %v2453_v37  ;;  %v7152_v7 = vpack.i.bf16 %v2417_v21, %v2415_v1 }
 0x4a5   : > { %v8858_v11 = vmax.f32 %v8814_v14, %v2397_v0  ;;  %v2398_v8 = vmax.f32 %v2377_v2, %v2384_v40 }
 0x4a6   : > { %v2407_v47 = vmax.f32 %v8822_v44, %v2400_v62  ;;  %7148 = vrot.lane.b32.xlu0 %v7147_v12, %s10316_s25  ;;  %7153 = vrot.lane.b32.xlu1 %v7152_v7, %s10316_s25  ;;  %v2476_v2 = vrot.slane %v8855_v24, 1  ;;  %v8945_v7 = vld [vmem:[%s10307_s3 + $0x80] sm:$0xff]  }
 0x4a7   : > { %v8864_v10 = vmax.f32 %v8816_v15, %v2398_v8  ;;  %v2527_v60 = vpack.c.bf16 %v8858_v11, %v8836_v35  ;;  %v2456_v51 = vrot.slane %v8858_v11, 7  ;;  %v2418_v41 = vrot.slane %v8858_v11, 1 }
 0x4a8   : > { %v2498_v15 = vrot.slane %v8855_v24, 7  ;;  %v2442_v62 = vrot.slane %v8858_v11, 2 }
 0x4a9   : > { %6941 = vmatmul.mubr.msk.bf16.vlgmr.msra.gmra.mrb[92].mxu0 %vm858_vm5, %v2527_v60  ;;  %v2458_v14 = vrot.slane %v8864_v10, 7  ;;  %v2420_v44 = vrot.slane %v8864_v10, 1  ;;  %v2457_v55 = vsel %vm802_vm3, %v2454_v54, %v2456_v51  ;;  %v2419_v56 = vsel %vm762_vm4, %v2416_v63, %v2418_v41 }
 0x4aa   : > { %6944 = vmatprep.mubr.msk.bf16.mxu0 %vm7839_vm2, %v7838_v19  ;;  %6672 = vmatpush3.bf16.msra.mxu0 %v8559_v20  ;;  %v2532_v20 = vpack.c.bf16 %v8855_v24, %v8864_v10  ;;  %v2438_v63 = vrot.slane %v8834_v38, 2  ;;  %v2444_v12 = vrot.slane %v8864_v10, 2 }
 0x4ab   : > { %v2459_v17 = vsel %vm802_vm3, %v2456_v51, %v2458_v14  ;;  %v2421_v33 = vsel %vm762_vm4, %v2418_v41, %v2420_v44  ;;  %6673 = vmatprep.subr.bf16.mxu0 %v8569_v36  ;;  %v2477_v42 = vsel %vm762_vm4, %v2420_v44, %v2476_v2  ;;  %v2499_v49 = vsel %vm802_vm3, %v2458_v14, %v2498_v15 }
 0x4ac   : > { %v7157_v57 = vpack.i.bf16 %v2459_v17, %v2457_v55  ;;  %v7162_v25 = vpack.i.bf16 %v2421_v33, %v2419_v56  ;;  %v7167_v39 = vpack.i.bf16 %v2420_v44, %v2458_v14  ;;  %v7172_v59 = vpack.i.bf16 %v2477_v42, %v2499_v49  ;;  %v8955_v14 = vld [vmem:[%s10307_s3 + $0xc8] sm:$0xff]  }
 0x4ad   : > { %v7177_v36 = vpack.i.bf16 %v2476_v2, %v2498_v15  ;;  %v2445_v2 = vsel %vm787_vm6, %v2442_v62, %v2444_v12  ;;  %v8975_v33 = vld [vmem:[%s10307_s3 + $0x88] sm:$0xff]  }
 0x4ae   : > { %7158 = vrot.lane.b32.xlu0 %v7157_v57, %s10316_s25  ;;  %7163 = vrot.lane.b32.xlu1 %v7162_v25, %s10316_s25 }
 0x4af   : > { %6674 = vmatpush3.bf16.msra.mxu0 %v8581_v32  ;;  %v2537_v32 = vpack.c.bf16 %v2407_v47, %v2407_v47 }
 0x4b0   : > { %6675 = vmatprep.subr.bf16.mxu0 %v8587_v43  ;;  %v7750_v43 = vld [vmem:[%s10307_s3 + $0x70] sm:$0xff]  }
 0x4b1   : > { %6945 = vmatmul.mubr.msk.bf16.gmra.mrb[96].mxu0 %vm858_vm5, %v2532_v20  ;;  %v8983_v20 = vld [vmem:[%s10307_s3 + $0xd0] sm:$0xff]  }
 0x4b2   : > { %7168 = vrot.lane.b32.xlu0 %v7167_v39, %s10316_s25  ;;  %7173 = vrot.lane.b32.xlu1 %v7172_v59, %s10316_s25  ;;  %v2487_v59 = vrot.slane %v8858_v11, 6 }
 0x4b3   : > { %6948 = vmatprep.mubr.msk.bf16.mxu0 %vm7839_vm2, %v7838_v19  ;;  %6676 = vmatpush3.bf16.msra.mxu0 %v8598_v34  ;;  %v7751_v34 = vld [vmem:[%s10307_s3 + $0x30] sm:$0xff]  }
 0x4b4   : > { %6677 = vmatprep.subr.bf16.mxu0 %v8604_v22  ;;  %v7752_v22 = vld [vmem:[%s10307_s3 + $0x78] sm:$0xff]  }
 0x4b6   : > { %7178 = vrot.lane.b32.xlu0 %v7177_v36, %s10316_s25 }
 0x4b7   : > { %6678 = vmatpush3.bf16.msra.mxu0 %v8611_v26  ;;  %v7753_v26 = vld [vmem:[%s10307_s3 + $0x38] sm:$0xff]  }
 0x4b8   : > { %6679 = vmatprep.subr.bf16.mxu0 %v8617_v6  ;;  %v7754_v6 = vld [vmem:[%s10307_s3 + $0xc0] sm:$0xff]  }
 0x4b9   : > { %6949 = vmatmul.mubr.msk.bf16.gmra.mrb[100].mxu0 %vm858_vm5, %v2537_v32  ;;  %v8991_v32 = vld [vmem:[%s10307_s3 + $0x90] sm:$0xff]  }
 0x4bb   : > { %6680 = vmatpush3.bf16.msra.mxu0 %v8624_v31  ;;  %v2437_v31 = vrot.slane %v8840_v53, 2 }
 0x4bc   : > { %6681 = vmatprep.subr.bf16.mxu0 %v8630_v45  ;;  %v2440_v45 = vrot.slane %v8836_v35, 2 }
 0x4bd   : > { %v2439_v18 = vsel %vm787_vm6, %v2437_v31, %v2438_v63 }
 0x4be   : > { %v2441_v13 = vsel %vm787_vm6, %v2438_v63, %v2440_v45  ;;  %v2443_v44 = vsel %vm787_vm6, %v2440_v45, %v2442_v62 }
 0x4bf   : > { %6682 = vmatpush3.bf16.msra.mxu0 %v8636_v52 }
 0x4c0   : > { %6683 = vmatprep.subr.bf16.mxu0 %v7750_v43 }
 0x4c3   : > { %6684 = vmatpush3.bf16.msra.mxu0 %v7751_v34  ;;  %v2485_v34 = vrot.slane %v8836_v35, 6 }
 0x4c4   : > { %6685 = vmatprep.subr.bf16.mxu0 %v7752_v22  ;;  %v8998_v22 = vld [vmem:[%s10307_s3 + $0xd8] sm:$0xff]  }
 0x4c7   : > { %6686 = vmatpush3.bf16.msra.mxu0 %v7753_v26  ;;  %v2484_v26 = vrot.slane %v8834_v38, 6 }
 0x4c8   : > { %6705 = vmatprep.subr.bf16.mxu0 %v7754_v6  ;;  %v2488_v6 = vsel %vm559_vm0, %v2485_v34, %v2487_v59 }
 0x4c9   : > { %v2486_v45 = vsel %vm559_vm0, %v2484_v26, %v2485_v34  ;;  %v7307_v34 = vld [vmem:[%s7967_s29 + $0x198] sm:$0xff]  }
 0x518   : > { %v8922_v52 = vpop.permute.xlu0 %7148  ;;  %v7154_v54 = vpop.permute.xlu1 %7153 }
 0x519   : > { %v7151_v28 = vunpack.i.h.bf16 %v8922_v52  ;;  %v7150_v16 = vunpack.i.l.bf16 %v8922_v52  ;;  %v7156_v30 = vunpack.i.h.bf16 %v7154_v54  ;;  %v7155_v5 = vunpack.i.l.bf16 %v7154_v54  ;;  %v9016_v54 = vld [vmem:[%s10307_s3 + $0xe0] sm:$0xff]  }
 0x51b   : > { %v8931_v9 = vsel %vm858_vm5, %v8834_v38, %v7156_v30  ;;  %v2506_v21 = vsel %vm858_vm5, %v8840_v53, %v7155_v5  ;;  %v2511_v0 = vsel %vm858_vm5, %v2439_v18, %v7150_v16  ;;  %v2512_v40 = vsel %vm858_vm5, %v2441_v13, %v7151_v28  ;;  %v9025_v30 = vld [vmem:[%s10307_s3 + $0xa0] sm:$0xff]   ;;  %v9031_v5 = vld [vmem:[%s10307_s3 + $0xe8] sm:$0xff]   ;;  %v9043_v18 = vld [vmem:[%s10307_s3 + $0xf0] sm:$0xff]  }
 0x51c   : > { %v2523_v37 = vpack.c.bf16 %v8931_v9, %v2506_v21  ;;  %v2524_v1 = vpack.c.bf16 %v2512_v40, %v2511_v0  ;;  %v2518_v63 = vsel %vm858_vm5, %v2486_v45, %v7151_v28  ;;  %v9037_v28 = vld [vmem:[%s10307_s3 + $0xa8] sm:$0xff]   ;;  %v2489_v13 = vrot.slane %v8864_v10, 6  ;;  %v9050_v0 = vld [vmem:[%s10307_s3 + $0xb0] sm:$0xff]  }
 0x51d   : > { %v2491_v40 = vrot.slane %v8855_v24, 6 }
 0x51e   : > { %2579 = vmatprep.mubr.bf16.mxu1 %v2524_v1 }
 0x51f   : > { %2580 = vmatmul.mubr.bf16.vlgmr.msra.gmra.mrb[64].mxu1 %v2523_v37  ;;  %v9057_v37 = vld [vmem:[%s10307_s3 + $0xf8] sm:$0xff]   ;;  %v2492_v1 = vsel %vm559_vm0, %v2489_v13, %v2491_v40 }
 0x520   : > { %6614 = vmatpush3.bf16.msra.mxu1 %v8945_v7  ;;  %v8948_v53 = vpop.permute.xlu0 %7158  ;;  %v7164_v8 = vpop.permute.xlu1 %7163 }
 0x521   : > { %v7161_v47 = vunpack.i.h.bf16 %v8948_v53  ;;  %v7160_v60 = vunpack.i.l.bf16 %v8948_v53  ;;  %v7166_v51 = vunpack.i.h.bf16 %v7164_v8  ;;  %v7165_v41 = vunpack.i.l.bf16 %v7164_v8  ;;  %6615 = vmatprep.subr.bf16.mxu1 %v8955_v14  ;;  %v9065_v8 = vld [vmem:[%s10307_s3 + $0xb8] sm:$0xff]  }
 0x523   : > { %v2513_v15 = vsel %vm858_vm5, %v2443_v44, %v7160_v60  ;;  %v2514_v55 = vsel %vm858_vm5, %v2445_v2, %v7161_v47  ;;  %v8966_v17 = vsel %vm858_vm5, %v8836_v35, %v7165_v41  ;;  %v8970_v56 = vsel %vm858_vm5, %v8858_v11, %v7166_v51  ;;  %v9009_v35 = vld [vmem:[%s10307_s3 + $0x98] sm:$0xff]   ;;  %v7770_v41 = vld [vmem:[%s10305_s1] sm:$0xff]  }
 0x524   : > { %6616 = vmatpush3.bf16.msra.mxu1 %v8975_v33  ;;  %v7169_v57 = vpop.permute.xlu0 %7168  ;;  %v2529_v25 = vpack.c.bf16 %v2514_v55, %v2513_v15  ;;  %v2528_v42 = vpack.c.bf16 %v8970_v56, %v8966_v17  ;;  %v2519_v31 = vsel %vm858_vm5, %v2488_v6, %v7160_v60  ;;  %v7174_v52 = vpop.permute.xlu1 %7173  ;;  %v2490_v60 = vsel %vm559_vm0, %v2487_v59, %v2489_v13  ;;  %v7300_v59 = vld [vmem:[%s7967_s29 + $0x160] sm:$0xff]  }
 0x525   : > { %v7170_v49 = vunpack.i.l.bf16 %v7169_v57  ;;  %6617 = vmatprep.subr.bf16.mxu1 %v8983_v20  ;;  %v7171_v39 = vunpack.i.h.bf16 %v7169_v57  ;;  %v2526_v16 = vpack.c.bf16 %v2519_v31, %v2518_v63  ;;  %v7175_v21 = vunpack.i.l.bf16 %v7174_v52 }
 0x526   : > { %2587 = vmatprep.mubr.bf16.mxu1 %v2529_v25  ;;  %v2525_v51 = vpack.c.bf16 %v8966_v17, %v8931_v9  ;;  %v2520_v44 = vsel %vm858_vm5, %v2490_v60, %v7161_v47  ;;  %v7176_v2 = vunpack.i.h.bf16 %v7174_v52  ;;  %v7771_v9 = vld [vmem:[%s10305_s1 + $0x8] sm:$0xff]   ;;  %v7772_v47 = vld [vmem:[%s10305_s1 + $0x10] ss:$0 sps:$4 sm:$0x33]  }
 0x527   : > { %2588 = vmatmul.mubr.bf16.gmra.mrb[68].mxu1 %v2528_v42  ;;  %v2515_v36 = vsel %vm858_vm5, %v2444_v12, %v7170_v49  ;;  %v2510_v11 = vsel %vm858_vm5, %v8864_v10, %v7171_v39  ;;  %v2521_v62 = vsel %vm858_vm5, %v2492_v1, %v7175_v21  ;;  %v7299_v39 = vld [vmem:[%s7967_s29 + $0x158] sm:$0xff]  }
 0x528   : > { %6618 = vmatpush3.bf16.msra.mxu1 %v8991_v32  ;;  %v2534_v43 = vpack.c.bf16 %v2515_v36, %v2515_v36  ;;  %v2533_v38 = vpack.c.bf16 %v2510_v11, %v2510_v11  ;;  %v7179_v12 = vpop.permute.xlu0 %7178  ;;  %v2531_v15 = vpack.c.bf16 %v2521_v62, %v2520_v44  ;;  %v2516_v17 = vsel %vm858_vm5, %v8864_v10, %v7176_v2  ;;  %v7304_v36 = vld [vmem:[%s7967_s29 + $0x180] sm:$0xff]   ;;  %v7309_v11 = vld [vmem:[%s7967_s29 + $0x1a8] sm:$0xff]  }
 0x529   : > { %6619 = vmatprep.subr.bf16.mxu1 %v8998_v22  ;;  %v7180_v55 = vunpack.i.l.bf16 %v7179_v12  ;;  %v2530_v53 = vpack.c.bf16 %v2516_v17, %v8970_v56  ;;  %v7181_v25 = vunpack.i.h.bf16 %v7179_v12  ;;  %v7298_v56 = vld [vmem:[%s7967_s29 + $0x150] sm:$0xff]  }
 0x52a   : > { %2595 = vmatprep.mubr.bf16.mxu1 %v2534_v43  ;;  %v7306_v43 = vld [vmem:[%s7967_s29 + $0x190] sm:$0xff]  }
 0x52b   : > { %v2522_v57 = vsel %vm858_vm5, %v2491_v40, %v7180_v55  ;;  %v2517_v10 = vsel %vm858_vm5, %v8855_v24, %v7181_v25  ;;  %v7302_v24 = vld [vmem:[%s7967_s29 + $0x170] sm:$0xff]  }
 0x52c   : > { %6620 = vmatpush3.bf16.msra.mxu1 %v9009_v35  ;;  %v2536_v42 = vpack.c.bf16 %v2522_v57, %v2522_v57  ;;  %v2535_v49 = vpack.c.bf16 %v2517_v10, %v2517_v10 }
 0x52d   : > { %6621 = vmatprep.subr.bf16.mxu1 %v9016_v54 }
 0x52f   : > { %2596 = vmatmul.mubr.bf16.gmra.mrb[72].mxu1 %v2533_v38  ;;  %v7311_v38 = vld [vmem:[%s7967_s29 + $0x1b8] sm:$0xff]  }
 0x530   : > { %6622 = vmatpush3.bf16.msra.mxu1 %v9025_v30  ;;  %2634 = vmatprep.mubr.bf16.mxu1 %v2526_v16 }
 0x531   : > { %6623 = vmatprep.subr.bf16.mxu1 %v9031_v5 }
 0x534   : > { %6624 = vmatpush3.bf16.msra.mxu1 %v9037_v28 }
 0x535   : > { %6625 = vmatprep.subr.bf16.mxu1 %v9043_v18 }
 0x538   : > { %6626 = vmatpush3.bf16.msra.mxu1 %v9050_v0 }
 0x539   : > { %6627 = vmatprep.subr.bf16.mxu1 %v9057_v37 }
 0x53c   : > { %6628 = vmatpush3.bf16.msra.mxu1 %v9065_v8 }
 0x53d   : > { %6952 = vmatprep.subr.bf16.mxu1 %v7770_v41 }
 0x53f   : > { %2635 = vmatmul.mubr.bf16.vlgmr.msra.gmra.mrb[76].mxu1 %v2525_v51 }
 0x540   : > { %2642 = vmatprep.mubr.bf16.mxu1 %v2531_v15  ;;  %6953 = vmatpush3.bf16.msra.mxu1 %v7770_v41 }
 0x541   : > { %6954 = vmatprep.subr.bf16.mxu1 %v7771_v9 }
 0x544   : > { %6955 = vmatpush3.bf16.msra.mxu1 %v7771_v9 }
 0x545   : > { %7033 = vmatprep.subr.msk.bf16.mxu1 %vm559_vm0, %v7772_v47 }
 0x547   : > { %2643 = vmatmul.mubr.bf16.gmra.mrb[80].mxu1 %v2530_v53 }
 0x548   : > { %2650 = vmatprep.mubr.bf16.mxu1 %v2536_v42  ;;  %6957 = vmatpush3.bf16.msra.mxu1 %v7961_v3  ;;  %v7301_v3 = vld [vmem:[%s7967_s29 + $0x168] sm:$0xff]  }
 0x549   : > { %6986 = vmatprep.subr.bf16.mxu1 %v7838_v19 }
 0x54f   : > { %2651 = vmatmul.mubr.bf16.gmra.mrb[84].mxu1 %v2535_v49 }
 0x550   : > { %6958 = vmatprep.mubr.msk.bf16.mxu1 %vm516_vm1, %v7298_v56 }
 0x557   : > { %6959 = vmatmul.mubr.msk.bf16.vlgmr.msra.gmra.mrb[88].mxu1 %vm516_vm1, %v7299_v39  ;;  %v9132_v39 = vld [vmem:[%s10308_s4] ss:$0 sm:$0xff] }
 0x558   : > { %6962 = vmatprep.mubr.msk.bf16.mxu1 %vm516_vm1, %v7300_v59  ;;  %6987 = vmatpush3.bf16.msra.mxu1 %v8722_v46  ;;  %v7303_v46 = vld [vmem:[%s7967_s29 + $0x178] sm:$0xff]  }
 0x559   : > { %6988 = vmatprep.subr.bf16.mxu1 %v7838_v19 }
 0x55c   : > { %6989 = vmatpush3.bf16.msra.mxu1 %v8731_v23  ;;  %v7305_v23 = vld [vmem:[%s7967_s29 + $0x188] sm:$0xff]  }
 0x55d   : > { %6990 = vmatprep.subr.bf16.mxu1 %v7838_v19 }
 0x55f   : > { %6963 = vmatmul.mubr.msk.bf16.gmra.mrb[92].mxu1 %vm516_vm1, %v7301_v3 }
 0x560   : > { %6966 = vmatprep.mubr.msk.bf16.mxu1 %vm516_vm1, %v7302_v24  ;;  %6991 = vmatpush3.bf16.msra.mxu1 %v8740_v50  ;;  %v7308_v50 = vld [vmem:[%s7967_s29 + $0x1a0] sm:$0xff]  }
 0x561   : > { %6992 = vmatprep.subr.bf16.mxu1 %v7838_v19 }
 0x564   : > { %6993 = vmatpush3.bf16.msra.mxu1 %v8749_v58  ;;  %v7310_v58 = vld [vmem:[%s7967_s29 + $0x1b0] sm:$0xff]   ;;  %s7841_s29 = smov [#allocation2]  }
 0x565   : > { %s7778_s15 = sshll.u32 %s7841_s29, 4  ;;  %s7779_s15 = int_to_ptr.vmem [resolvable:$false] %s7778_s15 }
 0x567   : > { %6967 = vmatmul.mubr.msk.bf16.gmra.mrb[96].mxu1 %vm516_vm1, %v7303_v46 }
 0x568   : > { %6970 = vmatprep.mubr.msk.bf16.mxu1 %vm516_vm1, %v7304_v36 }
 0x56f   : > { %6971 = vmatmul.mubr.msk.bf16.gmra.mrb[100].mxu1 %vm516_vm1, %v7305_v23 }
 0x570   : > { %6974 = vmatprep.mubr.msk.bf16.mxu1 %vm516_vm1, %v7306_v43 }
 0x577   : > { %6975 = vmatmul.mubr.msk.bf16.gmra.mrb[104].mxu1 %vm516_vm1, %v7307_v34 }
 0x578   : > { %6978 = vmatprep.mubr.msk.bf16.mxu1 %vm516_vm1, %v7308_v50 }
 0x57c   : > { %v2691_v26 = vpop.f32.mrb[92].mxu0 }
 0x57d   : > { %v6942_v6 = vpop.f32.mrb[93].mxu0 }
 0x57e   : > { %v2694_v31 = vpop.f32.mrb[94].mxu0 }
 0x57f   : > { %6979 = vmatmul.mubr.msk.bf16.gmra.mrb[108].mxu1 %vm516_vm1, %v7309_v11  ;;  %v6943_v45 = vpop.f32.mrb[95].mxu0 }
 0x580   : > { %6982 = vmatprep.mubr.msk.bf16.mxu1 %vm516_vm1, %v7310_v58 }
 0x584   : > { %v2699_v63 = vpop.f32.mrb[96].mxu0 }
 0x585   : > { %v6946_v16 = vpop.f32.mrb[97].mxu0 }
 0x586   : > { %v2702_v52 = vpop.f32.mrb[98].mxu0 }
 0x587   : > { %6983 = vmatmul.mubr.msk.bf16.gmra.mrb[112].mxu1 %vm516_vm1, %v7311_v38  ;;  %v6947_v13 = vpop.f32.mrb[99].mxu0 }
 0x588   : > { %6994 = vmatprep.mubr.msk.bf16.mxu1 %vm7839_vm2, %v7838_v19 }
 0x58c   : > { %v2707_v21 = vpop.f32.mrb[100].mxu0 }
 0x58d   : > { %v6950_v40 = vpop.f32.mrb[101].mxu0 }
 0x58e   : > { %v2709_v1 = vpop.f32.mrb[102].mxu0 }
 0x58f   : > { %v6951_v62 = vpop.f32.mrb[103].mxu0 }
 0x5f2   : > { %v6595_v12 = vpop.f32.mrb[64].mxu1 }
 0x5f3   : > { %v6596_v60 = vpop.f32.mrb[65].mxu1 }
 0x5f4   : > { %v6597_v51 = vadd.f32 %v6596_v60, %v6595_v12  ;;  %v6598_v41 = vpop.f32.mrb[66].mxu1 }
 0x5f5   : > { %v6599_v44 = vpop.f32.mrb[67].mxu1 }
 0x5f6   : > { %v6600_v2 = vadd.f32 %v6599_v44, %v6598_v41  ;;  %v2582_v59 = vadd.f32 %v9132_v39, %v6597_v51 }
 0x5f8   : > { %v2585_v36 = vadd.f32 %v9132_v39, %v6600_v2 }
 0x5fa   : > { %v6601_v15 = vpop.f32.mrb[68].mxu1 }
 0x5fb   : > { %v6602_v55 = vpop.f32.mrb[69].mxu1 }
 0x5fc   : > { %v6603_v9 = vadd.f32 %v6602_v55, %v6601_v15  ;;  %v6604_v17 = vpop.f32.mrb[70].mxu1 }
 0x5fd   : > { %v6605_v57 = vpop.f32.mrb[71].mxu1 }
 0x5fe   : > { %v6606_v53 = vadd.f32 %v6605_v57, %v6604_v17  ;;  %v2590_v38 = vadd.f32 %v9132_v39, %v6603_v9 }
 0x600   : > { %v2593_v40 = vadd.f32 %v9132_v39, %v6606_v53 }
 0x602   : > { %v6607_v47 = vpop.f32.mrb[72].mxu1 }
 0x603   : > { %v6608_v25 = vpop.f32.mrb[73].mxu1 }
 0x604   : > { %v6610_v42 = vpop.f32.mrb[74].mxu1 }
 0x605   : > { %v6611_v10 = vpop.f32.mrb[75].mxu1 }
 0x612   : > { %v6629_v56 = vpop.f32.mrb[76].mxu1 }
 0x613   : > { %v6630_v49 = vpop.f32.mrb[77].mxu1 }
 0x614   : > { %v6631_v3 = vadd.f32 %v6630_v49, %v6629_v56  ;;  %v6632_v24 = vpop.f32.mrb[78].mxu1 }
 0x615   : > { %v6633_v46 = vpop.f32.mrb[79].mxu1 }
 0x616   : > { %v2637_v23 = vadd.f32 %v6631_v3, %v2582_v59  ;;  %v6634_v43 = vadd.f32 %v6633_v46, %v6632_v24 }
 0x618   : > { %v2692_v34 = vadd.f32 %v2691_v26, %v2637_v23  ;;  %v2640_v50 = vadd.f32 %v6634_v43, %v2585_v36 }
 0x61a   : > { %v2712_v11 = vmax.f32 %v2692_v34, 0.0  ;;  %v2695_v58 = vadd.f32 %v2694_v31, %v2640_v50  ;;  %v6635_v6 = vpop.f32.mrb[80].mxu1 }
 0x61b   : > { %v6636_v45 = vpop.f32.mrb[81].mxu1 }
 0x61c   : > { %v2713_v16 = vmax.f32 %v2695_v58, 0.0  ;;  %v6637_v13 = vadd.f32 %v6636_v45, %v6635_v6  ;;  %v6638_v21 = vpop.f32.mrb[82].mxu1  ;;  %v2718_v62 = vrot.slane %v2712_v11, 7 }
 0x61d   : > { %v6639_v1 = vpop.f32.mrb[83].mxu1 }
 0x61e   : > { %v2719_v12 = vrot.slane %v2713_v16, 7  ;;  %v2645_v60 = vadd.f32 %v6637_v13, %v2590_v38  ;;  %v6640_v51 = vadd.f32 %v6639_v1, %v6638_v21 }
 0x620   : > { %v2720_v41 = vsel %vm802_vm3, %v2718_v62, %v2719_v12  ;;  %v2700_v26 = vadd.f32 %v2699_v63, %v2645_v60  ;;  %v2648_v44 = vadd.f32 %v6640_v51, %v2593_v40 }
 0x621   : > { %v2722_v2 = vmax.f32 %v2712_v11, %v2720_v41 }
 0x622   : > { %v2714_v31 = vmax.f32 %v2700_v26, 0.0  ;;  %v2703_v15 = vadd.f32 %v2702_v52, %v2648_v44  ;;  %v6641_v55 = vpop.f32.mrb[84].mxu1 }
 0x623   : > { %v6642_v17 = vpop.f32.mrb[85].mxu1  ;;  %v2724_v9 = vrot.slane %v2722_v2, 1 }
 0x624   : > { %v2729_v57 = vrot.slane %v2714_v31, 7  ;;  %v2715_v47 = vmax.f32 %v2703_v15, 0.0  ;;  %v6644_v25 = vpop.f32.mrb[86].mxu1 }
 0x625   : > { %v6645_v42 = vpop.f32.mrb[87].mxu1  ;;  %v2726_v53 = vmax.f32 %v2722_v2, %v2724_v9 }
 0x626   : > { %v2734_v10 = vmax.f32 %v2713_v16, %v2729_v57  ;;  %v2730_v56 = vrot.slane %v2715_v47, 7 }
 0x627   : > { %v3433_v49 = vrot.slane %v2726_v53, 6  ;;  %v9141_v59 = vsel %vm559_vm0, %v8784_v4, %v2726_v53 }
 0x628   : > { %v2737_v63 = vrot.slane %v2734_v10, 1  ;;  %v2731_v3 = vsel %vm802_vm3, %v2729_v57, %v2730_v56 }
 0x629   : > { %v2735_v24 = vmax.f32 %v2714_v31, %v2731_v3  ;;  %v9146_v52 = vsel %vm559_vm0, %v8787_v61, %v3433_v49 }
 0x62a   : > { %v2739_v46 = vmax.f32 %v2734_v10, %v2737_v63  ;;  %v6960_v36 = vpop.f32.mrb[88].mxu1 }
 0x62b   : > { %v2741_v23 = vrot.slane %v2735_v24, 1  ;;  %v2923_v43 = vpop.f32.mrb[89].mxu1  ;;  %v2932_v44 = vadd.f32 %v8800_v29, %v6960_v36 }
 0x62c   : > { %v6082_v34 = vrot.slane %v2739_v46, 12  ;;  %v6961_v50 = vpop.f32.mrb[90].mxu1  ;;  %v2924_v61 = vadd.f32 %v8800_v29, %v2923_v43 }
 0x62d   : > { %v2926_v11 = vpop.f32.mrb[91].mxu1  ;;  %v2743_v58 = vmax.f32 %v2735_v24, %v2741_v23  ;;  %v2935_v12 = vadd.f32 %v8800_v29, %v6961_v50  ;;  %v3036_v56 = vmax.f32 %v2932_v44, 0.0 }
 0x62e   : > { %v9150_v4 = vsel %vm559_vm0, %v8791_v48, %v6082_v34  ;;  %v3034_v1 = vmax.f32 %v2924_v61, 0.0  ;;  %v2927_v48 = vadd.f32 %v8800_v29, %v2926_v11 }
 0x62f   : > { %v3436_v6 = vrot.slane %v2743_v58, 6  ;;  %v3037_v15 = vmax.f32 %v2935_v12, 0.0 }
 0x630   : > { %v3035_v57 = vmax.f32 %v2927_v48, 0.0 }
 0x631   : > { %v9154_v45 = vsel %vm559_vm0, %v8795_v27, %v3436_v6 }
 0x632   : > { %v6964_v38 = vpop.f32.mrb[92].mxu1 }
 0x633   : > { %v2939_v16 = vpop.f32.mrb[93].mxu1  ;;  %v2948_v43 = vadd.f32 %v8800_v29, %v6964_v38 }
 0x634   : > { %v6965_v13 = vpop.f32.mrb[94].mxu1  ;;  %v2940_v27 = vadd.f32 %v8800_v29, %v2939_v16 }
 0x635   : > { %v2951_v21 = vadd.f32 %v8800_v29, %v6965_v13  ;;  %v2942_v40 = vpop.f32.mrb[95].mxu1  ;;  %v3040_v16 = vmax.f32 %v2948_v43, 0.0 }
 0x636   : > { %v3038_v42 = vmax.f32 %v2940_v27, 0.0  ;;  %v2943_v24 = vadd.f32 %v8800_v29, %v2942_v40 }
 0x637   : > { %v3041_v62 = vmax.f32 %v2951_v21, 0.0 }
 0x638   : > { %v3039_v58 = vmax.f32 %v2943_v24, 0.0 }
 0x639   : > { %v9159_v60 = vmax.f32 %v3034_v1, %v3041_v62 }
 0x63a   : > { %v6968_v51 = vpop.f32.mrb[96].mxu1 }
 0x63b   : > { %v2964_v41 = vadd.f32 %v8800_v29, %v6968_v51  ;;  %v2955_v26 = vpop.f32.mrb[97].mxu1 }
 0x63c   : > { %v2956_v2 = vadd.f32 %v8800_v29, %v2955_v26  ;;  %v6969_v31 = vpop.f32.mrb[98].mxu1 }
 0x63d   : > { %v3044_v55 = vmax.f32 %v2964_v41, 0.0  ;;  %v2967_v17 = vadd.f32 %v8800_v29, %v6969_v31  ;;  %v2958_v9 = vpop.f32.mrb[99].mxu1 }
 0x63e   : > { %v3042_v47 = vmax.f32 %v2956_v2, 0.0  ;;  %v2959_v25 = vadd.f32 %v8800_v29, %v2958_v9 }
 0x63f   : > { %v9168_v53 = vmax.f32 %v3037_v15, %v3044_v55  ;;  %v3045_v10 = vmax.f32 %v2967_v17, 0.0 }
 0x640   : > { %v3063_v49 = vmax.f32 %v3035_v57, %v3042_v47  ;;  %v3043_v63 = vmax.f32 %v2959_v25, 0.0 }
 0x641   : > { %v9170_v3 = vmax.f32 %v3038_v42, %v3045_v10 }
 0x642   : > { %v3064_v46 = vmax.f32 %v3036_v56, %v3043_v63  ;;  %v6972_v36 = vpop.f32.mrb[100].mxu1 }
 0x643   : > { %v2971_v23 = vpop.f32.mrb[101].mxu1  ;;  %v2980_v44 = vadd.f32 %v8800_v29, %v6972_v36 }
 0x644   : > { %v2972_v34 = vadd.f32 %v8800_v29, %v2971_v23  ;;  %v6973_v50 = vpop.f32.mrb[102].mxu1 }
 0x645   : > { %v2974_v11 = vpop.f32.mrb[103].mxu1  ;;  %v2983_v51 = vadd.f32 %v8800_v29, %v6973_v50  ;;  %v3048_v24 = vmax.f32 %v2980_v44, 0.0 }
 0x646   : > { %v3046_v6 = vmax.f32 %v2972_v34, 0.0  ;;  %v2975_v61 = vadd.f32 %v8800_v29, %v2974_v11 }
 0x647   : > { %v3049_v31 = vmax.f32 %v2983_v51, 0.0 }
 0x648   : > { %v3067_v13 = vmax.f32 %v3039_v58, %v3046_v6  ;;  %v3047_v21 = vmax.f32 %v2975_v61, 0.0 }
 0x64a   : > { %v9176_v1 = vmax.f32 %v3040_v16, %v3047_v21  ;;  %v6976_v62 = vpop.f32.mrb[104].mxu1 }
 0x64b   : > { %v2987_v40 = vpop.f32.mrb[105].mxu1  ;;  %v2996_v9 = vadd.f32 %v8800_v29, %v6976_v62 }
 0x64c   : > { %v6977_v12 = vpop.f32.mrb[106].mxu1  ;;  %v2988_v38 = vadd.f32 %v8800_v29, %v2987_v40 }
 0x64d   : > { %v2990_v48 = vpop.f32.mrb[107].mxu1  ;;  %v2999_v47 = vadd.f32 %v8800_v29, %v6977_v12  ;;  %v3052_v34 = vmax.f32 %v2996_v9, 0.0 }
 0x64e   : > { %v3050_v57 = vmax.f32 %v2988_v38, 0.0  ;;  %v2991_v42 = vadd.f32 %v8800_v29, %v2990_v48 }
 0x64f   : > { %v3053_v50 = vmax.f32 %v2999_v47, 0.0 }
 0x650   : > { %v3051_v6 = vmax.f32 %v2991_v42, 0.0 }
 0x652   : > { %v6980_v27 = vpop.f32.mrb[108].mxu1 }
 0x653   : > { %v3012_v41 = vadd.f32 %v8800_v29, %v6980_v27  ;;  %v3003_v26 = vpop.f32.mrb[109].mxu1 }
 0x654   : > { %v6981_v2 = vpop.f32.mrb[110].mxu1  ;;  %v3004_v56 = vadd.f32 %v8800_v29, %v3003_v26 }
 0x655   : > { %v3056_v15 = vmax.f32 %v3012_v41, 0.0  ;;  %v3015_v55 = vadd.f32 %v8800_v29, %v6981_v2  ;;  %v3006_v17 = vpop.f32.mrb[111].mxu1 }
 0x656   : > { %v3007_v25 = vadd.f32 %v8800_v29, %v3006_v17  ;;  %v3054_v61 = vmax.f32 %v3004_v56, 0.0 }
 0x657   : > { %v3070_v10 = vmax.f32 %v3049_v31, %v3056_v15  ;;  %v3057_v63 = vmax.f32 %v3015_v55, 0.0 }
 0x658   : > { %v3055_v36 = vmax.f32 %v3007_v25, 0.0 }
 0x659   : > { %v9188_v23 = vmax.f32 %v3063_v49, %v3070_v10  ;;  %v3071_v43 = vmax.f32 %v3050_v57, %v3057_v63 }
 0x65a   : > { %v3069_v11 = vmax.f32 %v3048_v24, %v3055_v36  ;;  %v6984_v58 = vpop.f32.mrb[112].mxu1 }
 0x65b   : > { %v9190_v16 = vmax.f32 %v3064_v46, %v3071_v43  ;;  %v3028_v21 = vadd.f32 %v8800_v29, %v6984_v58  ;;  %v3019_v62 = vpop.f32.mrb[113].mxu1  ;;  %v3127_v49 = vrot.slane %v9188_v23, 7  ;;  %v3089_v51 = vrot.slane %v9188_v23, 1 }
 0x65c   : > { %v9194_v40 = vmax.f32 %v9159_v60, %v3069_v11  ;;  %v3020_v12 = vadd.f32 %v8800_v29, %v3019_v62  ;;  %v6985_v48 = vpop.f32.mrb[114].mxu1 }
 0x65d   : > { %v3060_v38 = vmax.f32 %v3028_v21, 0.0  ;;  %v3031_v27 = vadd.f32 %v8800_v29, %v6985_v48  ;;  %v3022_v41 = vpop.f32.mrb[115].mxu1  ;;  %v3129_v46 = vrot.slane %v9190_v16, 7  ;;  %v3091_v26 = vrot.slane %v9190_v16, 1 }
 0x65e   : > { %v3058_v44 = vmax.f32 %v3020_v12, 0.0  ;;  %v3023_v2 = vadd.f32 %v8800_v29, %v3022_v41  ;;  %v3126_v60 = vrot.slane %v9194_v40, 7  ;;  %v3088_v31 = vrot.slane %v9194_v40, 1 }
 0x65f   : > { %v3074_v15 = vmax.f32 %v3053_v50, %v3060_v38  ;;  %v3061_v55 = vmax.f32 %v3031_v27, 0.0  ;;  %v3130_v17 = vsel %vm802_vm3, %v3127_v49, %v3129_v46  ;;  %v3092_v9 = vsel %vm762_vm4, %v3089_v51, %v3091_v26 }
 0x660   : > { %v3072_v57 = vmax.f32 %v3051_v6, %v3058_v44  ;;  %v3059_v47 = vmax.f32 %v3023_v2, 0.0  ;;  %v3128_v25 = vsel %vm802_vm3, %v3126_v60, %v3127_v49  ;;  %v3090_v42 = vsel %vm762_vm4, %v3088_v31, %v3089_v51  ;;  %v7315_v44 = vld [vmem:[%s10309_s5 + $0x8] ss:$16 sps:$4 sm:$0xff]   ;;  %v7317_v2 = vld [vmem:[%s10309_s5 + $0xc] ss:$16 sps:$4 sm:$0xff]  }
 0x661   : > { %v9209_v10 = vmax.f32 %v3067_v13, %v3074_v15  ;;  %v3075_v56 = vmax.f32 %v3054_v61, %v3061_v55  ;;  %v7182_v29 = vpack.i.bf16 %v3130_v17, %v3128_v25  ;;  %v7187_v63 = vpack.i.bf16 %v3092_v9, %v3090_v42  ;;  %v7323_v60 = vld [vmem:[%s10309_s5 + $0x2c] ss:$16 sps:$4 sm:$0xff]   ;;  %4339 = vmatprep.subr.bf16.mxu1 %v7317_v2 }
 0x662   : > { %v9212_v24 = vmax.f32 %v9168_v53, %v3072_v57  ;;  %v3073_v36 = vmax.f32 %v3052_v34, %v3059_v47  ;;  %v3112_v31 = vrot.slane %v9194_v40, 2  ;;  %v3115_v15 = vrot.slane %v9190_v16, 2 }
 0x663   : > { %v3082_v43 = vmax.f32 %v9176_v1, %v3075_v56  ;;  %7183 = vrot.lane.b32.xlu1 %v7182_v29, %s10322_s16  ;;  %7188 = vrot.lane.b32.xlu0 %v7187_v63, %s10322_s16  ;;  %v3151_v34 = vrot.slane %v9209_v10, 1  ;;  %v3113_v9 = vrot.slane %v9188_v23, 2 }
 0x664   : > { %v9218_v50 = vmax.f32 %v9170_v3, %v3073_v36  ;;  %v3202_v13 = vpack.c.bf16 %v9212_v24, %v9190_v16  ;;  %v3131_v11 = vrot.slane %v9212_v24, 7  ;;  %v3093_v58 = vrot.slane %v9212_v24, 1 }
 0x665   : > { %v3173_v3 = vrot.slane %v9209_v10, 7  ;;  %v3114_v56 = vsel %vm787_vm6, %v3112_v31, %v3113_v9  ;;  %v3116_v29 = vsel %vm787_vm6, %v3113_v9, %v3115_v15  ;;  %v7320_v9 = vld [vmem:[%s10309_s5 + $0x24] ss:$16 sps:$4 sm:$0xff]  }
 0x666   : > { %6995 = vmatmul.mubr.msk.bf16.vlgmr.msra.gmra.mrb[116].mxu1 %vm858_vm5, %v3202_v13  ;;  %v3133_v53 = vrot.slane %v9218_v50, 7  ;;  %v3095_v1 = vrot.slane %v9218_v50, 1  ;;  %v3132_v6 = vsel %vm802_vm3, %v3129_v46, %v3131_v11  ;;  %v3094_v21 = vsel %vm762_vm4, %v3091_v26, %v3093_v58 }
 0x667   : > { %6998 = vmatprep.mubr.msk.bf16.mxu1 %vm7839_vm2, %v7838_v19  ;;  %v3207_v38 = vpack.c.bf16 %v9209_v10, %v9218_v50  ;;  %v7212_v46 = vpack.i.bf16 %v3151_v34, %v3173_v3  ;;  %v3212_v26 = vpack.c.bf16 %v3082_v43, %v3082_v43  ;;  %4340 = vmatpush1.bf16.msra.mxu1 %v7315_v44 }
 0x668   : > { %v3134_v61 = vsel %vm802_vm3, %v3131_v11, %v3133_v53  ;;  %v3096_v62 = vsel %vm762_vm4, %v3093_v58, %v3095_v1  ;;  %v3152_v49 = vsel %vm762_vm4, %v3095_v1, %v3151_v34  ;;  %v3174_v51 = vsel %vm802_vm3, %v3133_v53, %v3173_v3  ;;  %4341 = vmatprep.subr.bf16.mxu1 %v7323_v60 }
 0x669   : > { %v7192_v12 = vpack.i.bf16 %v3134_v61, %v3132_v6  ;;  %v7197_v48 = vpack.i.bf16 %v3096_v62, %v3094_v21  ;;  %v7202_v27 = vpack.i.bf16 %v3095_v1, %v3133_v53  ;;  %v7207_v41 = vpack.i.bf16 %v3152_v49, %v3174_v51 }
 0x66a   : > { %v3117_v53 = vrot.slane %v9212_v24, 2  ;;  %v3119_v1 = vrot.slane %v9218_v50, 2  ;;  %v3160_v60 = vrot.slane %v9190_v16, 6 }
 0x66b   : > { %7193 = vrot.lane.b32.xlu1 %v7192_v12, %s10322_s16  ;;  %7198 = vrot.lane.b32.xlu0 %v7197_v48, %s10322_s16 }
 0x66c   : > { %v3118_v62 = vsel %vm787_vm6, %v3115_v15, %v3117_v53  ;;  %v3120_v12 = vsel %vm787_vm6, %v3117_v53, %v3119_v1  ;;  %v7329_v53 = vld [vmem:[%s10309_s5 + $0x4c] ss:$16 sps:$4 sm:$0xff]  }
 0x66e   : > { %6999 = vmatmul.mubr.msk.bf16.gmra.mrb[120].mxu1 %vm858_vm5, %v3207_v38 }
 0x66f   : > { %7203 = vrot.lane.b32.xlu1 %v7202_v27, %s10322_s16  ;;  %7208 = vrot.lane.b32.xlu0 %v7207_v41, %s10322_s16 }
 0x670   : > { %7002 = vmatprep.mubr.msk.bf16.mxu1 %vm7839_vm2, %v7838_v19  ;;  %v7321_v19 = vld [vmem:[%s10309_s5 + $0x28] ss:$16 sps:$4 sm:$0xff]  }
 0x671   : > { %4342 = vmatpush1.bf16.msra.mxu1 %v7321_v19 }
 0x672   : > { %4343 = vmatprep.subr.bf16.mxu1 %v7329_v53  ;;  %v7396_v53 = vld [vmem:[%s10309_s5 + $0x1c0] ss:$16 sps:$4 sm:$0xff]  }
 0x673   : > { %7213 = vrot.lane.b32.xlu1 %v7212_v46, %s10322_s16  ;;  %s380_s16 = sand.u32 1, %s7828_s18  }
 0x674   : > { %s5827_s22 = sshll.u32 %s380_s16, 2  ;;  %s5751_s14 = scalar_lea.sflag [#allocation3], %s380_s16 }
 0x675   : > { %s382_s0 = scalar_lea.vmem [#allocation2], %s5827_s22  ;;  %s7780_s22 = scalar_lea.vmem %s7779_s15, 128 }
 0x676   : > { %7003 = vmatmul.mubr.msk.bf16.gmra.mrb[124].mxu1 %vm858_vm5, %v3212_v26  ;;  %v3162_v26 = vrot.slane %v9212_v24, 6  ;;  %s5764_s25 = sshll.u32 %s382_s0, 4  ;;  %s10264_s25 = int_to_ptr.vmem [resolvable:$true] %s5764_s25 }
 0x677   : > { %s7774_s21 = scalar_lea.vmem %s10264_s25, 64  ;;  %p7781_p0 = scmp.lt.s32.totalorder %s10264_s25, %s7779_s15 }
 0x678   : > { %v3163_v19 = vsel %vm559_vm0, %v3160_v60, %v3162_v26  ;;  %p7775_p11 = scmp.ne.s32.totalorder %s10264_s25, %s7774_s21  ;;  %p7782_p1 = scmp.lt.s32.totalorder %s7780_s22, %s7774_s21 }
 0x67a   : > { %p7776_p12 = pnand %p7775_p11, %p7940_p5  ;;  %p7783_p2 = por %p7782_p1, %p7781_p0 }
 0x67c   : > { %p7777_p13 = pneg %p7776_p12 }
 0x67e   : > { %p7784_p3 = pnand %p7783_p2, %p7777_p13 }
 0x6d5   : > { %v7184_v55 = vpop.permute.xlu1 %7183  ;;  %v7189_v17 = vpop.permute.xlu0 %7188 }
 0x6d6   : > { %v7186_v57 = vunpack.i.h.bf16 %v7184_v55  ;;  %v7185_v47 = vunpack.i.l.bf16 %v7184_v55  ;;  %v7191_v25 = vunpack.i.h.bf16 %v7189_v17  ;;  %v7190_v42 = vunpack.i.l.bf16 %v7189_v17 }
 0x6d8   : > { %v9267_v63 = vsel %vm858_vm5, %v9188_v23, %v7191_v25  ;;  %v3181_v36 = vsel %vm858_vm5, %v9194_v40, %v7190_v42  ;;  %v3186_v43 = vsel %vm858_vm5, %v3114_v56, %v7185_v47  ;;  %v3187_v13 = vsel %vm858_vm5, %v3116_v29, %v7186_v57 }
 0x6d9   : > { %v3198_v11 = vpack.c.bf16 %v9267_v63, %v3181_v36  ;;  %v3199_v58 = vpack.c.bf16 %v3187_v13, %v3186_v43 }
 0x6db   : > { %3254 = vmatprep.mubr.bf16.mxu0 %v3199_v58  ;;  %v7327_v58 = vld [vmem:[%s10309_s5 + $0x48] ss:$16 sps:$4 sm:$0xff]  }
 0x6dc   : > { %3255 = vmatmul.mubr.bf16.vlgmr.msra.gmra.mrb[104].mxu0 %v3198_v11  ;;  %v7324_v11 = vld [vmem:[%s10309_s5 + $0x40] ss:$16 sps:$4 sm:$0xff]   ;;  %4344 = vmatpush1.bf16.msra.mxu1 %v7327_v58  ;;  %v7401_v58 = vld [vmem:[%s10309_s5 + $0x1cc] ss:$16 sps:$4 sm:$0xff]  }
 0x6dd   : > { %6706 = vmatpush3.bf16.msra.mxu0 %v8945_v7  ;;  %v7194_v34 = vpop.permute.xlu1 %7193  ;;  %v7199_v3 = vpop.permute.xlu0 %7198 }
 0x6de   : > { %v7196_v6 = vunpack.i.h.bf16 %v7194_v34  ;;  %v7195_v61 = vunpack.i.l.bf16 %v7194_v34  ;;  %v7201_v40 = vunpack.i.h.bf16 %v7199_v3  ;;  %v7200_v21 = vunpack.i.l.bf16 %v7199_v3  ;;  %6707 = vmatprep.subr.bf16.mxu0 %v8955_v14  ;;  %v7335_v34 = vld [vmem:[%s10309_s5 + $0x6c] ss:$16 sps:$4 sm:$0xff]   ;;  %v7333_v3 = vld [vmem:[%s10309_s5 + $0x68] ss:$16 sps:$4 sm:$0xff]  }
 0x6df   : > { %4345 = vmatprep.subr.bf16.mxu1 %v7335_v34  ;;  %v7404_v34 = vld [vmem:[%s10309_s5 + $0x1e4] ss:$16 sps:$4 sm:$0xff]  }
 0x6e0   : > { %v3188_v48 = vsel %vm858_vm5, %v3118_v62, %v7195_v61  ;;  %v3189_v49 = vsel %vm858_vm5, %v3120_v12, %v7196_v6  ;;  %v3183_v51 = vsel %vm858_vm5, %v9190_v16, %v7200_v21  ;;  %v9286_v7 = vsel %vm858_vm5, %v9212_v24, %v7201_v40  ;;  %4346 = vmatpush1.bf16.msra.mxu1 %v7333_v3  ;;  %v7336_v21 = vld [vmem:[%s10309_s5 + $0x80] ss:$16 sps:$4 sm:$0xff]   ;;  %v7338_v62 = vld [vmem:[%s10309_s5 + $0x84] ss:$16 sps:$4 sm:$0xff]   ;;  %v7405_v3 = vld [vmem:[%s10309_s5 + $0x1e8] ss:$16 sps:$4 sm:$0xff]  }
 0x6e1   : > { %6708 = vmatpush3.bf16.msra.mxu0 %v8975_v33  ;;  %v7204_v38 = vpop.permute.xlu1 %7203  ;;  %v3204_v27 = vpack.c.bf16 %v3189_v49, %v3188_v48  ;;  %v3203_v14 = vpack.c.bf16 %v9286_v7, %v3183_v51  ;;  %v3194_v24 = vsel %vm858_vm5, %v3163_v19, %v7195_v61  ;;  %v3200_v17 = vpack.c.bf16 %v3183_v51, %v9267_v63  ;;  %v7339_v48 = vld [vmem:[%s10309_s5 + $0x88] ss:$16 sps:$4 sm:$0xff]   ;;  %v7341_v49 = vld [vmem:[%s10309_s5 + $0x8c] ss:$16 sps:$4 sm:$0xff]   ;;  %v7344_v51 = vld [vmem:[%s10309_s5 + $0xa4] ss:$16 sps:$4 sm:$0xff]  }
 0x6e2   : > { %v7205_v41 = vunpack.i.l.bf16 %v7204_v38  ;;  %6709 = vmatprep.subr.bf16.mxu0 %v8983_v20  ;;  %v7206_v46 = vunpack.i.h.bf16 %v7204_v38  ;;  %v3159_v20 = vrot.slane %v9188_v23, 6  ;;  %v7209_v23 = vpop.permute.xlu0 %7208  ;;  %4347 = vmatprep.subr.bf16.mxu1 %v7341_v49  ;;  %v7347_v38 = vld [vmem:[%s10309_s5 + $0xac] ss:$16 sps:$4 sm:$0xff]  }
 0x6e3   : > { %3262 = vmatprep.mubr.bf16.mxu0 %v3204_v27  ;;  %v7210_v15 = vunpack.i.l.bf16 %v7209_v23  ;;  %v7345_v27 = vld [vmem:[%s10309_s5 + $0xa8] ss:$16 sps:$4 sm:$0xff]   ;;  %v7359_v19 = vld [vmem:[%s10309_s5 + $0xec] ss:$16 sps:$4 sm:$0xff]  }
 0x6e4   : > { %3263 = vmatmul.mubr.bf16.gmra.mrb[108].mxu0 %v3203_v14  ;;  %v3190_v44 = vsel %vm858_vm5, %v3119_v1, %v7205_v41  ;;  %v3185_v33 = vsel %vm858_vm5, %v9218_v50, %v7206_v46  ;;  %v3161_v31 = vsel %vm559_vm0, %v3159_v20, %v3160_v60  ;;  %v7330_v1 = vld [vmem:[%s10309_s5 + $0x60] ss:$16 sps:$4 sm:$0xff]   ;;  %4348 = vmatpush1.bf16.msra.mxu1 %v7339_v48  ;;  %v7350_v14 = vld [vmem:[%s10309_s5 + $0xc4] ss:$16 sps:$4 sm:$0xff]   ;;  %v7353_v46 = vld [vmem:[%s10309_s5 + $0xcc] ss:$16 sps:$4 sm:$0xff]  }
 0x6e5   : > { %6710 = vmatpush3.bf16.msra.mxu0 %v8991_v32  ;;  %v3209_v2 = vpack.c.bf16 %v3190_v44, %v3190_v44  ;;  %v3208_v32 = vpack.c.bf16 %v3185_v33, %v3185_v33  ;;  %v3193_v16 = vsel %vm858_vm5, %v3161_v31, %v7186_v57  ;;  %v7211_v57 = vunpack.i.h.bf16 %v7209_v23  ;;  %4349 = vmatprep.subr.bf16.mxu1 %v7347_v38  ;;  %v7348_v44 = vld [vmem:[%s10309_s5 + $0xc0] ss:$16 sps:$4 sm:$0xff]   ;;  %v7351_v60 = vld [vmem:[%s10309_s5 + $0xc8] ss:$16 sps:$4 sm:$0xff]   ;;  %v7356_v33 = vld [vmem:[%s10309_s5 + $0xe4] ss:$16 sps:$4 sm:$0xff]  }
 0x6e6   : > { %6711 = vmatprep.subr.bf16.mxu0 %v8998_v22  ;;  %v3201_v22 = vpack.c.bf16 %v3194_v24, %v3193_v16  ;;  %v7354_v24 = vld [vmem:[%s10309_s5 + $0xe0] ss:$16 sps:$4 sm:$0xff]   ;;  %v7357_v31 = vld [vmem:[%s10309_s5 + $0xe8] ss:$16 sps:$4 sm:$0xff]   ;;  %v7365_v16 = vld [vmem:[%s10309_s5 + $0x10c] ss:$16 sps:$4 sm:$0xff]  }
 0x6e7   : > { %3270 = vmatprep.mubr.bf16.mxu0 %v3209_v2  ;;  %v3191_v42 = vsel %vm858_vm5, %v9218_v50, %v7211_v57  ;;  %v7380_v57 = vld [vmem:[%s10309_s5 + $0x164] ss:$16 sps:$4 sm:$0xff]  }
 0x6e8   : > { %v3205_v29 = vpack.c.bf16 %v3191_v42, %v9286_v7  ;;  %v7342_v7 = vld [vmem:[%s10309_s5 + $0xa0] ss:$16 sps:$4 sm:$0xff]   ;;  %4350 = vmatpush1.bf16.msra.mxu1 %v7345_v27  ;;  %v7386_v42 = vld [vmem:[%s10309_s5 + $0x184] ss:$16 sps:$4 sm:$0xff]  }
 0x6e9   : > { %6712 = vmatpush3.bf16.msra.mxu0 %v9009_v35  ;;  %v3164_v35 = vrot.slane %v9218_v50, 6  ;;  %v7326_v50 = vld [vmem:[%s10309_s5 + $0x44] ss:$16 sps:$4 sm:$0xff]   ;;  %4351 = vmatprep.subr.bf16.mxu1 %v7353_v46 }
 0x6ea   : > { %6713 = vmatprep.subr.bf16.mxu0 %v9016_v54  ;;  %v3166_v54 = vrot.slane %v9209_v10, 6 }
 0x6ec   : > { %3271 = vmatmul.mubr.bf16.gmra.mrb[112].mxu0 %v3208_v32  ;;  %4352 = vmatpush1.bf16.msra.mxu1 %v7351_v60  ;;  %v7362_v32 = vld [vmem:[%s10309_s5 + $0x104] ss:$16 sps:$4 sm:$0xff]  }
 0x6ed   : > { %6714 = vmatpush3.bf16.msra.mxu0 %v9025_v30  ;;  %3309 = vmatprep.mubr.bf16.mxu0 %v3201_v22  ;;  %v7314_v30 = vld [vmem:[%s10309_s5 + $0x4] ss:$16 sps:$4 sm:$0xff]  }
 0x6ee   : > { %6715 = vmatprep.subr.bf16.mxu0 %v9031_v5  ;;  %v3167_v5 = vsel %vm559_vm0, %v3164_v35, %v3166_v54  ;;  %4353 = vmatprep.subr.bf16.mxu1 %v7359_v19 }
 0x6ef   : > { %v3196_v55 = vsel %vm858_vm5, %v3167_v5, %v7210_v15 }
 0x6f0   : > { %4354 = vmatpush1.bf16.msra.mxu1 %v7357_v31 }
 0x6f1   : > { %6716 = vmatpush3.bf16.msra.mxu0 %v9037_v28  ;;  %v7214_v28 = vpop.permute.xlu1 %7213  ;;  %4355 = vmatprep.subr.bf16.mxu1 %v7365_v16 }
 0x6f2   : > { %6717 = vmatprep.subr.bf16.mxu0 %v9043_v18  ;;  %v3165_v18 = vsel %vm559_vm0, %v3162_v26, %v3164_v35  ;;  %v7215_v25 = vunpack.i.l.bf16 %v7214_v28  ;;  %v7216_v63 = vunpack.i.h.bf16 %v7214_v28  ;;  %v7360_v35 = vld [vmem:[%s10309_s5 + $0x100] ss:$16 sps:$4 sm:$0xff]  }
 0x6f3   : > { %v7366_v28 = vld [vmem:[%s10309_s5 + $0x120] ss:$16 sps:$4 sm:$0xff]  }
 0x6f4   : > { %v3197_v56 = vsel %vm858_vm5, %v3166_v54, %v7215_v25  ;;  %v3192_v43 = vsel %vm858_vm5, %v9209_v10, %v7216_v63  ;;  %v7332_v10 = vld [vmem:[%s10309_s5 + $0x64] ss:$16 sps:$4 sm:$0xff]   ;;  %v7363_v54 = vld [vmem:[%s10309_s5 + $0x108] ss:$16 sps:$4 sm:$0xff]   ;;  %v7378_v25 = vld [vmem:[%s10309_s5 + $0x160] ss:$16 sps:$4 sm:$0xff]  }
 0x6f5   : > { %6718 = vmatpush3.bf16.msra.mxu0 %v9050_v0  ;;  %v7312_v0 = vld [vmem:[%s10309_s5] ss:$16 sps:$4 sm:$0xff]   ;;  %v3211_v36 = vpack.c.bf16 %v3197_v56, %v3197_v56  ;;  %v3210_v13 = vpack.c.bf16 %v3192_v43, %v3192_v43  ;;  %4356 = vmatpush1.bf16.msra.mxu1 %v7363_v54  ;;  %v7389_v56 = vld [vmem:[%s10309_s5 + $0x18c] ss:$16 sps:$4 sm:$0xff]   ;;  %v7387_v63 = vld [vmem:[%s10309_s5 + $0x188] ss:$16 sps:$4 sm:$0xff]  }
 0x6f6   : > { %6719 = vmatprep.subr.bf16.mxu0 %v9057_v37  ;;  %v3195_v37 = vsel %vm858_vm5, %v3165_v18, %v7196_v6  ;;  %v7369_v18 = vld [vmem:[%s10309_s5 + $0x128] ss:$16 sps:$4 sm:$0xff]   ;;  %v7395_v43 = vld [vmem:[%s10309_s5 + $0x1ac] ss:$16 sps:$4 sm:$0xff]  }
 0x6f7   : > { %v3206_v47 = vpack.c.bf16 %v3196_v55, %v3195_v37  ;;  %v7371_v55 = vld [vmem:[%s10309_s5 + $0x12c] ss:$16 sps:$4 sm:$0xff]   ;;  %v7372_v37 = vld [vmem:[%s10309_s5 + $0x140] ss:$16 sps:$4 sm:$0xff]  }
 0x6f8   : > { %4357 = vmatprep.subr.bf16.mxu1 %v7371_v55 }
 0x6f9   : > { %6720 = vmatpush3.bf16.msra.mxu0 %v9065_v8  ;;  %v7318_v8 = vld [vmem:[%s10309_s5 + $0x20] ss:$16 sps:$4 sm:$0xff]   ;;  %4358 = vmatpush1.bf16.msra.mxu1 %v7369_v18 }
 0x6fa   : > { %4257 = vmatprep.subr.bf16.mxu0 %v7314_v30  ;;  %v7368_v30 = vld [vmem:[%s10309_s5 + $0x124] ss:$16 sps:$4 sm:$0xff]  }
 0x6fc   : > { %3310 = vmatmul.mubr.bf16.vlgmr.msra.gmra.mrb[116].mxu0 %v3200_v17  ;;  %v7377_v17 = vld [vmem:[%s10309_s5 + $0x14c] ss:$16 sps:$4 sm:$0xff]  }
 0x6fd   : > { %3317 = vmatprep.mubr.bf16.mxu0 %v3206_v47  ;;  %4258 = vmatpush1.bf16.msra.mxu0 %v7312_v0  ;;  %v7374_v0 = vld [vmem:[%s10309_s5 + $0x144] ss:$16 sps:$4 sm:$0xff]   ;;  %v7383_v47 = vld [vmem:[%s10309_s5 + $0x16c] ss:$16 sps:$4 sm:$0xff]  }
 0x6fe   : > { %4259 = vmatprep.subr.bf16.mxu0 %v7320_v9  ;;  %v7375_v9 = vld [vmem:[%s10309_s5 + $0x148] ss:$16 sps:$4 sm:$0xff]   ;;  %4359 = vmatprep.subr.bf16.mxu1 %v7377_v17 }
 0x6ff   : > { %4360 = vmatpush1.bf16.msra.mxu1 %v7375_v9 }
 0x700   : > { %4361 = vmatprep.subr.bf16.mxu1 %v7383_v47 }
 0x701   : > { %4260 = vmatpush1.bf16.msra.mxu0 %v7318_v8  ;;  %v7381_v8 = vld [vmem:[%s10309_s5 + $0x168] ss:$16 sps:$4 sm:$0xff]  }
 0x702   : > { %4261 = vmatprep.subr.bf16.mxu0 %v7326_v50  ;;  %v7398_v50 = vld [vmem:[%s10309_s5 + $0x1c4] ss:$16 sps:$4 sm:$0xff]  }
 0x703   : > { %4362 = vmatpush1.bf16.msra.mxu1 %v7381_v8 }
 0x704   : > { %3318 = vmatmul.mubr.bf16.gmra.mrb[120].mxu0 %v3205_v29  ;;  %v7384_v29 = vld [vmem:[%s10309_s5 + $0x180] ss:$16 sps:$4 sm:$0xff]   ;;  %4363 = vmatprep.subr.bf16.mxu1 %v7389_v56 }
 0x705   : > { %3325 = vmatprep.mubr.bf16.mxu0 %v3211_v36  ;;  %4262 = vmatpush1.bf16.msra.mxu0 %v7324_v11  ;;  %v7392_v36 = vld [vmem:[%s10309_s5 + $0x1a4] ss:$16 sps:$4 sm:$0xff]   ;;  %v7393_v11 = vld [vmem:[%s10309_s5 + $0x1a8] ss:$16 sps:$4 sm:$0xff]  }
 0x706   : > { %4263 = vmatprep.subr.bf16.mxu0 %v7332_v10  ;;  %v7399_v10 = vld [vmem:[%s10309_s5 + $0x1c8] ss:$16 sps:$4 sm:$0xff]  }
 0x707   : > { %4364 = vmatpush1.bf16.msra.mxu1 %v7387_v63 }
 0x708   : > { %4365 = vmatprep.subr.bf16.mxu1 %v7395_v43 }
 0x709   : > { %4264 = vmatpush1.bf16.msra.mxu0 %v7330_v1  ;;  %v7402_v1 = vld [vmem:[%s10309_s5 + $0x1e0] ss:$16 sps:$4 sm:$0xff]  }
 0x70a   : > { %4265 = vmatprep.subr.bf16.mxu0 %v7338_v62  ;;  %v7413_v62 = vld [vmem:[%s10309_s5 + $0x20c] ss:$16 sps:$4 sm:$0xff]  }
 0x70b   : > { %4366 = vmatpush1.bf16.msra.mxu1 %v7393_v11 }
 0x70c   : > { %3326 = vmatmul.mubr.bf16.gmra.mrb[124].mxu0 %v3210_v13  ;;  %v7390_v13 = vld [vmem:[%s10309_s5 + $0x1a0] ss:$16 sps:$4 sm:$0xff]   ;;  %4367 = vmatprep.subr.bf16.mxu1 %v7401_v58 }
 0x70d   : > { %4266 = vmatpush1.bf16.msra.mxu0 %v7336_v21  ;;  %v7410_v21 = vld [vmem:[%s10309_s5 + $0x204] ss:$16 sps:$4 sm:$0xff]  }
 0x70e   : > { %4267 = vmatprep.subr.bf16.mxu0 %v7344_v51 }
 0x70f   : > { %4368 = vmatpush1.bf16.msra.mxu1 %v7399_v10 }
 0x711   : > { %4268 = vmatpush1.bf16.msra.mxu0 %v7342_v7 }
 0x712   : > { %4269 = vmatprep.subr.bf16.mxu0 %v7350_v14 }
 0x715   : > { %4270 = vmatpush1.bf16.msra.mxu0 %v7348_v44 }
 0x716   : > { %4271 = vmatprep.subr.bf16.mxu0 %v7356_v33 }
 0x719   : > { %4272 = vmatpush1.bf16.msra.mxu0 %v7354_v24 }
 0x71a   : > { %4273 = vmatprep.subr.bf16.mxu0 %v7362_v32 }
 0x71d   : > { %4274 = vmatpush1.bf16.msra.mxu0 %v7360_v35 }
 0x71e   : > { %4275 = vmatprep.subr.bf16.mxu0 %v7368_v30 }
 0x721   : > { %4276 = vmatpush1.bf16.msra.mxu0 %v7366_v28 }
 0x722   : > { %4277 = vmatprep.subr.bf16.mxu0 %v7374_v0 }
 0x725   : > { %4278 = vmatpush1.bf16.msra.mxu0 %v7372_v37 }
 0x726   : > { %4279 = vmatprep.subr.bf16.mxu0 %v7380_v57 }
 0x729   : > { %4280 = vmatpush1.bf16.msra.mxu0 %v7378_v25 }
 0x72a   : > { %4281 = vmatprep.subr.bf16.mxu0 %v7386_v42 }
 0x72d   : > { %4282 = vmatpush1.bf16.msra.mxu0 %v7384_v29 }
 0x72e   : > { %4283 = vmatprep.subr.bf16.mxu0 %v7392_v36 }
 0x731   : > { %4284 = vmatpush1.bf16.msra.mxu0 %v7390_v13 }
 0x732   : > { %4285 = vmatprep.subr.bf16.mxu0 %v7398_v50 }
 0x735   : > { %4286 = vmatpush1.bf16.msra.mxu0 %v7396_v53 }
 0x736   : > { %4287 = vmatprep.subr.bf16.mxu0 %v7404_v34 }
 0x739   : > { %v9361_v6 = vpop.f32.mrb[116].mxu1  ;;  %4288 = vmatpush1.bf16.msra.mxu0 %v7402_v1 }
 0x73a   : > { %v6996_v61 = vpop.f32.mrb[117].mxu1  ;;  %4298 = vmatprep.subr.bf16.mxu0 %v7410_v21 }
 0x73b   : > { %v9363_v40 = vpop.f32.mrb[118].mxu1  ;;  %v7407_v61 = vld [vmem:[%s10309_s5 + $0x1ec] ss:$16 sps:$4 sm:$0xff]  }
 0x73c   : > { %v6997_v12 = vpop.f32.mrb[119].mxu1  ;;  %4369 = vmatprep.subr.bf16.mxu1 %v7407_v61 }
 0x73d   : > { %4370 = vmatpush1.bf16.msra.mxu1 %v7405_v3 }
 0x73e   : > { %4380 = vmatprep.subr.bf16.mxu1 %v7413_v62 }
 0x741   : > { %v9392_v41 = vpop.f32.mrb[120].mxu1 }
 0x742   : > { %v7000_v26 = vpop.f32.mrb[121].mxu1 }
 0x743   : > { %v9400_v2 = vpop.f32.mrb[122].mxu1 }
 0x744   : > { %v7001_v20 = vpop.f32.mrb[123].mxu1 }
 0x749   : > { %v3382_v22 = vpop.f32.mrb[124].mxu1 }
 0x74a   : > { %v7004_v23 = vpop.f32.mrb[125].mxu1 }
 0x74b   : > { %v3384_v15 = vpop.f32.mrb[126].mxu1 }
 0x74c   : > { %v7005_v5 = vpop.f32.mrb[127].mxu1 }
 0x7af   : > { %v6687_v12 = vpop.f32.mrb[104].mxu0 }
 0x7b0   : > { %v6688_v48 = vpop.f32.mrb[105].mxu0 }
 0x7b1   : > { %v6689_v49 = vadd.f32 %v6688_v48, %v6687_v12  ;;  %v6690_v51 = vpop.f32.mrb[106].mxu0 }
 0x7b2   : > { %v6691_v7 = vpop.f32.mrb[107].mxu0 }
 0x7b3   : > { %v6692_v38 = vadd.f32 %v6691_v7, %v6690_v51  ;;  %v3257_v16 = vadd.f32 %v9132_v39, %v6689_v49 }
 0x7b5   : > { %v3260_v15 = vadd.f32 %v9132_v39, %v6692_v38 }
 0x7b7   : > { %v6693_v27 = vpop.f32.mrb[108].mxu0 }
 0x7b8   : > { %v6694_v14 = vpop.f32.mrb[109].mxu0 }
 0x7b9   : > { %v6695_v46 = vadd.f32 %v6694_v14, %v6693_v27  ;;  %v6696_v26 = vpop.f32.mrb[110].mxu0  ;;  %v7408_v27 = vld [vmem:[%s10309_s5 + $0x200] ss:$16 sps:$4 sm:$0xff]   ;;  %v7411_v14 = vld [vmem:[%s10309_s5 + $0x208] ss:$16 sps:$4 sm:$0xff]  }
 0x7ba   : > { %v6697_v44 = vpop.f32.mrb[111].mxu0 }
 0x7bb   : > { %v6698_v60 = vadd.f32 %v6697_v44, %v6696_v26  ;;  %v3265_v37 = vadd.f32 %v9132_v39, %v6695_v46  ;;  %v7416_v26 = vld [vmem:[%s10309_s5 + $0x224] ss:$16 sps:$4 sm:$0xff]  }
 0x7bd   : > { %v3268_v25 = vadd.f32 %v9132_v39, %v6698_v60 }
 0x7bf   : > { %v6699_v33 = vpop.f32.mrb[112].mxu0 }
 0x7c0   : > { %v6700_v20 = vpop.f32.mrb[113].mxu0  ;;  %v7414_v33 = vld [vmem:[%s10309_s5 + $0x220] ss:$16 sps:$4 sm:$0xff]  }
 0x7c1   : > { %v6702_v19 = vpop.f32.mrb[114].mxu0  ;;  %v7417_v20 = vld [vmem:[%s10309_s5 + $0x228] ss:$16 sps:$4 sm:$0xff]  }
 0x7c2   : > { %v6703_v24 = vpop.f32.mrb[115].mxu0 }
 0x7c3   : > { %v7422_v24 = vld [vmem:[%s10309_s5 + $0x244] ss:$16 sps:$4 sm:$0xff]  }
 0x7cf   : > { %v6721_v31 = vpop.f32.mrb[116].mxu0 }
 0x7d0   : > { %v6722_v32 = vpop.f32.mrb[117].mxu0 }
 0x7d1   : > { %v6723_v22 = vadd.f32 %v6722_v32, %v6721_v31  ;;  %v6724_v23 = vpop.f32.mrb[118].mxu0  ;;  %v7425_v32 = vld [vmem:[%s10309_s5 + $0x24c] ss:$16 sps:$4 sm:$0xff]  }
 0x7d2   : > { %v6725_v35 = vpop.f32.mrb[119].mxu0 }
 0x7d3   : > { %v3312_v54 = vadd.f32 %v6723_v22, %v3257_v16  ;;  %v6726_v30 = vadd.f32 %v6725_v35, %v6724_v23  ;;  %v7423_v23 = vld [vmem:[%s10309_s5 + $0x248] ss:$16 sps:$4 sm:$0xff]   ;;  %v7428_v35 = vld [vmem:[%s10309_s5 + $0x264] ss:$16 sps:$4 sm:$0xff]  }
 0x7d5   : > { %v3367_v5 = vadd.f32 %v9361_v6, %v3312_v54  ;;  %v3315_v55 = vadd.f32 %v6726_v30, %v3260_v15  ;;  %v7426_v15 = vld [vmem:[%s10309_s5 + $0x260] ss:$16 sps:$4 sm:$0xff]   ;;  %v7429_v54 = vld [vmem:[%s10309_s5 + $0x268] ss:$16 sps:$4 sm:$0xff]   ;;  %v7434_v30 = vld [vmem:[%s10309_s5 + $0x284] ss:$16 sps:$4 sm:$0xff]  }
 0x7d7   : > { %v3387_v28 = vmax.f32 %v3367_v5, 0.0  ;;  %v3370_v18 = vadd.f32 %v9363_v40, %v3315_v55  ;;  %v6727_v0 = vpop.f32.mrb[120].mxu0  ;;  %v7437_v5 = vld [vmem:[%s10309_s5 + $0x28c] ss:$16 sps:$4 sm:$0xff]   ;;  %v7432_v55 = vld [vmem:[%s10309_s5 + $0x280] ss:$16 sps:$4 sm:$0xff]  }
 0x7d8   : > { %v6728_v17 = vpop.f32.mrb[121].mxu0 }
 0x7d9   : > { %v3388_v9 = vmax.f32 %v3370_v18, 0.0  ;;  %v6729_v57 = vadd.f32 %v6728_v17, %v6727_v0  ;;  %v6730_v47 = vpop.f32.mrb[122].mxu0  ;;  %v3393_v42 = vrot.slane %v3387_v28, 7  ;;  %v7440_v18 = vld [vmem:[%s10309_s5 + $0x2a4] ss:$16 sps:$4 sm:$0xff]  }
 0x7da   : > { %v6731_v8 = vpop.f32.mrb[123].mxu0  ;;  %v7443_v0 = vld [vmem:[%s10309_s5 + $0x2ac] ss:$16 sps:$4 sm:$0xff]   ;;  %v7438_v17 = vld [vmem:[%s10309_s5 + $0x2a0] ss:$16 sps:$4 sm:$0xff]  }
 0x7db   : > { %v3394_v56 = vrot.slane %v3388_v9, 7  ;;  %v3320_v29 = vadd.f32 %v6729_v57, %v3265_v37  ;;  %v6732_v63 = vadd.f32 %v6731_v8, %v6730_v47  ;;  %v7441_v37 = vld [vmem:[%s10309_s5 + $0x2a8] ss:$16 sps:$4 sm:$0xff]   ;;  %v7449_v57 = vld [vmem:[%s10309_s5 + $0x2cc] ss:$16 sps:$4 sm:$0xff]  }
 0x7dc   : > { %v7444_v47 = vld [vmem:[%s10309_s5 + $0x2c0] ss:$16 sps:$4 sm:$0xff]   ;;  %v7452_v8 = vld [vmem:[%s10309_s5 + $0x2e4] ss:$16 sps:$4 sm:$0xff]  }
 0x7dd   : > { %v3395_v6 = vsel %vm802_vm3, %v3393_v42, %v3394_v56  ;;  %v3375_v36 = vadd.f32 %v9392_v41, %v3320_v29  ;;  %v3323_v43 = vadd.f32 %v6732_v63, %v3268_v25  ;;  %v7447_v25 = vld [vmem:[%s10309_s5 + $0x2c8] ss:$16 sps:$4 sm:$0xff]   ;;  %v7455_v42 = vld [vmem:[%s10309_s5 + $0x2ec] ss:$16 sps:$4 sm:$0xff]   ;;  %v7450_v56 = vld [vmem:[%s10309_s5 + $0x2e0] ss:$16 sps:$4 sm:$0xff]  }
 0x7de   : > { %v3397_v40 = vmax.f32 %v3387_v28, %v3395_v6  ;;  %v7435_v28 = vld [vmem:[%s10309_s5 + $0x288] ss:$16 sps:$4 sm:$0xff]   ;;  %v7458_v63 = vld [vmem:[%s10309_s5 + $0x304] ss:$16 sps:$4 sm:$0xff]   ;;  %v7461_v6 = vld [vmem:[%s10309_s5 + $0x30c] ss:$16 sps:$4 sm:$0xff]  }
 0x7df   : > { %v3389_v13 = vmax.f32 %v3375_v36, 0.0  ;;  %v3378_v11 = vadd.f32 %v9400_v2, %v3323_v43  ;;  %v6733_v50 = vpop.f32.mrb[124].mxu0  ;;  %v7453_v29 = vld [vmem:[%s10309_s5 + $0x2e8] ss:$16 sps:$4 sm:$0xff]   ;;  %v7456_v36 = vld [vmem:[%s10309_s5 + $0x300] ss:$16 sps:$4 sm:$0xff]  }
 0x7e0   : > { %v6734_v58 = vpop.f32.mrb[125].mxu0  ;;  %v3399_v53 = vrot.slane %v3397_v40, 1  ;;  %v7459_v43 = vld [vmem:[%s10309_s5 + $0x308] ss:$16 sps:$4 sm:$0xff]  }
 0x7e1   : > { %v3404_v10 = vrot.slane %v3389_v13, 7  ;;  %v3390_v1 = vmax.f32 %v3378_v11, 0.0  ;;  %v6736_v39 = vpop.f32.mrb[126].mxu0  ;;  %v7462_v11 = vld [vmem:[%s10309_s5 + $0x320] ss:$16 sps:$4 sm:$0xff]  }
 0x7e2   : > { %v6737_v34 = vpop.f32.mrb[127].mxu0  ;;  %v3401_v3 = vmax.f32 %v3397_v40, %v3399_v53  ;;  %v7464_v40 = vld [vmem:[%s10309_s5 + $0x324] ss:$16 sps:$4 sm:$0xff]   ;;  %v7465_v50 = vld [vmem:[%s10309_s5 + $0x328] ss:$16 sps:$4 sm:$0xff]  }
 0x7e3   : > { %v3409_v61 = vmax.f32 %v3388_v9, %v3404_v10  ;;  %v3405_v21 = vrot.slane %v3390_v1, 7  ;;  %v7446_v9 = vld [vmem:[%s10309_s5 + $0x2c4] ss:$16 sps:$4 sm:$0xff]   ;;  %v7473_v53 = vld [vmem:[%s10309_s5 + $0x34c] ss:$16 sps:$4 sm:$0xff]  }
 0x7e4   : > { %v3442_v62 = vrot.slane %v3401_v3, 5  ;;  %v6083_v12 = vrot.slane %v3401_v3, 7  ;;  %v7470_v58 = vld [vmem:[%s10309_s5 + $0x344] ss:$16 sps:$4 sm:$0xff]   ;;  %v7471_v1 = vld [vmem:[%s10309_s5 + $0x348] ss:$16 sps:$4 sm:$0xff]  }
 0x7e5   : > { %v3412_v48 = vrot.slane %v3409_v61, 1  ;;  %v3406_v41 = vsel %vm802_vm3, %v3404_v10, %v3405_v21  ;;  %v7468_v10 = vld [vmem:[%s10309_s5 + $0x340] ss:$16 sps:$4 sm:$0xff]   ;;  %v7476_v39 = vld [vmem:[%s10309_s5 + $0x364] ss:$16 sps:$4 sm:$0xff]  }
 0x7e6   : > { %v3410_v49 = vmax.f32 %v3389_v13, %v3406_v41  ;;  %v3460_v2 = vsel %vm3458_vm7, %v9141_v59, %v6083_v12  ;;  %v3459_v51 = vsel %vm3458_vm7, %v9146_v52, %v3442_v62  ;;  %v7419_v59 = vld [vmem:[%s10309_s5 + $0x22c] ss:$16 sps:$4 sm:$0xff]   ;;  %v7474_v3 = vld [vmem:[%s10309_s5 + $0x360] ss:$16 sps:$4 sm:$0xff]   ;;  %v7482_v21 = vld [vmem:[%s10309_s5 + $0x384] ss:$16 sps:$4 sm:$0xff]  }
 0x7e7   : > { %v3414_v7 = vmax.f32 %v3409_v61, %v3412_v48  ;;  %v3464_v38 = vpack.c.bf16 %v3460_v2, %v3460_v2  ;;  %v3463_v46 = vpack.c.bf16 %v3459_v51, %v3459_v51  ;;  %v7467_v13 = vld [vmem:[%s10309_s5 + $0x32c] ss:$16 sps:$4 sm:$0xff]   ;;  %v7477_v61 = vld [vmem:[%s10309_s5 + $0x368] ss:$16 sps:$4 sm:$0xff]   ;;  %v7480_v12 = vld [vmem:[%s10309_s5 + $0x380] ss:$16 sps:$4 sm:$0xff]  }
 0x7e8   : > { %v3416_v52 = vrot.slane %v3410_v49, 1  ;;  %v7479_v34 = vld [vmem:[%s10309_s5 + $0x36c] ss:$16 sps:$4 sm:$0xff]   ;;  %v7483_v48 = vld [vmem:[%s10309_s5 + $0x388] ss:$16 sps:$4 sm:$0xff]  }
 0x7e9   : > { %v6084_v44 = vrot.slane %v3414_v7, 11  ;;  %4289 = vmatprep.mubr.bf16.mxu0 %v3464_v38  ;;  %4371 = vmatprep.mubr.bf16.mxu1 %v3464_v38  ;;  %v7485_v62 = vld [vmem:[%s10309_s5 + $0x38c] ss:$16 sps:$4 sm:$0xff]   ;;  %v7488_v41 = vld [vmem:[%s10309_s5 + $0x3a4] ss:$16 sps:$4 sm:$0xff]  }
 0x7ea   : > { %4290 = vmatmul.mubr.bf16.vlgmr.msra.gmra.mrb[128].mxu0 %v3463_v46  ;;  %4372 = vmatmul.mubr.bf16.vlgmr.msra.gmra.mrb[128].mxu1 %v3463_v46  ;;  %v3418_v60 = vmax.f32 %v3410_v49, %v3416_v52  ;;  %v7491_v49 = vld [vmem:[%s10309_s5 + $0x3ac] ss:$16 sps:$4 sm:$0xff]   ;;  %v7486_v2 = vld [vmem:[%s10309_s5 + $0x3a0] ss:$16 sps:$4 sm:$0xff]   ;;  %v7489_v51 = vld [vmem:[%s10309_s5 + $0x3a8] ss:$16 sps:$4 sm:$0xff]  }
 0x7eb   : > { %4299 = vmatpush1.bf16.msra.mxu0 %v7408_v27  ;;  %4381 = vmatpush1.bf16.msra.mxu1 %v7411_v14  ;;  %v9553_v19 = vsel %vm3458_vm7, %v9150_v4, %v6084_v44  ;;  %v7420_v4 = vld [vmem:[%s10309_s5 + $0x240] ss:$16 sps:$4 sm:$0xff]   ;;  %v7494_v7 = vld [vmem:[%s10309_s5 + $0x3c4] ss:$16 sps:$4 sm:$0xff]   ;;  %v7497_v38 = vld [vmem:[%s10309_s5 + $0x3cc] ss:$16 sps:$4 sm:$0xff]  }
 0x7ec   : > { %4300 = vmatprep.subr.bf16.mxu0 %v7416_v26  ;;  %4382 = vmatprep.subr.bf16.mxu1 %v7419_v59  ;;  %v3445_v31 = vrot.slane %v3418_v60, 5  ;;  %v7492_v27 = vld [vmem:[%s10309_s5 + $0x3c0] ss:$16 sps:$4 sm:$0xff]   ;;  %v7495_v14 = vld [vmem:[%s10309_s5 + $0x3c8] ss:$16 sps:$4 sm:$0xff]  }
 0x7ed   : > { %v7500_v46 = vld [vmem:[%s10309_s5 + $0x3e4] ss:$16 sps:$4 sm:$0xff]   ;;  %v7503_v26 = vld [vmem:[%s10309_s5 + $0x3ec] ss:$16 sps:$4 sm:$0xff]   ;;  %v7498_v59 = vld [vmem:[%s10309_s5 + $0x3e0] ss:$16 sps:$4 sm:$0xff]  }
 0x7ee   : > { %v3462_v16 = vsel %vm3458_vm7, %v9154_v45, %v3445_v31  ;;  %v7431_v45 = vld [vmem:[%s10309_s5 + $0x26c] ss:$16 sps:$4 sm:$0xff]   ;;  %v7501_v52 = vld [vmem:[%s10309_s5 + $0x3e8] ss:$16 sps:$4 sm:$0xff]   ;;  %v7506_v44 = vld [vmem:[%s10311_s7 + $0x4] ss:$16 sps:$4 sm:$0xff]  }
 0x7ef   : > { %4301 = vmatpush1.bf16.msra.mxu0 %v7414_v33  ;;  %4383 = vmatpush1.bf16.msra.mxu1 %v7417_v20  ;;  %v3466_v22 = vpack.c.bf16 %v3462_v16, %v3462_v16  ;;  %v7509_v60 = vld [vmem:[%s10311_s7 + $0xc] ss:$16 sps:$4 sm:$0xff]   ;;  %v7504_v33 = vld [vmem:[%s10311_s7] ss:$16 sps:$4 sm:$0xff]   ;;  %v7507_v20 = vld [vmem:[%s10311_s7 + $0x8] ss:$16 sps:$4 sm:$0xff]  }
 0x7f0   : > { %4302 = vmatprep.subr.bf16.mxu0 %v7422_v24  ;;  %4384 = vmatprep.subr.bf16.mxu1 %v7425_v32  ;;  %v3465_v24 = vpack.c.bf16 %v9553_v19, %v9553_v19  ;;  %v7512_v31 = vld [vmem:[%s10311_s7 + $0x24] ss:$16 sps:$4 sm:$0xff]   ;;  %v7515_v32 = vld [vmem:[%s10311_s7 + $0x2c] ss:$16 sps:$4 sm:$0xff]   ;;  %v7510_v16 = vld [vmem:[%s10311_s7 + $0x20] ss:$16 sps:$4 sm:$0xff]  }
 0x7f1   : > { %4330 = vmatprep.mubr.bf16.mxu0 %v3466_v22  ;;  %4412 = vmatprep.mubr.bf16.mxu1 %v3466_v22  ;;  %v7513_v19 = vld [vmem:[%s10311_s7 + $0x28] ss:$16 sps:$4 sm:$0xff]   ;;  %v7521_v22 = vld [vmem:[%s10311_s7 + $0x4c] ss:$16 sps:$4 sm:$0xff]  }
 0x7f3   : > { %4303 = vmatpush1.bf16.msra.mxu0 %v7420_v4  ;;  %4385 = vmatpush1.bf16.msra.mxu1 %v7423_v23  ;;  %v7518_v4 = vld [vmem:[%s10311_s7 + $0x44] ss:$16 sps:$4 sm:$0xff]   ;;  %v7516_v23 = vld [vmem:[%s10311_s7 + $0x40] ss:$16 sps:$4 sm:$0xff]  }
 0x7f4   : > { %4304 = vmatprep.subr.bf16.mxu0 %v7428_v35  ;;  %4386 = vmatprep.subr.bf16.mxu1 %v7431_v45  ;;  %v7519_v35 = vld [vmem:[%s10311_s7 + $0x48] ss:$16 sps:$4 sm:$0xff]   ;;  %v7524_v45 = vld [vmem:[%s10311_s7 + $0x64] ss:$16 sps:$4 sm:$0xff]  }
 0x7f7   : > { %4305 = vmatpush1.bf16.msra.mxu0 %v7426_v15  ;;  %4387 = vmatpush1.bf16.msra.mxu1 %v7429_v54  ;;  %v7527_v15 = vld [vmem:[%s10311_s7 + $0x6c] ss:$16 sps:$4 sm:$0xff]   ;;  %v7522_v54 = vld [vmem:[%s10311_s7 + $0x60] ss:$16 sps:$4 sm:$0xff]  }
 0x7f8   : > { %4306 = vmatprep.subr.bf16.mxu0 %v7434_v30  ;;  %4388 = vmatprep.subr.bf16.mxu1 %v7437_v5  ;;  %v7525_v30 = vld [vmem:[%s10311_s7 + $0x68] ss:$16 sps:$4 sm:$0xff]   ;;  %v7530_v5 = vld [vmem:[%s10311_s7 + $0x84] ss:$16 sps:$4 sm:$0xff]  }
 0x7fb   : > { %4307 = vmatpush1.bf16.msra.mxu0 %v7432_v55  ;;  %4389 = vmatpush1.bf16.msra.mxu1 %v7435_v28  ;;  %v7533_v55 = vld [vmem:[%s10311_s7 + $0x8c] ss:$16 sps:$4 sm:$0xff]   ;;  %v7528_v28 = vld [vmem:[%s10311_s7 + $0x80] ss:$16 sps:$4 sm:$0xff]  }
 0x7fc   : > { %4308 = vmatprep.subr.bf16.mxu0 %v7440_v18  ;;  %4390 = vmatprep.subr.bf16.mxu1 %v7443_v0  ;;  %v7531_v18 = vld [vmem:[%s10311_s7 + $0x88] ss:$16 sps:$4 sm:$0xff]   ;;  %v7536_v0 = vld [vmem:[%s10311_s7 + $0xa4] ss:$16 sps:$4 sm:$0xff]  }
 0x7ff   : > { %4309 = vmatpush1.bf16.msra.mxu0 %v7438_v17  ;;  %4391 = vmatpush1.bf16.msra.mxu1 %v7441_v37  ;;  %v7539_v17 = vld [vmem:[%s10311_s7 + $0xac] ss:$16 sps:$4 sm:$0xff]   ;;  %v7534_v37 = vld [vmem:[%s10311_s7 + $0xa0] ss:$16 sps:$4 sm:$0xff]  }
 0x800   : > { %4310 = vmatprep.subr.bf16.mxu0 %v7446_v9  ;;  %4392 = vmatprep.subr.bf16.mxu1 %v7449_v57  ;;  %v7537_v9 = vld [vmem:[%s10311_s7 + $0xa8] ss:$16 sps:$4 sm:$0xff]   ;;  %v7542_v57 = vld [vmem:[%s10311_s7 + $0xc4] ss:$16 sps:$4 sm:$0xff]  }
 0x803   : > { %4311 = vmatpush1.bf16.msra.mxu0 %v7444_v47  ;;  %4393 = vmatpush1.bf16.msra.mxu1 %v7447_v25  ;;  %v7545_v47 = vld [vmem:[%s10311_s7 + $0xcc] ss:$16 sps:$4 sm:$0xff]   ;;  %v7540_v25 = vld [vmem:[%s10311_s7 + $0xc0] ss:$16 sps:$4 sm:$0xff]  }
 0x804   : > { %4312 = vmatprep.subr.bf16.mxu0 %v7452_v8  ;;  %4394 = vmatprep.subr.bf16.mxu1 %v7455_v42  ;;  %v7543_v8 = vld [vmem:[%s10311_s7 + $0xc8] ss:$16 sps:$4 sm:$0xff]   ;;  %v7548_v42 = vld [vmem:[%s10311_s7 + $0xe4] ss:$16 sps:$4 sm:$0xff]  }
 0x807   : > { %4313 = vmatpush1.bf16.msra.mxu0 %v7450_v56  ;;  %4395 = vmatpush1.bf16.msra.mxu1 %v7453_v29  ;;  %v7551_v56 = vld [vmem:[%s10311_s7 + $0xec] ss:$16 sps:$4 sm:$0xff]   ;;  %v7546_v29 = vld [vmem:[%s10311_s7 + $0xe0] ss:$16 sps:$4 sm:$0xff]  }
 0x808   : > { %4314 = vmatprep.subr.bf16.mxu0 %v7458_v63  ;;  %4396 = vmatprep.subr.bf16.mxu1 %v7461_v6  ;;  %v7549_v63 = vld [vmem:[%s10311_s7 + $0xe8] ss:$16 sps:$4 sm:$0xff]   ;;  %v7554_v6 = vld [vmem:[%s10311_s7 + $0x104] ss:$16 sps:$4 sm:$0xff]  }
 0x80b   : > { %4315 = vmatpush1.bf16.msra.mxu0 %v7456_v36  ;;  %4397 = vmatpush1.bf16.msra.mxu1 %v7459_v43  ;;  %v7557_v36 = vld [vmem:[%s10311_s7 + $0x10c] ss:$16 sps:$4 sm:$0xff]   ;;  %v7552_v43 = vld [vmem:[%s10311_s7 + $0x100] ss:$16 sps:$4 sm:$0xff]  }
 0x80c   : > { %4316 = vmatprep.subr.bf16.mxu0 %v7464_v40  ;;  %4398 = vmatprep.subr.bf16.mxu1 %v7467_v13  ;;  %v7555_v40 = vld [vmem:[%s10311_s7 + $0x108] ss:$16 sps:$4 sm:$0xff]   ;;  %v7560_v13 = vld [vmem:[%s10311_s7 + $0x124] ss:$16 sps:$4 sm:$0xff]  }
 0x80f   : > { %4317 = vmatpush1.bf16.msra.mxu0 %v7462_v11  ;;  %4399 = vmatpush1.bf16.msra.mxu1 %v7465_v50  ;;  %v7563_v11 = vld [vmem:[%s10311_s7 + $0x12c] ss:$16 sps:$4 sm:$0xff]   ;;  %v7558_v50 = vld [vmem:[%s10311_s7 + $0x120] ss:$16 sps:$4 sm:$0xff]  }
 0x810   : > { %4318 = vmatprep.subr.bf16.mxu0 %v7470_v58  ;;  %4400 = vmatprep.subr.bf16.mxu1 %v7473_v53  ;;  %v7561_v58 = vld [vmem:[%s10311_s7 + $0x128] ss:$16 sps:$4 sm:$0xff]   ;;  %v7566_v53 = vld [vmem:[%s10311_s7 + $0x144] ss:$16 sps:$4 sm:$0xff]  }
 0x813   : > { %4319 = vmatpush1.bf16.msra.mxu0 %v7468_v10  ;;  %4401 = vmatpush1.bf16.msra.mxu1 %v7471_v1  ;;  %v7569_v10 = vld [vmem:[%s10311_s7 + $0x14c] ss:$16 sps:$4 sm:$0xff]   ;;  %v7564_v1 = vld [vmem:[%s10311_s7 + $0x140] ss:$16 sps:$4 sm:$0xff]  }
 0x814   : > { %4320 = vmatprep.subr.bf16.mxu0 %v7476_v39  ;;  %4402 = vmatprep.subr.bf16.mxu1 %v7479_v34  ;;  %v7567_v39 = vld [vmem:[%s10311_s7 + $0x148] ss:$16 sps:$4 sm:$0xff]   ;;  %v7572_v34 = vld [vmem:[%s10311_s7 + $0x164] ss:$16 sps:$4 sm:$0xff]  }
 0x817   : > { %4321 = vmatpush1.bf16.msra.mxu0 %v7474_v3  ;;  %4403 = vmatpush1.bf16.msra.mxu1 %v7477_v61  ;;  %v7575_v3 = vld [vmem:[%s10311_s7 + $0x16c] ss:$16 sps:$4 sm:$0xff]   ;;  %v7570_v61 = vld [vmem:[%s10311_s7 + $0x160] ss:$16 sps:$4 sm:$0xff]  }
 0x818   : > { %4322 = vmatprep.subr.bf16.mxu0 %v7482_v21  ;;  %4404 = vmatprep.subr.bf16.mxu1 %v7485_v62  ;;  %v7573_v21 = vld [vmem:[%s10311_s7 + $0x168] ss:$16 sps:$4 sm:$0xff]   ;;  %v7578_v62 = vld [vmem:[%s10311_s7 + $0x184] ss:$16 sps:$4 sm:$0xff]  }
 0x81b   : > { %4323 = vmatpush1.bf16.msra.mxu0 %v7480_v12  ;;  %4405 = vmatpush1.bf16.msra.mxu1 %v7483_v48  ;;  %v7581_v12 = vld [vmem:[%s10311_s7 + $0x18c] ss:$16 sps:$4 sm:$0xff]   ;;  %v7576_v48 = vld [vmem:[%s10311_s7 + $0x180] ss:$16 sps:$4 sm:$0xff]  }
 0x81c   : > { %4324 = vmatprep.subr.bf16.mxu0 %v7488_v41  ;;  %4406 = vmatprep.subr.bf16.mxu1 %v7491_v49  ;;  %v7579_v41 = vld [vmem:[%s10311_s7 + $0x188] ss:$16 sps:$4 sm:$0xff]   ;;  %v7584_v49 = vld [vmem:[%s10311_s7 + $0x1a4] ss:$16 sps:$4 sm:$0xff]  }
 0x81f   : > { %4325 = vmatpush1.bf16.msra.mxu0 %v7486_v2  ;;  %4407 = vmatpush1.bf16.msra.mxu1 %v7489_v51  ;;  %v7587_v2 = vld [vmem:[%s10311_s7 + $0x1ac] ss:$16 sps:$4 sm:$0xff]   ;;  %v7582_v51 = vld [vmem:[%s10311_s7 + $0x1a0] ss:$16 sps:$4 sm:$0xff]  }
 0x820   : > { %4326 = vmatprep.subr.bf16.mxu0 %v7494_v7  ;;  %4408 = vmatprep.subr.bf16.mxu1 %v7497_v38  ;;  %v7585_v7 = vld [vmem:[%s10311_s7 + $0x1a8] ss:$16 sps:$4 sm:$0xff]   ;;  %v7590_v38 = vld [vmem:[%s10311_s7 + $0x1c4] ss:$16 sps:$4 sm:$0xff]  }
 0x823   : > { %4327 = vmatpush1.bf16.msra.mxu0 %v7492_v27  ;;  %4409 = vmatpush1.bf16.msra.mxu1 %v7495_v14  ;;  %v7593_v27 = vld [vmem:[%s10311_s7 + $0x1cc] ss:$16 sps:$4 sm:$0xff]   ;;  %v7588_v14 = vld [vmem:[%s10311_s7 + $0x1c0] ss:$16 sps:$4 sm:$0xff]  }
 0x824   : > { %4328 = vmatprep.subr.bf16.mxu0 %v7500_v46  ;;  %4410 = vmatprep.subr.bf16.mxu1 %v7503_v26  ;;  %v7591_v46 = vld [vmem:[%s10311_s7 + $0x1c8] ss:$16 sps:$4 sm:$0xff]   ;;  %v7596_v26 = vld [vmem:[%s10311_s7 + $0x1e4] ss:$16 sps:$4 sm:$0xff]  }
 0x827   : > { %4329 = vmatpush1.bf16.msra.mxu0 %v7498_v59  ;;  %4411 = vmatpush1.bf16.msra.mxu1 %v7501_v52  ;;  %v7594_v59 = vld [vmem:[%s10311_s7 + $0x1e0] ss:$16 sps:$4 sm:$0xff]   ;;  %v7597_v52 = vld [vmem:[%s10311_s7 + $0x1e8] ss:$16 sps:$4 sm:$0xff]  }
 0x828   : > { %5219 = vmatprep.subr.bf16.mxu0 %v7506_v44  ;;  %5301 = vmatprep.subr.bf16.mxu1 %v7509_v60  ;;  %v7599_v44 = vld [vmem:[%s10311_s7 + $0x1ec] ss:$16 sps:$4 sm:$0xff]   ;;  %v7602_v60 = vld [vmem:[%s10311_s7 + $0x204] ss:$16 sps:$4 sm:$0xff]  }
 0x82a   : > { %4331 = vmatmul.mubr.bf16.vlgmr.msra.gmra.mrb[128].mxu0 %v3465_v24  ;;  %4413 = vmatmul.mubr.bf16.vlgmr.msra.gmra.mrb[128].mxu1 %v3465_v24 }
 0x82b   : > { %5220 = vmatpush1.bf16.msra.mxu0 %v7504_v33  ;;  %5302 = vmatpush1.bf16.msra.mxu1 %v7507_v20  ;;  %v7605_v33 = vld [vmem:[%s10311_s7 + $0x20c] ss:$16 sps:$4 sm:$0xff]   ;;  %v3597_v20 = vlaneseq }
 0x82c   : > { %5221 = vmatprep.subr.bf16.mxu0 %v7512_v31  ;;  %5303 = vmatprep.subr.bf16.mxu1 %v7515_v32  ;;  %v9932_v32 = vld [vmem:[%s10310_s6] sm:$0xf] }
 0x82d   : > { %v9926_v24 = vshrl.u32 %v3597_v20, 7 }
 0x82f   : > { %5222 = vmatpush1.bf16.msra.mxu0 %v7510_v16  ;;  %5304 = vmatpush1.bf16.msra.mxu1 %v7513_v19  ;;  %v3599_v31 = vsub.s32 0, %v9926_v24  ;;  %v3603_v16 = vsub.s32 1, %v9926_v24  ;;  %v3611_v19 = vsub.s32 3, %v9926_v24 }
 0x830   : > { %5223 = vmatprep.subr.bf16.mxu0 %v7518_v4  ;;  %5305 = vmatprep.subr.bf16.mxu1 %v7521_v22 }
 0x831   : > { %v3600_v4 = vrot.slane %v9932_v32, %v3599_v31  ;;  %v3604_v22 = vrot.slane %v9932_v32, %v3603_v16 }
 0x833   : > { %5224 = vmatpush1.bf16.msra.mxu0 %v7516_v23  ;;  %5306 = vmatpush1.bf16.msra.mxu1 %v7519_v35  ;;  %v3612_v23 = vrot.slane %v9932_v32, %v3611_v19 }
 0x834   : > { %5225 = vmatprep.subr.bf16.mxu0 %v7524_v45  ;;  %5307 = vmatprep.subr.bf16.mxu1 %v7527_v15 }
 0x837   : > { %5226 = vmatpush1.bf16.msra.mxu0 %v7522_v54  ;;  %5308 = vmatpush1.bf16.msra.mxu1 %v7525_v30 }
 0x838   : > { %5227 = vmatprep.subr.bf16.mxu0 %v7530_v5  ;;  %5309 = vmatprep.subr.bf16.mxu1 %v7533_v55 }
 0x83b   : > { %5228 = vmatpush1.bf16.msra.mxu0 %v7528_v28  ;;  %5310 = vmatpush1.bf16.msra.mxu1 %v7531_v18 }
 0x83c   : > { %5229 = vmatprep.subr.bf16.mxu0 %v7536_v0  ;;  %5311 = vmatprep.subr.bf16.mxu1 %v7539_v17 }
 0x83f   : > { %5230 = vmatpush1.bf16.msra.mxu0 %v7534_v37  ;;  %5312 = vmatpush1.bf16.msra.mxu1 %v7537_v9 }
 0x840   : > { %5231 = vmatprep.subr.bf16.mxu0 %v7542_v57  ;;  %5313 = vmatprep.subr.bf16.mxu1 %v7545_v47 }
 0x843   : > { %5232 = vmatpush1.bf16.msra.mxu0 %v7540_v25  ;;  %5314 = vmatpush1.bf16.msra.mxu1 %v7543_v8  ;;  %v7600_v25 = vld [vmem:[%s10311_s7 + $0x200] ss:$16 sps:$4 sm:$0xff]   ;;  %v7603_v8 = vld [vmem:[%s10311_s7 + $0x208] ss:$16 sps:$4 sm:$0xff]  }
 0x844   : > { %5233 = vmatprep.subr.bf16.mxu0 %v7548_v42  ;;  %5315 = vmatprep.subr.bf16.mxu1 %v7551_v56  ;;  %v7608_v56 = vld [vmem:[%s10311_s7 + $0x224] ss:$16 sps:$4 sm:$0xff]  }
 0x847   : > { %5234 = vmatpush1.bf16.msra.mxu0 %v7546_v29  ;;  %5316 = vmatpush1.bf16.msra.mxu1 %v7549_v63  ;;  %v7611_v29 = vld [vmem:[%s10311_s7 + $0x22c] ss:$16 sps:$4 sm:$0xff]  }
 0x848   : > { %5235 = vmatprep.subr.bf16.mxu0 %v7554_v6  ;;  %5317 = vmatprep.subr.bf16.mxu1 %v7557_v36  ;;  %v7606_v6 = vld [vmem:[%s10311_s7 + $0x220] ss:$16 sps:$4 sm:$0xff]   ;;  %v7609_v36 = vld [vmem:[%s10311_s7 + $0x228] ss:$16 sps:$4 sm:$0xff]  }
 0x84b   : > { %5236 = vmatpush1.bf16.msra.mxu0 %v7552_v43  ;;  %5318 = vmatpush1.bf16.msra.mxu1 %v7555_v40  ;;  %v7614_v43 = vld [vmem:[%s10311_s7 + $0x244] ss:$16 sps:$4 sm:$0xff]   ;;  %v7617_v40 = vld [vmem:[%s10311_s7 + $0x24c] ss:$16 sps:$4 sm:$0xff]  }
 0x84c   : > { %5237 = vmatprep.subr.bf16.mxu0 %v7560_v13  ;;  %5319 = vmatprep.subr.bf16.mxu1 %v7563_v11  ;;  %v7612_v13 = vld [vmem:[%s10311_s7 + $0x240] ss:$16 sps:$4 sm:$0xff]   ;;  %v7615_v11 = vld [vmem:[%s10311_s7 + $0x248] ss:$16 sps:$4 sm:$0xff]  }
 0x84f   : > { %5238 = vmatpush1.bf16.msra.mxu0 %v7558_v50  ;;  %5320 = vmatpush1.bf16.msra.mxu1 %v7561_v58  ;;  %v7620_v50 = vld [vmem:[%s10311_s7 + $0x264] ss:$16 sps:$4 sm:$0xff]   ;;  %v7623_v58 = vld [vmem:[%s10311_s7 + $0x26c] ss:$16 sps:$4 sm:$0xff]  }
 0x850   : > { %5239 = vmatprep.subr.bf16.mxu0 %v7566_v53  ;;  %5321 = vmatprep.subr.bf16.mxu1 %v7569_v10  ;;  %v7618_v53 = vld [vmem:[%s10311_s7 + $0x260] ss:$16 sps:$4 sm:$0xff]   ;;  %v7621_v10 = vld [vmem:[%s10311_s7 + $0x268] ss:$16 sps:$4 sm:$0xff]  }
 0x853   : > { %5240 = vmatpush1.bf16.msra.mxu0 %v7564_v1  ;;  %5322 = vmatpush1.bf16.msra.mxu1 %v7567_v39  ;;  %v7626_v1 = vld [vmem:[%s10311_s7 + $0x284] ss:$16 sps:$4 sm:$0xff]   ;;  %v7629_v39 = vld [vmem:[%s10311_s7 + $0x28c] ss:$16 sps:$4 sm:$0xff]  }
 0x854   : > { %5241 = vmatprep.subr.bf16.mxu0 %v7572_v34  ;;  %5323 = vmatprep.subr.bf16.mxu1 %v7575_v3  ;;  %v7624_v34 = vld [vmem:[%s10311_s7 + $0x280] ss:$16 sps:$4 sm:$0xff]   ;;  %v7627_v3 = vld [vmem:[%s10311_s7 + $0x288] ss:$16 sps:$4 sm:$0xff]  }
 0x857   : > { %5242 = vmatpush1.bf16.msra.mxu0 %v7570_v61  ;;  %5324 = vmatpush1.bf16.msra.mxu1 %v7573_v21  ;;  %v7632_v61 = vld [vmem:[%s10311_s7 + $0x2a4] ss:$16 sps:$4 sm:$0xff]   ;;  %v7635_v21 = vld [vmem:[%s10311_s7 + $0x2ac] ss:$16 sps:$4 sm:$0xff]  }
 0x858   : > { %5243 = vmatprep.subr.bf16.mxu0 %v7578_v62  ;;  %5325 = vmatprep.subr.bf16.mxu1 %v7581_v12  ;;  %v7630_v62 = vld [vmem:[%s10311_s7 + $0x2a0] ss:$16 sps:$4 sm:$0xff]   ;;  %v7633_v12 = vld [vmem:[%s10311_s7 + $0x2a8] ss:$16 sps:$4 sm:$0xff]  }
 0x85b   : > { %5244 = vmatpush1.bf16.msra.mxu0 %v7576_v48  ;;  %5326 = vmatpush1.bf16.msra.mxu1 %v7579_v41  ;;  %v7638_v48 = vld [vmem:[%s10311_s7 + $0x2c4] ss:$16 sps:$4 sm:$0xff]   ;;  %v7641_v41 = vld [vmem:[%s10311_s7 + $0x2cc] ss:$16 sps:$4 sm:$0xff]  }
 0x85c   : > { %5245 = vmatprep.subr.bf16.mxu0 %v7584_v49  ;;  %5327 = vmatprep.subr.bf16.mxu1 %v7587_v2  ;;  %v7636_v49 = vld [vmem:[%s10311_s7 + $0x2c0] ss:$16 sps:$4 sm:$0xff]   ;;  %v7639_v2 = vld [vmem:[%s10311_s7 + $0x2c8] ss:$16 sps:$4 sm:$0xff]  }
 0x85f   : > { %5246 = vmatpush1.bf16.msra.mxu0 %v7582_v51  ;;  %5328 = vmatpush1.bf16.msra.mxu1 %v7585_v7  ;;  %v7644_v51 = vld [vmem:[%s10311_s7 + $0x2e4] ss:$16 sps:$4 sm:$0xff]   ;;  %v7647_v7 = vld [vmem:[%s10311_s7 + $0x2ec] ss:$16 sps:$4 sm:$0xff]  }
 0x860   : > { %5247 = vmatprep.subr.bf16.mxu0 %v7590_v38  ;;  %5329 = vmatprep.subr.bf16.mxu1 %v7593_v27  ;;  %v7642_v38 = vld [vmem:[%s10311_s7 + $0x2e0] ss:$16 sps:$4 sm:$0xff]   ;;  %v7645_v27 = vld [vmem:[%s10311_s7 + $0x2e8] ss:$16 sps:$4 sm:$0xff]  }
 0x863   : > { %5248 = vmatpush1.bf16.msra.mxu0 %v7588_v14  ;;  %5330 = vmatpush1.bf16.msra.mxu1 %v7591_v46  ;;  %v7650_v14 = vld [vmem:[%s10311_s7 + $0x304] ss:$16 sps:$4 sm:$0xff]   ;;  %v7653_v46 = vld [vmem:[%s10311_s7 + $0x30c] ss:$16 sps:$4 sm:$0xff]  }
 0x864   : > { %5249 = vmatprep.subr.bf16.mxu0 %v7596_v26  ;;  %5331 = vmatprep.subr.bf16.mxu1 %v7599_v44  ;;  %v7648_v26 = vld [vmem:[%s10311_s7 + $0x300] ss:$16 sps:$4 sm:$0xff]   ;;  %v7659_v44 = vld [vmem:[%s10311_s7 + $0x32c] ss:$16 sps:$4 sm:$0xff]  }
 0x867   : > { %5250 = vmatpush1.bf16.msra.mxu0 %v7594_v59  ;;  %5332 = vmatpush1.bf16.msra.mxu1 %v7597_v52  ;;  %v7651_v59 = vld [vmem:[%s10311_s7 + $0x308] ss:$16 sps:$4 sm:$0xff]   ;;  %v7656_v52 = vld [vmem:[%s10311_s7 + $0x324] ss:$16 sps:$4 sm:$0xff]  }
 0x868   : > { %5260 = vmatprep.subr.bf16.mxu0 %v7602_v60  ;;  %5342 = vmatprep.subr.bf16.mxu1 %v7605_v33  ;;  %v7654_v60 = vld [vmem:[%s10311_s7 + $0x320] ss:$16 sps:$4 sm:$0xff]   ;;  %v7657_v33 = vld [vmem:[%s10311_s7 + $0x328] ss:$16 sps:$4 sm:$0xff]  }
 0x8fd   : > { %v4332_v35 = vpop.f32.mrb[128].mxu0  ;;  %v9945_v45 = vpop.f32.mrb[128].mxu1 }
 0x8fe   : > { %v7006_v15 = vadd.f32 %v4332_v35, %v3600_v4  ;;  %v4334_v54 = vpop.f32.mrb[129].mxu0  ;;  %v4416_v30 = vpop.f32.mrb[129].mxu1  ;;  %v7662_v4 = vld [vmem:[%s10311_s7 + $0x344] ss:$16 sps:$4 sm:$0xff]   ;;  %v7663_v35 = vld [vmem:[%s10311_s7 + $0x348] ss:$16 sps:$4 sm:$0xff]  }
 0x8ff   : > { %v7007_v5 = vadd.f32 %v4334_v54, %v3604_v22  ;;  %v7009_v55 = vadd.f32 %v4416_v30, %v3612_v23  ;;  %v4336_v28 = vpop.f32.mrb[130].mxu0  ;;  %v4418_v18 = vpop.f32.mrb[130].mxu1  ;;  %v7665_v22 = vld [vmem:[%s10311_s7 + $0x34c] ss:$16 sps:$4 sm:$0xff]   ;;  %v7660_v23 = vld [vmem:[%s10311_s7 + $0x340] ss:$16 sps:$4 sm:$0xff]  }
 0x900   : > { %v4421_v0 = vmax.f32 %v7006_v15, 0.0  ;;  %v4337_v17 = vpop.f32.mrb[131].mxu0  ;;  %v4419_v37 = vpop.f32.mrb[131].mxu1  ;;  %v7668_v15 = vld [vmem:[%s10311_s7 + $0x364] ss:$16 sps:$4 sm:$0xff]  }
 0x901   : > { %v4422_v9 = vmax.f32 %v7007_v5, 0.0  ;;  %v4424_v57 = vmax.f32 %v7009_v55, 0.0  ;;  %v7671_v54 = vld [vmem:[%s10311_s7 + $0x36c] ss:$16 sps:$4 sm:$0xff]   ;;  %v7666_v30 = vld [vmem:[%s10311_s7 + $0x360] ss:$16 sps:$4 sm:$0xff]  }
 0x902   : > { %v4425_v42 = vpack.c.bf16 %v4421_v0, %v4421_v0  ;;  %v7669_v5 = vld [vmem:[%s10311_s7 + $0x368] ss:$16 sps:$4 sm:$0xff]   ;;  %v7674_v55 = vld [vmem:[%s10311_s7 + $0x384] ss:$16 sps:$4 sm:$0xff]   ;;  %v7677_v28 = vld [vmem:[%s10311_s7 + $0x38c] ss:$16 sps:$4 sm:$0xff]  }
 0x903   : > { %v4426_v47 = vpack.c.bf16 %v4422_v9, %v4422_v9  ;;  %v4428_v63 = vpack.c.bf16 %v4424_v57, %v4424_v57  ;;  %v7672_v18 = vld [vmem:[%s10311_s7 + $0x380] ss:$16 sps:$4 sm:$0xff]   ;;  %v7675_v0 = vld [vmem:[%s10311_s7 + $0x388] ss:$16 sps:$4 sm:$0xff]   ;;  %v3607_v17 = vsub.s32 2, %v9926_v24 }
 0x904   : > { %v7680_v37 = vld [vmem:[%s10311_s7 + $0x3a4] ss:$16 sps:$4 sm:$0xff]   ;;  %v7683_v9 = vld [vmem:[%s10311_s7 + $0x3ac] ss:$16 sps:$4 sm:$0xff]   ;;  %v7678_v57 = vld [vmem:[%s10311_s7 + $0x3a0] ss:$16 sps:$4 sm:$0xff]  }
 0x905   : > { %5251 = vmatprep.mubr.bf16.mxu0 %v4426_v47  ;;  %5333 = vmatprep.mubr.bf16.mxu1 %v4426_v47  ;;  %v7681_v47 = vld [vmem:[%s10311_s7 + $0x3a8] ss:$16 sps:$4 sm:$0xff]  }
 0x906   : > { %5252 = vmatmul.mubr.bf16.vlgmr.msra.gmra.mrb[132].mxu0 %v4425_v42  ;;  %5334 = vmatmul.mubr.bf16.vlgmr.msra.gmra.mrb[132].mxu1 %v4425_v42  ;;  %v7689_v42 = vld [vmem:[%s10311_s7 + $0x3cc] ss:$16 sps:$4 sm:$0xff]  }
 0x907   : > { %5261 = vmatpush1.bf16.msra.mxu0 %v7600_v25  ;;  %5343 = vmatpush1.bf16.msra.mxu1 %v7603_v8  ;;  %v3608_v25 = vrot.slane %v9932_v32, %v3607_v17  ;;  %v7686_v8 = vld [vmem:[%s10311_s7 + $0x3c4] ss:$16 sps:$4 sm:$0xff]   ;;  %v7687_v32 = vld [vmem:[%s10311_s7 + $0x3c8] ss:$16 sps:$4 sm:$0xff]  }
 0x908   : > { %5292 = vmatprep.mubr.bf16.mxu0 %v4428_v63  ;;  %5374 = vmatprep.mubr.bf16.mxu1 %v4428_v63  ;;  %v7692_v63 = vld [vmem:[%s10311_s7 + $0x3e4] ss:$16 sps:$4 sm:$0xff]  }
 0x909   : > { %5262 = vmatprep.subr.bf16.mxu0 %v7608_v56  ;;  %5344 = vmatprep.subr.bf16.mxu1 %v7611_v29  ;;  %v7684_v56 = vld [vmem:[%s10311_s7 + $0x3c0] ss:$16 sps:$4 sm:$0xff]   ;;  %v7008_v29 = vadd.f32 %v9945_v45, %v3608_v25  ;;  %v7693_v45 = vld [vmem:[%s10311_s7 + $0x3e8] ss:$16 sps:$4 sm:$0xff]  }
 0x90b   : > { %5263 = vmatpush1.bf16.msra.mxu0 %v7606_v6  ;;  %5345 = vmatpush1.bf16.msra.mxu1 %v7609_v36  ;;  %v7695_v6 = vld [vmem:[%s10311_s7 + $0x3ec] ss:$16 sps:$4 sm:$0xff]   ;;  %v7690_v36 = vld [vmem:[%s10311_s7 + $0x3e0] ss:$16 sps:$4 sm:$0xff]  }
 0x90c   : > { %5264 = vmatprep.subr.bf16.mxu0 %v7614_v43  ;;  %5346 = vmatprep.subr.bf16.mxu1 %v7617_v40  ;;  %v4423_v43 = vmax.f32 %v7008_v29, 0.0  ;;  %v7696_v40 = vld [vmem:[%s10313_s9 + $0x40] sm:$0xff]  }
 0x90f   : > { %5265 = vmatpush1.bf16.msra.mxu0 %v7612_v13  ;;  %5347 = vmatpush1.bf16.msra.mxu1 %v7615_v11  ;;  %v7697_v13 = vld [vmem:[%s10313_s9 + $0xc0] sm:$0xff]  }
 0x910   : > { %5266 = vmatprep.subr.bf16.mxu0 %v7620_v50  ;;  %5348 = vmatprep.subr.bf16.mxu1 %v7623_v58  ;;  %v7698_v11 = vld [vmem:[%s10313_s9] sm:$0xff]   ;;  %v4427_v58 = vpack.c.bf16 %v4423_v43, %v4423_v43 }
 0x911   : > { %v7699_v50 = vld [vmem:[%s10313_s9 + $0x80] sm:$0xff]  }
 0x913   : > { %5267 = vmatpush1.bf16.msra.mxu0 %v7618_v53  ;;  %5349 = vmatpush1.bf16.msra.mxu1 %v7621_v10  ;;  %v7700_v53 = vld [vmem:[%s10313_s9 + $0x48] sm:$0xff]  }
 0x914   : > { %5268 = vmatprep.subr.bf16.mxu0 %v7626_v1  ;;  %5350 = vmatprep.subr.bf16.mxu1 %v7629_v39  ;;  %v7701_v10 = vld [vmem:[%s10313_s9 + $0xc8] sm:$0xff]  }
 0x915   : > { %v7702_v1 = vld [vmem:[%s10313_s9 + $0x8] sm:$0xff]  }
 0x916   : > { %v7703_v39 = vld [vmem:[%s10313_s9 + $0x88] sm:$0xff]  }
 0x917   : > { %5269 = vmatpush1.bf16.msra.mxu0 %v7624_v34  ;;  %5351 = vmatpush1.bf16.msra.mxu1 %v7627_v3  ;;  %v7704_v34 = vld [vmem:[%s10313_s9 + $0x50] sm:$0xff]  }
 0x918   : > { %5270 = vmatprep.subr.bf16.mxu0 %v7632_v61  ;;  %5352 = vmatprep.subr.bf16.mxu1 %v7635_v21  ;;  %v7705_v3 = vld [vmem:[%s10313_s9 + $0xd0] sm:$0xff]  }
 0x919   : > { %v7706_v61 = vld [vmem:[%s10313_s9 + $0x10] sm:$0xff]  }
 0x91a   : > { %v7707_v21 = vld [vmem:[%s10313_s9 + $0x90] sm:$0xff]  }
 0x91b   : > { %5271 = vmatpush1.bf16.msra.mxu0 %v7630_v62  ;;  %5353 = vmatpush1.bf16.msra.mxu1 %v7633_v12  ;;  %v7708_v62 = vld [vmem:[%s10313_s9 + $0x58] sm:$0xff]  }
 0x91c   : > { %5272 = vmatprep.subr.bf16.mxu0 %v7638_v48  ;;  %5354 = vmatprep.subr.bf16.mxu1 %v7641_v41  ;;  %v7709_v12 = vld [vmem:[%s10313_s9 + $0xd8] sm:$0xff]  }
 0x91d   : > { %v7710_v48 = vld [vmem:[%s10313_s9 + $0x18] sm:$0xff]  }
 0x91e   : > { %v7711_v41 = vld [vmem:[%s10313_s9 + $0x98] sm:$0xff]  }
 0x91f   : > { %5273 = vmatpush1.bf16.msra.mxu0 %v7636_v49  ;;  %5355 = vmatpush1.bf16.msra.mxu1 %v7639_v2  ;;  %v7712_v49 = vld [vmem:[%s10313_s9 + $0x60] sm:$0xff]  }
 0x920   : > { %5274 = vmatprep.subr.bf16.mxu0 %v7644_v51  ;;  %5356 = vmatprep.subr.bf16.mxu1 %v7647_v7  ;;  %v7713_v2 = vld [vmem:[%s10313_s9 + $0xe0] sm:$0xff]  }
 0x921   : > { %v7714_v51 = vld [vmem:[%s10313_s9 + $0x20] sm:$0xff]  }
 0x922   : > { %v7715_v7 = vld [vmem:[%s10313_s9 + $0xa0] sm:$0xff]  }
 0x923   : > { %5275 = vmatpush1.bf16.msra.mxu0 %v7642_v38  ;;  %5357 = vmatpush1.bf16.msra.mxu1 %v7645_v27  ;;  %v7716_v38 = vld [vmem:[%s10313_s9 + $0x68] sm:$0xff]  }
 0x924   : > { %5276 = vmatprep.subr.bf16.mxu0 %v7650_v14  ;;  %5358 = vmatprep.subr.bf16.mxu1 %v7653_v46  ;;  %v7717_v27 = vld [vmem:[%s10313_s9 + $0xe8] sm:$0xff]  }
 0x925   : > { %v7718_v14 = vld [vmem:[%s10313_s9 + $0x28] sm:$0xff]  }
 0x926   : > { %v7719_v46 = vld [vmem:[%s10313_s9 + $0xa8] sm:$0xff]  }
 0x927   : > { %5277 = vmatpush1.bf16.msra.mxu0 %v7648_v26  ;;  %5359 = vmatpush1.bf16.msra.mxu1 %v7651_v59  ;;  %v7720_v26 = vld [vmem:[%s10313_s9 + $0x70] sm:$0xff]  }
 0x928   : > { %5278 = vmatprep.subr.bf16.mxu0 %v7656_v52  ;;  %5360 = vmatprep.subr.bf16.mxu1 %v7659_v44  ;;  %v7721_v59 = vld [vmem:[%s10313_s9 + $0xf0] sm:$0xff]  }
 0x929   : > { %v7722_v52 = vld [vmem:[%s10313_s9 + $0x30] sm:$0xff]  }
 0x92a   : > { %v7723_v44 = vld [vmem:[%s10313_s9 + $0xb0] sm:$0xff]  }
 0x92b   : > { %5279 = vmatpush1.bf16.msra.mxu0 %v7654_v60  ;;  %5361 = vmatpush1.bf16.msra.mxu1 %v7657_v33  ;;  %v7724_v60 = vld [vmem:[%s10313_s9 + $0x78] sm:$0xff]  }
 0x92c   : > { %5280 = vmatprep.subr.bf16.mxu0 %v7662_v4  ;;  %5362 = vmatprep.subr.bf16.mxu1 %v7665_v22  ;;  %v7725_v33 = vld [vmem:[%s10313_s9 + $0xf8] sm:$0xff]  }
 0x92d   : > { %v7726_v4 = vld [vmem:[%s10313_s9 + $0x38] sm:$0xff]  }
 0x92e   : > { %v7727_v22 = vld [vmem:[%s10313_s9 + $0xb8] sm:$0xff]  }
 0x92f   : > { %5281 = vmatpush1.bf16.msra.mxu0 %v7660_v23  ;;  %5363 = vmatpush1.bf16.msra.mxu1 %v7663_v35  ;;  %v4557_v23 = vld [vmem:[%s10312_s8] sm:$0xf] }
 0x930   : > { %5282 = vmatprep.subr.bf16.mxu0 %v7668_v15  ;;  %5364 = vmatprep.subr.bf16.mxu1 %v7671_v54  ;;  %v4562_v35 = vrot.slane %v4557_v23, %v3599_v31  ;;  %v4570_v15 = vrot.slane %v4557_v23, %v3607_v17  ;;  %v4566_v54 = vrot.slane %v4557_v23, %v3603_v16 }
 0x933   : > { %5283 = vmatpush1.bf16.msra.mxu0 %v7666_v30  ;;  %5365 = vmatpush1.bf16.msra.mxu1 %v7669_v5  ;;  %v4574_v30 = vrot.slane %v4557_v23, %v3611_v19 }
 0x934   : > { %5284 = vmatprep.subr.bf16.mxu0 %v7674_v55  ;;  %5366 = vmatprep.subr.bf16.mxu1 %v7677_v28 }
 0x937   : > { %5285 = vmatpush1.bf16.msra.mxu0 %v7672_v18  ;;  %5367 = vmatpush1.bf16.msra.mxu1 %v7675_v0 }
 0x938   : > { %5286 = vmatprep.subr.bf16.mxu0 %v7680_v37  ;;  %5368 = vmatprep.subr.bf16.mxu1 %v7683_v9 }
 0x93b   : > { %5287 = vmatpush1.bf16.msra.mxu0 %v7678_v57  ;;  %5369 = vmatpush1.bf16.msra.mxu1 %v7681_v47 }
 0x93c   : > { %5288 = vmatprep.subr.bf16.mxu0 %v7686_v8  ;;  %5370 = vmatprep.subr.bf16.mxu1 %v7689_v42 }
 0x93f   : > { %5289 = vmatpush1.bf16.msra.mxu0 %v7684_v56  ;;  %5371 = vmatpush1.bf16.msra.mxu1 %v7687_v32 }
 0x940   : > { %5290 = vmatprep.subr.bf16.mxu0 %v7692_v63  ;;  %5372 = vmatprep.subr.bf16.mxu1 %v7695_v6 }
 0x943   : > { %5291 = vmatpush1.bf16.msra.mxu0 %v7690_v36  ;;  %5373 = vmatpush1.bf16.msra.mxu1 %v7693_v45  ;;  %v5735_v36 = vand.u32 127, %v3597_v20  ;;  %v6341_v45 = vld [vmem:[%s10314_s10] ss:$0 sm:$0xff] }
 0x944   : > { %6746 = vmatprep.subr.bf16.mxu0 %v7696_v40  ;;  %6768 = vmatprep.subr.bf16.mxu1 %v7697_v13 }
 0x945   : > { %vm5736_vm8 = vcmp.ge.s32.totalorder %v5735_v36, 10  ;;  %vm5737_vm9 = vcmp.lt.s32.totalorder %v5735_v36, 18 }
 0x946   : > { %5293 = vmatmul.mubr.bf16.vlgmr.msra.gmra.mrb[132].mxu0 %v4427_v58  ;;  %5375 = vmatmul.mubr.bf16.vlgmr.msra.gmra.mrb[132].mxu1 %v4427_v58  ;;  %vm10249_vm10 = vmand %vm5736_vm8, %vm5737_vm9 }
 0x947   : > { %6747 = vmatpush3.bf16.msra.mxu0 %v7698_v11  ;;  %6769 = vmatpush3.bf16.msra.mxu1 %v7699_v50 }
 0x948   : > { %6748 = vmatprep.subr.bf16.mxu0 %v7700_v53  ;;  %6770 = vmatprep.subr.bf16.mxu1 %v7701_v10 }
 0x94b   : > { %6749 = vmatpush3.bf16.msra.mxu0 %v7702_v1  ;;  %6771 = vmatpush3.bf16.msra.mxu1 %v7703_v39 }
 0x94c   : > { %6750 = vmatprep.subr.bf16.mxu0 %v7704_v34  ;;  %6772 = vmatprep.subr.bf16.mxu1 %v7705_v3 }
 0x94f   : > { %6751 = vmatpush3.bf16.msra.mxu0 %v7706_v61  ;;  %6773 = vmatpush3.bf16.msra.mxu1 %v7707_v21 }
 0x950   : > { %6752 = vmatprep.subr.bf16.mxu0 %v7708_v62  ;;  %6774 = vmatprep.subr.bf16.mxu1 %v7709_v12 }
 0x953   : > { %6753 = vmatpush3.bf16.msra.mxu0 %v7710_v48  ;;  %6775 = vmatpush3.bf16.msra.mxu1 %v7711_v41 }
 0x954   : > { %6754 = vmatprep.subr.bf16.mxu0 %v7712_v49  ;;  %6776 = vmatprep.subr.bf16.mxu1 %v7713_v2 }
 0x957   : > { %6755 = vmatpush3.bf16.msra.mxu0 %v7714_v51  ;;  %6777 = vmatpush3.bf16.msra.mxu1 %v7715_v7 }
 0x958   : > { %6756 = vmatprep.subr.bf16.mxu0 %v7716_v38  ;;  %6778 = vmatprep.subr.bf16.mxu1 %v7717_v27 }
 0x95b   : > { %6757 = vmatpush3.bf16.msra.mxu0 %v7718_v14  ;;  %6779 = vmatpush3.bf16.msra.mxu1 %v7719_v46 }
 0x95c   : > { %6758 = vmatprep.subr.bf16.mxu0 %v7720_v26  ;;  %6780 = vmatprep.subr.bf16.mxu1 %v7721_v59 }
 0x95f   : > { %6759 = vmatpush3.bf16.msra.mxu0 %v7722_v52  ;;  %6781 = vmatpush3.bf16.msra.mxu1 %v7723_v44 }
 0x960   : > { %6760 = vmatprep.subr.bf16.mxu0 %v7724_v60  ;;  %6782 = vmatprep.subr.bf16.mxu1 %v7725_v33 }
 0x963   : > { %6761 = vmatpush3.bf16.msra.mxu0 %v7726_v4  ;;  %6783 = vmatpush3.bf16.msra.mxu1 %v7727_v22 }
 0xa19   : > { %v5294_v5 = vpop.f32.mrb[132].mxu0  ;;  %v5376_v55 = vpop.f32.mrb[132].mxu1 }
 0xa1a   : > { %v7010_v28 = vadd.f32 %v5294_v5, %v4562_v35  ;;  %v7012_v18 = vadd.f32 %v5376_v55, %v4570_v15  ;;  %v5296_v0 = vpop.f32.mrb[133].mxu0  ;;  %v5378_v37 = vpop.f32.mrb[133].mxu1 }
 0xa1b   : > { %v7011_v9 = vadd.f32 %v5296_v0, %v4566_v54  ;;  %v7013_v57 = vadd.f32 %v5378_v37, %v4574_v30  ;;  %v5298_v47 = vpop.f32.mrb[134].mxu0  ;;  %v5380_v25 = vpop.f32.mrb[134].mxu1 }
 0xa1c   : > { %v5383_v31 = vmax.f32 %v7010_v28, 0.0  ;;  %v5385_v8 = vmax.f32 %v7012_v18, 0.0  ;;  %v5299_v42 = vpop.f32.mrb[135].mxu0  ;;  %v5381_v17 = vpop.f32.mrb[135].mxu1 }
 0xa1d   : > { %v5384_v56 = vmax.f32 %v7011_v9, 0.0  ;;  %v5386_v32 = vmax.f32 %v7013_v57, 0.0 }
 0xa1e   : > { %v5387_v24 = vpack.c.bf16 %v5383_v31, %v5383_v31  ;;  %v5389_v19 = vpack.c.bf16 %v5385_v8, %v5385_v8 }
 0xa1f   : > { %v5388_v16 = vpack.c.bf16 %v5384_v56, %v5384_v56  ;;  %v5390_v29 = vpack.c.bf16 %v5386_v32, %v5386_v32 }
 0xa21   : > { %5686 = vmatprep.mubr.bf16.mxu0 %v5388_v16  ;;  %5726 = vmatprep.mubr.bf16.mxu1 %v5390_v29 }
 0xa22   : > { %5687 = vmatmul.mubr.bf16.vlgmr.msra.gmra.mrb[136].mxu0 %v5387_v24  ;;  %5727 = vmatmul.mubr.bf16.vlgmr.msra.gmra.mrb[136].mxu1 %v5389_v19 }
 0xaf5   : > { %v6762_v63 = vpop.f32.mrb[136].mxu0  ;;  %v6784_v6 = vpop.f32.mrb[136].mxu1 }
 0xaf6   : > { %v6763_v43 = vpop.f32.mrb[137].mxu0  ;;  %v6785_v40 = vpop.f32.mrb[137].mxu1 }
 0xaf7   : > { %v6764_v13 = vadd.f32 %v6763_v43, %v6762_v63  ;;  %v6786_v11 = vadd.f32 %v6785_v40, %v6784_v6  ;;  %v6765_v50 = vpop.f32.mrb[138].mxu0  ;;  %v6787_v58 = vpop.f32.mrb[138].mxu1 }
 0xaf8   : > { %v6766_v53 = vpop.f32.mrb[139].mxu0  ;;  %v6788_v10 = vpop.f32.mrb[139].mxu1 }
 0xaf9   : > { %v5689_v1 = vadd.f32 %v6764_v13, %v6341_v45 }
 0xafb   : > { %v5729_v39 = vadd.f32 %v6786_v11, %v5689_v1 }
 0xafd   : > { %v5739_v34 = vmul.f32 %v5729_v39, %v5729_v39 }
 0xaff   : > { %v5740_v3 = vsel %vm10249_vm10, %v5739_v34, 0.0 }
 0xb00   : > { %v5742_v61 = vsel %vm5741_vm11, %v5740_v3, 0.0 }
 0xb01   : > { %5743 = vadd.xlane.f32.xlu0 %v5742_v61 }
 0xb8e   : > { %v5744_v21 = vpop.xlane.xlu0 %5743 }
 0xb8f   : > { %v5745_v62 = vmax.f32 %v5744_v21, 1e-24 }
 0xb91   : > { %7728 = vrsqrt.f32 %v5745_v62 }
 0xb9b   : > { %v7729_v12 = vpop.eup %7728 }
 0xb9c   : > { %v5747_v48 = vsel %vm10249_vm10, %v7729_v12, 1.0 }
 0xb9d   : > { %v5748_v41 = vmul.f32 %v5747_v48, %v5729_v39 }
 0xb9f   : > { %5749 = vst [vmem:[%s382_s0] sm:$0xf] %v5748_v41 }
 0xba0   : > { %7787 = shalt.err (!%p7784_p3)
}
 0xba1   : > { %s7788_s16 = scalar_lea.hbm %s10262_s13, 64  ;;  %s7792_s30 = scalar_lea.hbm %s10315_s11, 128 }
 0xba2   : > { %p7789_p4 = scmp.ne.s32.totalorder %s10262_s13, %s7788_s16  ;;  %p7793_p9 = scmp.lt.u32.totalorder %s10262_s13, %s10315_s11 }
 0xba3   : > { %p7794_p10 = scmp.lt.u32.totalorder %s7792_s30, %s7788_s16  ;;  %p7796_p12 = scmp.lt.u32.totalorder %s7788_s16, %s10262_s13 }
 0xba4   : > { %p7790_p7 = pnand %p7789_p4, %p7940_p5 }
 0xba5   : > { %p7795_p11 = por %p7794_p10, %p7793_p9 }
 0xba6   : > { %p7791_p8 = pneg %p7790_p7 }
 0xba7   : > { %p7797_p13 = por %p7796_p12, %p7795_p11 }
 0xba9   : > { %p7798_p0 = pnand %p7797_p13, %p7791_p8 }
 0xbab   : > { %7801 = shalt.err (!%p7798_p0)
}
 0xbac   : > { %7035 = dma.vmem_to_hbm [thread:$0]  (%p7940_p5), %s10264_s25, 64, %s10262_s13, %s5751_s14  }
 0xbad PF: > { %p7041_p1 = scmp.ge.s32.totalorder %s7836_s20, 2  ;;  %s5776_s21 = sand.u32 1, %s7824_s17  }
 0xbae   : > { %s5777_s15 = scalar_lea.sflag [#allocation3], %s5776_s21 }
 0xbaf   : > { %p7038_p2 = pnand %p7041_p1, %p7944_p6 }
 0xbb1   : > { %7819 = dma.done.wait (!%p7038_p2), %s5777_s15, 64  }
 0xbb2   : > { %7821 = vsyncadd (!%p7038_p2), %s5777_s15, 4294967232  ;;  %p21_p3 = scmp.ge.s32.totalorder %s7927_s23, 4   ;;  %s10325_s17 = smov %s7828_s18 }
 0xbb3   : > { %s10326_s18 = smov %s7832_s19  ;;  %s10327_s19 = smov %s7938_s26 }
 0xbb4   : > { %s10328_s20 = smov %s7927_s23  ;;  %23 = sbr.rel (!%p21_p3) target bundleno = 5 (0x5), region = 102 }
 0xbbb   :  { %5782 = vsyncpa [#allocation3], 1 }
 0xbbc   :  { %5784 = vsyncpa [#allocation3 + $0x1], 1 }

</bundles_post_ra>
